<compile_context>
chip_gen: v5e
topology: v5e:2x2
jax: 0.10.0
libtpu: 0.0.40
codegen_flags: <defaults>
</compile_context>

<pallas_src>
import functools

import jax
import jax.numpy as jnp
from jax import lax
from jax.experimental import pallas as pl
from jax.experimental.pallas import tpu as pltpu

LSTM_WINDOW = 10  # config['LSTM_window']


def _round_up(n, m):
    return ((n + m - 1) // m) * m


def _sin_pre_kernel(T, D, H, HP, N1, N1P, N2, N2P,
                    x_ref, wxb_ref, wh_ref,
                    w1_ref, v1_ref, w2_ref, v2_ref, w3b_ref,
                    out_ref):
    f32 = jnp.float32
    G = HP  # per-gate lane stride (each gate owns its own 128-lane slab)

    # Lane-validity masks (padded lanes contribute 0 to every reduction).
    mask_h = (lax.broadcasted_iota(jnp.int32, (1, HP), 1) < H).astype(f32)
    mask_n1 = (lax.broadcasted_iota(jnp.int32, (1, N1P), 1) < N1).astype(f32)
    mask_n2 = (lax.broadcasted_iota(jnp.int32, (1, N2P), 1) < N2).astype(f32)

    # ---- Hoisted input projection: one small matmul off the serial chain ----
    wx = wxb_ref[0:D, :]                      # (D, 4*HP)
    b = wxb_ref[D:D + 1, :]                   # (1, 4*HP)
    xw_all = jnp.dot(x_ref[...], wx, preferred_element_type=f32) + b   # (T, 4*HP)
    wh = wh_ref[...]                          # (HP, 4*HP), padded rows/cols are zero

    h = jnp.zeros((1, HP), f32)
    c = jnp.zeros((1, HP), f32)

    # ---- Fully unrolled recurrent MyLSTM loop (T is small and static) ----
    for t in range(T):
        pre = xw_all[t:t + 1, :] + jnp.dot(h, wh, preferred_element_type=f32)  # (1, 4*HP)
        g = jax.nn.sigmoid(pre)               # reference applies sigmoid to all 4 gates
        i_g = g[:, 0:G]
        f_g = g[:, G:2 * G]
        o_g = g[:, 2 * G:3 * G]
        c_g = g[:, 3 * G:4 * G]

        # reference: cell = f * cell + torch.dot(i, c)   (scalar, broadcast)
        dot_ic = jnp.sum(i_g * c_g * mask_h, axis=-1, keepdims=True)
        c_new = f_g * c + dot_ic

        # reference: (cell - mean) / (std + 1e-5), torch.std is unbiased (N-1)
        mu = jnp.sum(c_new * mask_h, axis=-1, keepdims=True) * (1.0 / H)
        diff = (c_new - mu) * mask_h
        std = jnp.sqrt(jnp.sum(diff * diff, axis=-1, keepdims=True) * (1.0 / (H - 1)))
        c = diff * pl.reciprocal(std + 1e-5, approx=True)   # padded lanes stay 0
        h = o_g * jnp.tanh(c)                                # padded lanes: o*tanh(0)=0

    # ---- MLP head: Linear -> LayerNorm -> ReLU (x2) -> Linear ----
    def linear_ln_relu(a, w_ref, v_ref, mask, n):
        z = jnp.dot(a, w_ref[...], preferred_element_type=f32) + v_ref[0:1, :]
        mu = jnp.sum(z * mask, axis=-1, keepdims=True) * (1.0 / n)
        d = (z - mu) * mask
        var = jnp.sum(d * d, axis=-1, keepdims=True) * (1.0 / n)   # biased var (PyTorch LN)
        out = d * lax.rsqrt(var + 1e-5) * v_ref[1:2, :] + v_ref[2:3, :]
        return jnp.maximum(out, 0.0)

    a1 = linear_ln_relu(h, w1_ref, v1_ref, mask_n1, N1)      # (1, N1P)
    a2 = linear_ln_relu(a1, w2_ref, v2_ref, mask_n2, N2)     # (1, N2P)
    out_ref[...] = (jnp.sum(a2 * w3b_ref[0:1, :], axis=-1, keepdims=True)
                    + w3b_ref[1:2, 0:1])


def pack_params(p, *, input_dem, hs_dem):
    """Repack the natural parameter dict into the lane-padded kernel layout."""
    D, H = input_dem, hs_dem
    HP = _round_up(H, 128)
    N1 = p['w1'].shape[1]
    N2 = p['w2'].shape[1]
    N1P, N2P = _round_up(N1, 128), _round_up(N2, 128)

    def pack_gates(w, rows, rows_pad):
        # w: (rows, 4*H), gate order (i,f,o,c) -> (rows_pad, 4*HP), each gate in its own slab
        slabs = [jnp.pad(w[:, g * H:(g + 1) * H],
                         ((0, rows_pad - rows), (0, HP - H))) for g in range(4)]
        return jnp.concatenate(slabs, axis=1)

    wxb = jnp.concatenate([pack_gates(p['wx'], D, D),
                           pack_gates(p['b'], 1, 1)], axis=0)          # (D+1, 4*HP)
    wh_p = pack_gates(p['wh'], H, HP)                                  # (HP, 4*HP)

    w1_p = jnp.pad(p['w1'], ((0, HP - H), (0, N1P - N1)))              # (HP, N1P)
    v1 = jnp.concatenate([jnp.pad(p[k], ((0, 0), (0, N1P - N1)))
                          for k in ('b1', 'g1', 'be1')], axis=0)       # (3, N1P)
    w2_p = jnp.pad(p['w2'], ((0, N1P - N1), (0, N2P - N2)))            # (N1P, N2P)
    v2 = jnp.concatenate([jnp.pad(p[k], ((0, 0), (0, N2P - N2)))
                          for k in ('b2', 'g2', 'be2')], axis=0)       # (3, N2P)
    w3b = jnp.concatenate([jnp.pad(p['w3'].T, ((0, 0), (0, N2P - N2))),
                           jnp.pad(p['b3'], ((0, 0), (0, N2P - 1)))], axis=0)  # (2, N2P)

    return dict(wxb=wxb, wh=wh_p, w1=w1_p, v1=v1, w2=w2_p, v2=v2, w3b=w3b,
                meta=dict(HP=HP, N1=N1, N1P=N1P, N2=N2, N2P=N2P))


def my_sin_pre_model(x, packed, *, input_num, input_dem, hs_dem):
    """Equivalent of MySinPreModel.forward (states reset each call, as in reference)."""
    meta = packed['meta']
    x2d = x.reshape(LSTM_WINDOW, input_dem).astype(jnp.float32)
    kernel = functools.partial(_sin_pre_kernel, input_num, input_dem, hs_dem,
                               meta['HP'], meta['N1'], meta['N1P'],
                               meta['N2'], meta['N2P'])
    vmem = pl.BlockSpec(memory_space=pltpu.MemorySpace.VMEM)
    operands = (x2d, packed['wxb'], packed['wh'], packed['w1'], packed['v1'],
                packed['w2'], packed['v2'], packed['w3b'])
    out = pl.pallas_call(
        kernel,
        out_shape=jax.ShapeDtypeStruct((1, 1), jnp.float32),
        in_specs=[vmem] * len(operands),
        out_specs=vmem,
    )(*operands)
    return out.reshape(1)   # PyTorch returns shape (1,)


def init_params(key, input_dem, hs_dem):
    """Deterministic synthetic init mirroring the module's __init__ shapes."""
    H = hs_dem
    ks = jax.random.split(key, 12)

    def randn(k, shape):
        return jax.random.normal(k, shape, dtype=jnp.float32) * 0.01

    # gate order (i, f, o, c) packed along feature axis
    wx = jnp.concatenate([randn(ks[i], (input_dem, H)) for i in range(4)], axis=1)   # (D, 4H)
    wh = jnp.concatenate([randn(ks[4 + i], (H, H)) for i in range(4)], axis=1)       # (H, 4H)
    b = jnp.zeros((1, 4 * H), jnp.float32)

    def linear(k, fan_in, fan_out):
        k1, k2 = jax.random.split(k)
        bound = float(fan_in) ** -0.5
        w = jax.random.uniform(k1, (fan_in, fan_out), jnp.float32, -bound, bound)
        bb = jax.random.uniform(k2, (1, fan_out), jnp.float32, -bound, bound)
        return w, bb

    w1, b1 = linear(ks[8], H, 1000)
    w2, b2 = linear(ks[9], 1000, 100)
    w3, b3 = linear(ks[10], 100, 1)

    return dict(
        wx=wx, wh=wh, b=b,
        w1=w1, b1=b1, g1=jnp.ones((1, 1000), jnp.float32), be1=jnp.zeros((1, 1000), jnp.float32),
        w2=w2, b2=b2, g2=jnp.ones((1, 100), jnp.float32), be2=jnp.zeros((1, 100), jnp.float32),
        w3=w3, b3=b3,
    )


def reference_forward(x, p, *, input_num, input_dem, hs_dem):
    """Pure-JAX reference mirroring the PyTorch semantics (silent sanity check)."""
    H = hs_dem
    x2d = x.reshape(LSTM_WINDOW, input_dem).astype(jnp.float32)
    h = jnp.zeros((1, H), jnp.float32)
    c = jnp.zeros((1, H), jnp.float32)
    for t in range(input_num):
        x_t = x2d[t:t + 1, :]
        gates = jax.nn.sigmoid(x_t @ p['wx'] + h @ p['wh'] + p['b'])
        i_g, f_g, o_g, c_g = (gates[:, :H], gates[:, H:2 * H],
                              gates[:, 2 * H:3 * H], gates[:, 3 * H:])
        c = f_g * c + jnp.sum(i_g * c_g)
        mu = jnp.mean(c)
        std = jnp.sqrt(jnp.sum((c - mu) ** 2) / (H - 1))
        c = (c - mu) / (std + 1e-5)
        h = o_g * jnp.tanh(c)

    def ln(z, g, b):
        mu = jnp.mean(z, axis=-1, keepdims=True)
        var = jnp.mean((z - mu) ** 2, axis=-1, keepdims=True)
        return (z - mu) / jnp.sqrt(var + 1e-5) * g + b

    a1 = jnp.maximum(ln(h @ p['w1'] + p['b1'], p['g1'], p['be1']), 0.0)
    a2 = jnp.maximum(ln(a1 @ p['w2'] + p['b2'], p['g2'], p['be2']), 0.0)
    return (a2 @ p['w3'] + p['b3']).reshape(1)


if __name__ == "__main__":
    # MySinPreModel(input_num=10, input_dem=1, hs_dem=32); x has LSTM_window=10 elements.
    input_num, input_dem, hs_dem = 10, 1, 32

    key = jax.random.PRNGKey(0)
    kx, kp = jax.random.split(key)
    x = jax.random.normal(kx, (LSTM_WINDOW,), dtype=jnp.float32)
    params = init_params(kp, input_dem, hs_dem)
    packed = pack_params(params, input_dem=input_dem, hs_dem=hs_dem)

    out = my_sin_pre_model(x, packed, input_num=input_num,
                           input_dem=input_dem, hs_dem=hs_dem)
    out = jax.block_until_ready(out)

    ref = reference_forward(x, params, input_num=input_num,
                            input_dem=input_dem, hs_dem=hs_dem)
    assert out.shape == (1,)
    assert bool(jnp.allclose(out, ref, rtol=1e-2, atol=1e-2))

    print("KERNEL_OK")
</pallas_src>

<mosaic_0001>
module attributes {stable_mosaic.version = 11 : i64} {
  func.func @_sin_pre_kernel(%arg0: memref<10x1xf32, #tpu.memory_space<vmem>>, %arg1: memref<2x512xf32, #tpu.memory_space<vmem>>, %arg2: memref<128x512xf32, #tpu.memory_space<vmem>>, %arg3: memref<128x1024xf32, #tpu.memory_space<vmem>>, %arg4: memref<3x1024xf32, #tpu.memory_space<vmem>>, %arg5: memref<1024x128xf32, #tpu.memory_space<vmem>>, %arg6: memref<3x128xf32, #tpu.memory_space<vmem>>, %arg7: memref<2x128xf32, #tpu.memory_space<vmem>>, %arg8: memref<1x1xf32, #tpu.memory_space<vmem>>) attributes {dimension_semantics = [], scalar_prefetch = 0 : i64, scratch_operands = 0 : i64, tpu.core_type = #tpu.core_type<tc>} {
    %0 = tpu.iota {dimensions = array<i32: 1>} : vector<1x128xi32>
    %c32_i32 = arith.constant 32 : i32
    %1 = vector.broadcast %c32_i32 : i32 to vector<1x128xi32>
    %2 = arith.cmpi slt, %0, %1 : vector<1x128xi32>
    %3 = arith.extui %2 : vector<1x128xi1> to vector<1x128xi32>
    %4 = arith.sitofp %3 : vector<1x128xi32> to vector<1x128xf32>
    %5 = tpu.iota {dimensions = array<i32: 1>} : vector<1x1024xi32>
    %c1000_i32 = arith.constant 1000 : i32
    %6 = vector.broadcast %c1000_i32 : i32 to vector<1x1024xi32>
    %7 = arith.cmpi slt, %5, %6 : vector<1x1024xi32>
    %8 = arith.extui %7 : vector<1x1024xi1> to vector<1x1024xi32>
    %9 = arith.sitofp %8 : vector<1x1024xi32> to vector<1x1024xf32>
    %10 = tpu.iota {dimensions = array<i32: 1>} : vector<1x128xi32>
    %c100_i32 = arith.constant 100 : i32
    %11 = vector.broadcast %c100_i32 : i32 to vector<1x128xi32>
    %12 = arith.cmpi slt, %10, %11 : vector<1x128xi32>
    %13 = arith.extui %12 : vector<1x128xi1> to vector<1x128xi32>
    %14 = arith.sitofp %13 : vector<1x128xi32> to vector<1x128xf32>
    %c0 = arith.constant 0 : index
    %c0_0 = arith.constant 0 : index
    %15 = vector.load %arg1[%c0, %c0_0] : memref<2x512xf32, #tpu.memory_space<vmem>>, vector<1x512xf32>
    %c1 = arith.constant 1 : index
    %c0_1 = arith.constant 0 : index
    %16 = vector.load %arg1[%c1, %c0_1] : memref<2x512xf32, #tpu.memory_space<vmem>>, vector<1x512xf32>
    %c0_2 = arith.constant 0 : index
    %c0_3 = arith.constant 0 : index
    %17 = vector.load %arg0[%c0_2, %c0_3] : memref<10x1xf32, #tpu.memory_space<vmem>>, vector<10x1xf32>
    %cst = arith.constant dense<0.000000e+00> : vector<10x512xf32>
    %18 = tpu.matmul %17, %15, %cst {dimension_numbers = #tpu.dot_dimension_numbers<[1], [0], [0], [1], [0, 0, 1, 1], [], []>} : vector<10x1xf32>, vector<1x512xf32>, vector<10x512xf32> -> vector<10x512xf32>
    %19 = vector.broadcast %16 : vector<1x512xf32> to vector<10x512xf32>
    %20 = arith.addf %18, %19 : vector<10x512xf32>
    %c0_4 = arith.constant 0 : index
    %c0_5 = arith.constant 0 : index
    %21 = vector.load %arg2[%c0_4, %c0_5] : memref<128x512xf32, #tpu.memory_space<vmem>>, vector<128x512xf32>
    %cst_6 = arith.constant 0.000000e+00 : f32
    %22 = vector.broadcast %cst_6 : f32 to vector<1x128xf32>
    %cst_7 = arith.constant 0.000000e+00 : f32
    %23 = vector.broadcast %cst_7 : f32 to vector<1x128xf32>
    %24 = vector.extract_strided_slice %20 {offsets = [0, 0], sizes = [1, 512], strides = [1, 1]} : vector<10x512xf32> to vector<1x512xf32>
    %cst_8 = arith.constant dense<0.000000e+00> : vector<1x512xf32>
    %25 = tpu.matmul %22, %21, %cst_8 {dimension_numbers = #tpu.dot_dimension_numbers<[1], [0], [0], [1], [0, 0, 1, 1], [], []>} : vector<1x128xf32>, vector<128x512xf32>, vector<1x512xf32> -> vector<1x512xf32>
    %26 = arith.addf %24, %25 : vector<1x512xf32>
    %27 = arith.negf %26 : vector<1x512xf32>
    %28 = math.exp %27 : vector<1x512xf32>
    %cst_9 = arith.constant 1.000000e+00 : f32
    %29 = vector.broadcast %cst_9 : f32 to vector<1x512xf32>
    %30 = arith.addf %29, %28 : vector<1x512xf32>
    %31 = arith.divf %29, %30 : vector<1x512xf32>
    %32 = vector.extract_strided_slice %31 {offsets = [0, 0], sizes = [1, 128], strides = [1, 1]} : vector<1x512xf32> to vector<1x128xf32>
    %33 = vector.extract_strided_slice %31 {offsets = [0, 128], sizes = [1, 128], strides = [1, 1]} : vector<1x512xf32> to vector<1x128xf32>
    %34 = vector.extract_strided_slice %31 {offsets = [0, 256], sizes = [1, 128], strides = [1, 1]} : vector<1x512xf32> to vector<1x128xf32>
    %35 = vector.extract_strided_slice %31 {offsets = [0, 384], sizes = [1, 128], strides = [1, 1]} : vector<1x512xf32> to vector<1x128xf32>
    %36 = arith.mulf %32, %35 : vector<1x128xf32>
    %37 = arith.mulf %36, %4 : vector<1x128xf32>
    %cst_10 = arith.constant dense<0.000000e+00> : vector<1xf32>
    %38 = vector.multi_reduction <add>, %37, %cst_10 [1] : vector<1x128xf32> to vector<1xf32>
    %39 = vector.shape_cast %38 : vector<1xf32> to vector<1x1xf32>
    %40 = arith.mulf %33, %23 : vector<1x128xf32>
    %41 = vector.broadcast %39 : vector<1x1xf32> to vector<1x128xf32>
    %42 = arith.addf %40, %41 : vector<1x128xf32>
    %43 = arith.mulf %42, %4 : vector<1x128xf32>
    %cst_11 = arith.constant dense<0.000000e+00> : vector<1xf32>
    %44 = vector.multi_reduction <add>, %43, %cst_11 [1] : vector<1x128xf32> to vector<1xf32>
    %45 = vector.shape_cast %44 : vector<1xf32> to vector<1x1xf32>
    %cst_12 = arith.constant 3.125000e-02 : f32
    %46 = vector.broadcast %cst_12 : f32 to vector<1x1xf32>
    %47 = arith.mulf %45, %46 : vector<1x1xf32>
    %48 = vector.broadcast %47 : vector<1x1xf32> to vector<1x128xf32>
    %49 = arith.subf %42, %48 : vector<1x128xf32>
    %50 = arith.mulf %49, %4 : vector<1x128xf32>
    %51 = arith.mulf %50, %50 : vector<1x128xf32>
    %cst_13 = arith.constant dense<0.000000e+00> : vector<1xf32>
    %52 = vector.multi_reduction <add>, %51, %cst_13 [1] : vector<1x128xf32> to vector<1xf32>
    %53 = vector.shape_cast %52 : vector<1xf32> to vector<1x1xf32>
    %cst_14 = arith.constant 0.0322580636 : f32
    %54 = vector.broadcast %cst_14 : f32 to vector<1x1xf32>
    %55 = arith.mulf %53, %54 : vector<1x1xf32>
    %56 = math.sqrt %55 : vector<1x1xf32>
    %cst_15 = arith.constant 9.99999974E-6 : f32
    %57 = vector.broadcast %cst_15 : f32 to vector<1x1xf32>
    %58 = arith.addf %56, %57 : vector<1x1xf32>
    %59 = tpu.reciprocal %58 {approx = true} : vector<1x1xf32> -> vector<1x1xf32>
    %60 = vector.broadcast %59 : vector<1x1xf32> to vector<1x128xf32>
    %61 = arith.mulf %50, %60 : vector<1x128xf32>
    %62 = math.tanh %61 : vector<1x128xf32>
    %63 = arith.mulf %34, %62 : vector<1x128xf32>
    %64 = vector.extract_strided_slice %20 {offsets = [1, 0], sizes = [1, 512], strides = [1, 1]} : vector<10x512xf32> to vector<1x512xf32>
    %cst_16 = arith.constant dense<0.000000e+00> : vector<1x512xf32>
    %65 = tpu.matmul %63, %21, %cst_16 {dimension_numbers = #tpu.dot_dimension_numbers<[1], [0], [0], [1], [0, 0, 1, 1], [], []>} : vector<1x128xf32>, vector<128x512xf32>, vector<1x512xf32> -> vector<1x512xf32>
    %66 = arith.addf %64, %65 : vector<1x512xf32>
    %67 = arith.negf %66 : vector<1x512xf32>
    %68 = math.exp %67 : vector<1x512xf32>
    %cst_17 = arith.constant 1.000000e+00 : f32
    %69 = vector.broadcast %cst_17 : f32 to vector<1x512xf32>
    %70 = arith.addf %69, %68 : vector<1x512xf32>
    %71 = arith.divf %69, %70 : vector<1x512xf32>
    %72 = vector.extract_strided_slice %71 {offsets = [0, 0], sizes = [1, 128], strides = [1, 1]} : vector<1x512xf32> to vector<1x128xf32>
    %73 = vector.extract_strided_slice %71 {offsets = [0, 128], sizes = [1, 128], strides = [1, 1]} : vector<1x512xf32> to vector<1x128xf32>
    %74 = vector.extract_strided_slice %71 {offsets = [0, 256], sizes = [1, 128], strides = [1, 1]} : vector<1x512xf32> to vector<1x128xf32>
    %75 = vector.extract_strided_slice %71 {offsets = [0, 384], sizes = [1, 128], strides = [1, 1]} : vector<1x512xf32> to vector<1x128xf32>
    %76 = arith.mulf %72, %75 : vector<1x128xf32>
    %77 = arith.mulf %76, %4 : vector<1x128xf32>
    %cst_18 = arith.constant dense<0.000000e+00> : vector<1xf32>
    %78 = vector.multi_reduction <add>, %77, %cst_18 [1] : vector<1x128xf32> to vector<1xf32>
    %79 = vector.shape_cast %78 : vector<1xf32> to vector<1x1xf32>
    %80 = arith.mulf %73, %61 : vector<1x128xf32>
    %81 = vector.broadcast %79 : vector<1x1xf32> to vector<1x128xf32>
    %82 = arith.addf %80, %81 : vector<1x128xf32>
    %83 = arith.mulf %82, %4 : vector<1x128xf32>
    %cst_19 = arith.constant dense<0.000000e+00> : vector<1xf32>
    %84 = vector.multi_reduction <add>, %83, %cst_19 [1] : vector<1x128xf32> to vector<1xf32>
    %85 = vector.shape_cast %84 : vector<1xf32> to vector<1x1xf32>
    %cst_20 = arith.constant 3.125000e-02 : f32
    %86 = vector.broadcast %cst_20 : f32 to vector<1x1xf32>
    %87 = arith.mulf %85, %86 : vector<1x1xf32>
    %88 = vector.broadcast %87 : vector<1x1xf32> to vector<1x128xf32>
    %89 = arith.subf %82, %88 : vector<1x128xf32>
    %90 = arith.mulf %89, %4 : vector<1x128xf32>
    %91 = arith.mulf %90, %90 : vector<1x128xf32>
    %cst_21 = arith.constant dense<0.000000e+00> : vector<1xf32>
    %92 = vector.multi_reduction <add>, %91, %cst_21 [1] : vector<1x128xf32> to vector<1xf32>
    %93 = vector.shape_cast %92 : vector<1xf32> to vector<1x1xf32>
    %cst_22 = arith.constant 0.0322580636 : f32
    %94 = vector.broadcast %cst_22 : f32 to vector<1x1xf32>
    %95 = arith.mulf %93, %94 : vector<1x1xf32>
    %96 = math.sqrt %95 : vector<1x1xf32>
    %cst_23 = arith.constant 9.99999974E-6 : f32
    %97 = vector.broadcast %cst_23 : f32 to vector<1x1xf32>
    %98 = arith.addf %96, %97 : vector<1x1xf32>
    %99 = tpu.reciprocal %98 {approx = true} : vector<1x1xf32> -> vector<1x1xf32>
    %100 = vector.broadcast %99 : vector<1x1xf32> to vector<1x128xf32>
    %101 = arith.mulf %90, %100 : vector<1x128xf32>
    %102 = math.tanh %101 : vector<1x128xf32>
    %103 = arith.mulf %74, %102 : vector<1x128xf32>
    %104 = vector.extract_strided_slice %20 {offsets = [2, 0], sizes = [1, 512], strides = [1, 1]} : vector<10x512xf32> to vector<1x512xf32>
    %cst_24 = arith.constant dense<0.000000e+00> : vector<1x512xf32>
    %105 = tpu.matmul %103, %21, %cst_24 {dimension_numbers = #tpu.dot_dimension_numbers<[1], [0], [0], [1], [0, 0, 1, 1], [], []>} : vector<1x128xf32>, vector<128x512xf32>, vector<1x512xf32> -> vector<1x512xf32>
    %106 = arith.addf %104, %105 : vector<1x512xf32>
    %107 = arith.negf %106 : vector<1x512xf32>
    %108 = math.exp %107 : vector<1x512xf32>
    %cst_25 = arith.constant 1.000000e+00 : f32
    %109 = vector.broadcast %cst_25 : f32 to vector<1x512xf32>
    %110 = arith.addf %109, %108 : vector<1x512xf32>
    %111 = arith.divf %109, %110 : vector<1x512xf32>
    %112 = vector.extract_strided_slice %111 {offsets = [0, 0], sizes = [1, 128], strides = [1, 1]} : vector<1x512xf32> to vector<1x128xf32>
    %113 = vector.extract_strided_slice %111 {offsets = [0, 128], sizes = [1, 128], strides = [1, 1]} : vector<1x512xf32> to vector<1x128xf32>
    %114 = vector.extract_strided_slice %111 {offsets = [0, 256], sizes = [1, 128], strides = [1, 1]} : vector<1x512xf32> to vector<1x128xf32>
    %115 = vector.extract_strided_slice %111 {offsets = [0, 384], sizes = [1, 128], strides = [1, 1]} : vector<1x512xf32> to vector<1x128xf32>
    %116 = arith.mulf %112, %115 : vector<1x128xf32>
    %117 = arith.mulf %116, %4 : vector<1x128xf32>
    %cst_26 = arith.constant dense<0.000000e+00> : vector<1xf32>
    %118 = vector.multi_reduction <add>, %117, %cst_26 [1] : vector<1x128xf32> to vector<1xf32>
    %119 = vector.shape_cast %118 : vector<1xf32> to vector<1x1xf32>
    %120 = arith.mulf %113, %101 : vector<1x128xf32>
    %121 = vector.broadcast %119 : vector<1x1xf32> to vector<1x128xf32>
    %122 = arith.addf %120, %121 : vector<1x128xf32>
    %123 = arith.mulf %122, %4 : vector<1x128xf32>
    %cst_27 = arith.constant dense<0.000000e+00> : vector<1xf32>
    %124 = vector.multi_reduction <add>, %123, %cst_27 [1] : vector<1x128xf32> to vector<1xf32>
    %125 = vector.shape_cast %124 : vector<1xf32> to vector<1x1xf32>
    %cst_28 = arith.constant 3.125000e-02 : f32
    %126 = vector.broadcast %cst_28 : f32 to vector<1x1xf32>
    %127 = arith.mulf %125, %126 : vector<1x1xf32>
    %128 = vector.broadcast %127 : vector<1x1xf32> to vector<1x128xf32>
    %129 = arith.subf %122, %128 : vector<1x128xf32>
    %130 = arith.mulf %129, %4 : vector<1x128xf32>
    %131 = arith.mulf %130, %130 : vector<1x128xf32>
    %cst_29 = arith.constant dense<0.000000e+00> : vector<1xf32>
    %132 = vector.multi_reduction <add>, %131, %cst_29 [1] : vector<1x128xf32> to vector<1xf32>
    %133 = vector.shape_cast %132 : vector<1xf32> to vector<1x1xf32>
    %cst_30 = arith.constant 0.0322580636 : f32
    %134 = vector.broadcast %cst_30 : f32 to vector<1x1xf32>
    %135 = arith.mulf %133, %134 : vector<1x1xf32>
    %136 = math.sqrt %135 : vector<1x1xf32>
    %cst_31 = arith.constant 9.99999974E-6 : f32
    %137 = vector.broadcast %cst_31 : f32 to vector<1x1xf32>
    %138 = arith.addf %136, %137 : vector<1x1xf32>
    %139 = tpu.reciprocal %138 {approx = true} : vector<1x1xf32> -> vector<1x1xf32>
    %140 = vector.broadcast %139 : vector<1x1xf32> to vector<1x128xf32>
    %141 = arith.mulf %130, %140 : vector<1x128xf32>
    %142 = math.tanh %141 : vector<1x128xf32>
    %143 = arith.mulf %114, %142 : vector<1x128xf32>
    %144 = vector.extract_strided_slice %20 {offsets = [3, 0], sizes = [1, 512], strides = [1, 1]} : vector<10x512xf32> to vector<1x512xf32>
    %cst_32 = arith.constant dense<0.000000e+00> : vector<1x512xf32>
    %145 = tpu.matmul %143, %21, %cst_32 {dimension_numbers = #tpu.dot_dimension_numbers<[1], [0], [0], [1], [0, 0, 1, 1], [], []>} : vector<1x128xf32>, vector<128x512xf32>, vector<1x512xf32> -> vector<1x512xf32>
    %146 = arith.addf %144, %145 : vector<1x512xf32>
    %147 = arith.negf %146 : vector<1x512xf32>
    %148 = math.exp %147 : vector<1x512xf32>
    %cst_33 = arith.constant 1.000000e+00 : f32
    %149 = vector.broadcast %cst_33 : f32 to vector<1x512xf32>
    %150 = arith.addf %149, %148 : vector<1x512xf32>
    %151 = arith.divf %149, %150 : vector<1x512xf32>
    %152 = vector.extract_strided_slice %151 {offsets = [0, 0], sizes = [1, 128], strides = [1, 1]} : vector<1x512xf32> to vector<1x128xf32>
    %153 = vector.extract_strided_slice %151 {offsets = [0, 128], sizes = [1, 128], strides = [1, 1]} : vector<1x512xf32> to vector<1x128xf32>
    %154 = vector.extract_strided_slice %151 {offsets = [0, 256], sizes = [1, 128], strides = [1, 1]} : vector<1x512xf32> to vector<1x128xf32>
    %155 = vector.extract_strided_slice %151 {offsets = [0, 384], sizes = [1, 128], strides = [1, 1]} : vector<1x512xf32> to vector<1x128xf32>
    %156 = arith.mulf %152, %155 : vector<1x128xf32>
    %157 = arith.mulf %156, %4 : vector<1x128xf32>
    %cst_34 = arith.constant dense<0.000000e+00> : vector<1xf32>
    %158 = vector.multi_reduction <add>, %157, %cst_34 [1] : vector<1x128xf32> to vector<1xf32>
    %159 = vector.shape_cast %158 : vector<1xf32> to vector<1x1xf32>
    %160 = arith.mulf %153, %141 : vector<1x128xf32>
    %161 = vector.broadcast %159 : vector<1x1xf32> to vector<1x128xf32>
    %162 = arith.addf %160, %161 : vector<1x128xf32>
    %163 = arith.mulf %162, %4 : vector<1x128xf32>
    %cst_35 = arith.constant dense<0.000000e+00> : vector<1xf32>
    %164 = vector.multi_reduction <add>, %163, %cst_35 [1] : vector<1x128xf32> to vector<1xf32>
    %165 = vector.shape_cast %164 : vector<1xf32> to vector<1x1xf32>
    %cst_36 = arith.constant 3.125000e-02 : f32
    %166 = vector.broadcast %cst_36 : f32 to vector<1x1xf32>
    %167 = arith.mulf %165, %166 : vector<1x1xf32>
    %168 = vector.broadcast %167 : vector<1x1xf32> to vector<1x128xf32>
    %169 = arith.subf %162, %168 : vector<1x128xf32>
    %170 = arith.mulf %169, %4 : vector<1x128xf32>
    %171 = arith.mulf %170, %170 : vector<1x128xf32>
    %cst_37 = arith.constant dense<0.000000e+00> : vector<1xf32>
    %172 = vector.multi_reduction <add>, %171, %cst_37 [1] : vector<1x128xf32> to vector<1xf32>
    %173 = vector.shape_cast %172 : vector<1xf32> to vector<1x1xf32>
    %cst_38 = arith.constant 0.0322580636 : f32
    %174 = vector.broadcast %cst_38 : f32 to vector<1x1xf32>
    %175 = arith.mulf %173, %174 : vector<1x1xf32>
    %176 = math.sqrt %175 : vector<1x1xf32>
    %cst_39 = arith.constant 9.99999974E-6 : f32
    %177 = vector.broadcast %cst_39 : f32 to vector<1x1xf32>
    %178 = arith.addf %176, %177 : vector<1x1xf32>
    %179 = tpu.reciprocal %178 {approx = true} : vector<1x1xf32> -> vector<1x1xf32>
    %180 = vector.broadcast %179 : vector<1x1xf32> to vector<1x128xf32>
    %181 = arith.mulf %170, %180 : vector<1x128xf32>
    %182 = math.tanh %181 : vector<1x128xf32>
    %183 = arith.mulf %154, %182 : vector<1x128xf32>
    %184 = vector.extract_strided_slice %20 {offsets = [4, 0], sizes = [1, 512], strides = [1, 1]} : vector<10x512xf32> to vector<1x512xf32>
    %cst_40 = arith.constant dense<0.000000e+00> : vector<1x512xf32>
    %185 = tpu.matmul %183, %21, %cst_40 {dimension_numbers = #tpu.dot_dimension_numbers<[1], [0], [0], [1], [0, 0, 1, 1], [], []>} : vector<1x128xf32>, vector<128x512xf32>, vector<1x512xf32> -> vector<1x512xf32>
    %186 = arith.addf %184, %185 : vector<1x512xf32>
    %187 = arith.negf %186 : vector<1x512xf32>
    %188 = math.exp %187 : vector<1x512xf32>
    %cst_41 = arith.constant 1.000000e+00 : f32
    %189 = vector.broadcast %cst_41 : f32 to vector<1x512xf32>
    %190 = arith.addf %189, %188 : vector<1x512xf32>
    %191 = arith.divf %189, %190 : vector<1x512xf32>
    %192 = vector.extract_strided_slice %191 {offsets = [0, 0], sizes = [1, 128], strides = [1, 1]} : vector<1x512xf32> to vector<1x128xf32>
    %193 = vector.extract_strided_slice %191 {offsets = [0, 128], sizes = [1, 128], strides = [1, 1]} : vector<1x512xf32> to vector<1x128xf32>
    %194 = vector.extract_strided_slice %191 {offsets = [0, 256], sizes = [1, 128], strides = [1, 1]} : vector<1x512xf32> to vector<1x128xf32>
    %195 = vector.extract_strided_slice %191 {offsets = [0, 384], sizes = [1, 128], strides = [1, 1]} : vector<1x512xf32> to vector<1x128xf32>
    %196 = arith.mulf %192, %195 : vector<1x128xf32>
    %197 = arith.mulf %196, %4 : vector<1x128xf32>
    %cst_42 = arith.constant dense<0.000000e+00> : vector<1xf32>
    %198 = vector.multi_reduction <add>, %197, %cst_42 [1] : vector<1x128xf32> to vector<1xf32>
    %199 = vector.shape_cast %198 : vector<1xf32> to vector<1x1xf32>
    %200 = arith.mulf %193, %181 : vector<1x128xf32>
    %201 = vector.broadcast %199 : vector<1x1xf32> to vector<1x128xf32>
    %202 = arith.addf %200, %201 : vector<1x128xf32>
    %203 = arith.mulf %202, %4 : vector<1x128xf32>
    %cst_43 = arith.constant dense<0.000000e+00> : vector<1xf32>
    %204 = vector.multi_reduction <add>, %203, %cst_43 [1] : vector<1x128xf32> to vector<1xf32>
    %205 = vector.shape_cast %204 : vector<1xf32> to vector<1x1xf32>
    %cst_44 = arith.constant 3.125000e-02 : f32
    %206 = vector.broadcast %cst_44 : f32 to vector<1x1xf32>
    %207 = arith.mulf %205, %206 : vector<1x1xf32>
    %208 = vector.broadcast %207 : vector<1x1xf32> to vector<1x128xf32>
    %209 = arith.subf %202, %208 : vector<1x128xf32>
    %210 = arith.mulf %209, %4 : vector<1x128xf32>
    %211 = arith.mulf %210, %210 : vector<1x128xf32>
    %cst_45 = arith.constant dense<0.000000e+00> : vector<1xf32>
    %212 = vector.multi_reduction <add>, %211, %cst_45 [1] : vector<1x128xf32> to vector<1xf32>
    %213 = vector.shape_cast %212 : vector<1xf32> to vector<1x1xf32>
    %cst_46 = arith.constant 0.0322580636 : f32
    %214 = vector.broadcast %cst_46 : f32 to vector<1x1xf32>
    %215 = arith.mulf %213, %214 : vector<1x1xf32>
    %216 = math.sqrt %215 : vector<1x1xf32>
    %cst_47 = arith.constant 9.99999974E-6 : f32
    %217 = vector.broadcast %cst_47 : f32 to vector<1x1xf32>
    %218 = arith.addf %216, %217 : vector<1x1xf32>
    %219 = tpu.reciprocal %218 {approx = true} : vector<1x1xf32> -> vector<1x1xf32>
    %220 = vector.broadcast %219 : vector<1x1xf32> to vector<1x128xf32>
    %221 = arith.mulf %210, %220 : vector<1x128xf32>
    %222 = math.tanh %221 : vector<1x128xf32>
    %223 = arith.mulf %194, %222 : vector<1x128xf32>
    %224 = vector.extract_strided_slice %20 {offsets = [5, 0], sizes = [1, 512], strides = [1, 1]} : vector<10x512xf32> to vector<1x512xf32>
    %cst_48 = arith.constant dense<0.000000e+00> : vector<1x512xf32>
    %225 = tpu.matmul %223, %21, %cst_48 {dimension_numbers = #tpu.dot_dimension_numbers<[1], [0], [0], [1], [0, 0, 1, 1], [], []>} : vector<1x128xf32>, vector<128x512xf32>, vector<1x512xf32> -> vector<1x512xf32>
    %226 = arith.addf %224, %225 : vector<1x512xf32>
    %227 = arith.negf %226 : vector<1x512xf32>
    %228 = math.exp %227 : vector<1x512xf32>
    %cst_49 = arith.constant 1.000000e+00 : f32
    %229 = vector.broadcast %cst_49 : f32 to vector<1x512xf32>
    %230 = arith.addf %229, %228 : vector<1x512xf32>
    %231 = arith.divf %229, %230 : vector<1x512xf32>
    %232 = vector.extract_strided_slice %231 {offsets = [0, 0], sizes = [1, 128], strides = [1, 1]} : vector<1x512xf32> to vector<1x128xf32>
    %233 = vector.extract_strided_slice %231 {offsets = [0, 128], sizes = [1, 128], strides = [1, 1]} : vector<1x512xf32> to vector<1x128xf32>
    %234 = vector.extract_strided_slice %231 {offsets = [0, 256], sizes = [1, 128], strides = [1, 1]} : vector<1x512xf32> to vector<1x128xf32>
    %235 = vector.extract_strided_slice %231 {offsets = [0, 384], sizes = [1, 128], strides = [1, 1]} : vector<1x512xf32> to vector<1x128xf32>
    %236 = arith.mulf %232, %235 : vector<1x128xf32>
    %237 = arith.mulf %236, %4 : vector<1x128xf32>
    %cst_50 = arith.constant dense<0.000000e+00> : vector<1xf32>
    %238 = vector.multi_reduction <add>, %237, %cst_50 [1] : vector<1x128xf32> to vector<1xf32>
    %239 = vector.shape_cast %238 : vector<1xf32> to vector<1x1xf32>
    %240 = arith.mulf %233, %221 : vector<1x128xf32>
    %241 = vector.broadcast %239 : vector<1x1xf32> to vector<1x128xf32>
    %242 = arith.addf %240, %241 : vector<1x128xf32>
    %243 = arith.mulf %242, %4 : vector<1x128xf32>
    %cst_51 = arith.constant dense<0.000000e+00> : vector<1xf32>
    %244 = vector.multi_reduction <add>, %243, %cst_51 [1] : vector<1x128xf32> to vector<1xf32>
    %245 = vector.shape_cast %244 : vector<1xf32> to vector<1x1xf32>
    %cst_52 = arith.constant 3.125000e-02 : f32
    %246 = vector.broadcast %cst_52 : f32 to vector<1x1xf32>
    %247 = arith.mulf %245, %246 : vector<1x1xf32>
    %248 = vector.broadcast %247 : vector<1x1xf32> to vector<1x128xf32>
    %249 = arith.subf %242, %248 : vector<1x128xf32>
    %250 = arith.mulf %249, %4 : vector<1x128xf32>
    %251 = arith.mulf %250, %250 : vector<1x128xf32>
    %cst_53 = arith.constant dense<0.000000e+00> : vector<1xf32>
    %252 = vector.multi_reduction <add>, %251, %cst_53 [1] : vector<1x128xf32> to vector<1xf32>
    %253 = vector.shape_cast %252 : vector<1xf32> to vector<1x1xf32>
    %cst_54 = arith.constant 0.0322580636 : f32
    %254 = vector.broadcast %cst_54 : f32 to vector<1x1xf32>
    %255 = arith.mulf %253, %254 : vector<1x1xf32>
    %256 = math.sqrt %255 : vector<1x1xf32>
    %cst_55 = arith.constant 9.99999974E-6 : f32
    %257 = vector.broadcast %cst_55 : f32 to vector<1x1xf32>
    %258 = arith.addf %256, %257 : vector<1x1xf32>
    %259 = tpu.reciprocal %258 {approx = true} : vector<1x1xf32> -> vector<1x1xf32>
    %260 = vector.broadcast %259 : vector<1x1xf32> to vector<1x128xf32>
    %261 = arith.mulf %250, %260 : vector<1x128xf32>
    %262 = math.tanh %261 : vector<1x128xf32>
    %263 = arith.mulf %234, %262 : vector<1x128xf32>
    %264 = vector.extract_strided_slice %20 {offsets = [6, 0], sizes = [1, 512], strides = [1, 1]} : vector<10x512xf32> to vector<1x512xf32>
    %cst_56 = arith.constant dense<0.000000e+00> : vector<1x512xf32>
    %265 = tpu.matmul %263, %21, %cst_56 {dimension_numbers = #tpu.dot_dimension_numbers<[1], [0], [0], [1], [0, 0, 1, 1], [], []>} : vector<1x128xf32>, vector<128x512xf32>, vector<1x512xf32> -> vector<1x512xf32>
    %266 = arith.addf %264, %265 : vector<1x512xf32>
    %267 = arith.negf %266 : vector<1x512xf32>
    %268 = math.exp %267 : vector<1x512xf32>
    %cst_57 = arith.constant 1.000000e+00 : f32
    %269 = vector.broadcast %cst_57 : f32 to vector<1x512xf32>
    %270 = arith.addf %269, %268 : vector<1x512xf32>
    %271 = arith.divf %269, %270 : vector<1x512xf32>
    %272 = vector.extract_strided_slice %271 {offsets = [0, 0], sizes = [1, 128], strides = [1, 1]} : vector<1x512xf32> to vector<1x128xf32>
    %273 = vector.extract_strided_slice %271 {offsets = [0, 128], sizes = [1, 128], strides = [1, 1]} : vector<1x512xf32> to vector<1x128xf32>
    %274 = vector.extract_strided_slice %271 {offsets = [0, 256], sizes = [1, 128], strides = [1, 1]} : vector<1x512xf32> to vector<1x128xf32>
    %275 = vector.extract_strided_slice %271 {offsets = [0, 384], sizes = [1, 128], strides = [1, 1]} : vector<1x512xf32> to vector<1x128xf32>
    %276 = arith.mulf %272, %275 : vector<1x128xf32>
    %277 = arith.mulf %276, %4 : vector<1x128xf32>
    %cst_58 = arith.constant dense<0.000000e+00> : vector<1xf32>
    %278 = vector.multi_reduction <add>, %277, %cst_58 [1] : vector<1x128xf32> to vector<1xf32>
    %279 = vector.shape_cast %278 : vector<1xf32> to vector<1x1xf32>
    %280 = arith.mulf %273, %261 : vector<1x128xf32>
    %281 = vector.broadcast %279 : vector<1x1xf32> to vector<1x128xf32>
    %282 = arith.addf %280, %281 : vector<1x128xf32>
    %283 = arith.mulf %282, %4 : vector<1x128xf32>
    %cst_59 = arith.constant dense<0.000000e+00> : vector<1xf32>
    %284 = vector.multi_reduction <add>, %283, %cst_59 [1] : vector<1x128xf32> to vector<1xf32>
    %285 = vector.shape_cast %284 : vector<1xf32> to vector<1x1xf32>
    %cst_60 = arith.constant 3.125000e-02 : f32
    %286 = vector.broadcast %cst_60 : f32 to vector<1x1xf32>
    %287 = arith.mulf %285, %286 : vector<1x1xf32>
    %288 = vector.broadcast %287 : vector<1x1xf32> to vector<1x128xf32>
    %289 = arith.subf %282, %288 : vector<1x128xf32>
    %290 = arith.mulf %289, %4 : vector<1x128xf32>
    %291 = arith.mulf %290, %290 : vector<1x128xf32>
    %cst_61 = arith.constant dense<0.000000e+00> : vector<1xf32>
    %292 = vector.multi_reduction <add>, %291, %cst_61 [1] : vector<1x128xf32> to vector<1xf32>
    %293 = vector.shape_cast %292 : vector<1xf32> to vector<1x1xf32>
    %cst_62 = arith.constant 0.0322580636 : f32
    %294 = vector.broadcast %cst_62 : f32 to vector<1x1xf32>
    %295 = arith.mulf %293, %294 : vector<1x1xf32>
    %296 = math.sqrt %295 : vector<1x1xf32>
    %cst_63 = arith.constant 9.99999974E-6 : f32
    %297 = vector.broadcast %cst_63 : f32 to vector<1x1xf32>
    %298 = arith.addf %296, %297 : vector<1x1xf32>
    %299 = tpu.reciprocal %298 {approx = true} : vector<1x1xf32> -> vector<1x1xf32>
    %300 = vector.broadcast %299 : vector<1x1xf32> to vector<1x128xf32>
    %301 = arith.mulf %290, %300 : vector<1x128xf32>
    %302 = math.tanh %301 : vector<1x128xf32>
    %303 = arith.mulf %274, %302 : vector<1x128xf32>
    %304 = vector.extract_strided_slice %20 {offsets = [7, 0], sizes = [1, 512], strides = [1, 1]} : vector<10x512xf32> to vector<1x512xf32>
    %cst_64 = arith.constant dense<0.000000e+00> : vector<1x512xf32>
    %305 = tpu.matmul %303, %21, %cst_64 {dimension_numbers = #tpu.dot_dimension_numbers<[1], [0], [0], [1], [0, 0, 1, 1], [], []>} : vector<1x128xf32>, vector<128x512xf32>, vector<1x512xf32> -> vector<1x512xf32>
    %306 = arith.addf %304, %305 : vector<1x512xf32>
    %307 = arith.negf %306 : vector<1x512xf32>
    %308 = math.exp %307 : vector<1x512xf32>
    %cst_65 = arith.constant 1.000000e+00 : f32
    %309 = vector.broadcast %cst_65 : f32 to vector<1x512xf32>
    %310 = arith.addf %309, %308 : vector<1x512xf32>
    %311 = arith.divf %309, %310 : vector<1x512xf32>
    %312 = vector.extract_strided_slice %311 {offsets = [0, 0], sizes = [1, 128], strides = [1, 1]} : vector<1x512xf32> to vector<1x128xf32>
    %313 = vector.extract_strided_slice %311 {offsets = [0, 128], sizes = [1, 128], strides = [1, 1]} : vector<1x512xf32> to vector<1x128xf32>
    %314 = vector.extract_strided_slice %311 {offsets = [0, 256], sizes = [1, 128], strides = [1, 1]} : vector<1x512xf32> to vector<1x128xf32>
    %315 = vector.extract_strided_slice %311 {offsets = [0, 384], sizes = [1, 128], strides = [1, 1]} : vector<1x512xf32> to vector<1x128xf32>
    %316 = arith.mulf %312, %315 : vector<1x128xf32>
    %317 = arith.mulf %316, %4 : vector<1x128xf32>
    %cst_66 = arith.constant dense<0.000000e+00> : vector<1xf32>
    %318 = vector.multi_reduction <add>, %317, %cst_66 [1] : vector<1x128xf32> to vector<1xf32>
    %319 = vector.shape_cast %318 : vector<1xf32> to vector<1x1xf32>
    %320 = arith.mulf %313, %301 : vector<1x128xf32>
    %321 = vector.broadcast %319 : vector<1x1xf32> to vector<1x128xf32>
    %322 = arith.addf %320, %321 : vector<1x128xf32>
    %323 = arith.mulf %322, %4 : vector<1x128xf32>
    %cst_67 = arith.constant dense<0.000000e+00> : vector<1xf32>
    %324 = vector.multi_reduction <add>, %323, %cst_67 [1] : vector<1x128xf32> to vector<1xf32>
    %325 = vector.shape_cast %324 : vector<1xf32> to vector<1x1xf32>
    %cst_68 = arith.constant 3.125000e-02 : f32
    %326 = vector.broadcast %cst_68 : f32 to vector<1x1xf32>
    %327 = arith.mulf %325, %326 : vector<1x1xf32>
    %328 = vector.broadcast %327 : vector<1x1xf32> to vector<1x128xf32>
    %329 = arith.subf %322, %328 : vector<1x128xf32>
    %330 = arith.mulf %329, %4 : vector<1x128xf32>
    %331 = arith.mulf %330, %330 : vector<1x128xf32>
    %cst_69 = arith.constant dense<0.000000e+00> : vector<1xf32>
    %332 = vector.multi_reduction <add>, %331, %cst_69 [1] : vector<1x128xf32> to vector<1xf32>
    %333 = vector.shape_cast %332 : vector<1xf32> to vector<1x1xf32>
    %cst_70 = arith.constant 0.0322580636 : f32
    %334 = vector.broadcast %cst_70 : f32 to vector<1x1xf32>
    %335 = arith.mulf %333, %334 : vector<1x1xf32>
    %336 = math.sqrt %335 : vector<1x1xf32>
    %cst_71 = arith.constant 9.99999974E-6 : f32
    %337 = vector.broadcast %cst_71 : f32 to vector<1x1xf32>
    %338 = arith.addf %336, %337 : vector<1x1xf32>
    %339 = tpu.reciprocal %338 {approx = true} : vector<1x1xf32> -> vector<1x1xf32>
    %340 = vector.broadcast %339 : vector<1x1xf32> to vector<1x128xf32>
    %341 = arith.mulf %330, %340 : vector<1x128xf32>
    %342 = math.tanh %341 : vector<1x128xf32>
    %343 = arith.mulf %314, %342 : vector<1x128xf32>
    %344 = vector.extract_strided_slice %20 {offsets = [8, 0], sizes = [1, 512], strides = [1, 1]} : vector<10x512xf32> to vector<1x512xf32>
    %cst_72 = arith.constant dense<0.000000e+00> : vector<1x512xf32>
    %345 = tpu.matmul %343, %21, %cst_72 {dimension_numbers = #tpu.dot_dimension_numbers<[1], [0], [0], [1], [0, 0, 1, 1], [], []>} : vector<1x128xf32>, vector<128x512xf32>, vector<1x512xf32> -> vector<1x512xf32>
    %346 = arith.addf %344, %345 : vector<1x512xf32>
    %347 = arith.negf %346 : vector<1x512xf32>
    %348 = math.exp %347 : vector<1x512xf32>
    %cst_73 = arith.constant 1.000000e+00 : f32
    %349 = vector.broadcast %cst_73 : f32 to vector<1x512xf32>
    %350 = arith.addf %349, %348 : vector<1x512xf32>
    %351 = arith.divf %349, %350 : vector<1x512xf32>
    %352 = vector.extract_strided_slice %351 {offsets = [0, 0], sizes = [1, 128], strides = [1, 1]} : vector<1x512xf32> to vector<1x128xf32>
    %353 = vector.extract_strided_slice %351 {offsets = [0, 128], sizes = [1, 128], strides = [1, 1]} : vector<1x512xf32> to vector<1x128xf32>
    %354 = vector.extract_strided_slice %351 {offsets = [0, 256], sizes = [1, 128], strides = [1, 1]} : vector<1x512xf32> to vector<1x128xf32>
    %355 = vector.extract_strided_slice %351 {offsets = [0, 384], sizes = [1, 128], strides = [1, 1]} : vector<1x512xf32> to vector<1x128xf32>
    %356 = arith.mulf %352, %355 : vector<1x128xf32>
    %357 = arith.mulf %356, %4 : vector<1x128xf32>
    %cst_74 = arith.constant dense<0.000000e+00> : vector<1xf32>
    %358 = vector.multi_reduction <add>, %357, %cst_74 [1] : vector<1x128xf32> to vector<1xf32>
    %359 = vector.shape_cast %358 : vector<1xf32> to vector<1x1xf32>
    %360 = arith.mulf %353, %341 : vector<1x128xf32>
    %361 = vector.broadcast %359 : vector<1x1xf32> to vector<1x128xf32>
    %362 = arith.addf %360, %361 : vector<1x128xf32>
    %363 = arith.mulf %362, %4 : vector<1x128xf32>
    %cst_75 = arith.constant dense<0.000000e+00> : vector<1xf32>
    %364 = vector.multi_reduction <add>, %363, %cst_75 [1] : vector<1x128xf32> to vector<1xf32>
    %365 = vector.shape_cast %364 : vector<1xf32> to vector<1x1xf32>
    %cst_76 = arith.constant 3.125000e-02 : f32
    %366 = vector.broadcast %cst_76 : f32 to vector<1x1xf32>
    %367 = arith.mulf %365, %366 : vector<1x1xf32>
    %368 = vector.broadcast %367 : vector<1x1xf32> to vector<1x128xf32>
    %369 = arith.subf %362, %368 : vector<1x128xf32>
    %370 = arith.mulf %369, %4 : vector<1x128xf32>
    %371 = arith.mulf %370, %370 : vector<1x128xf32>
    %cst_77 = arith.constant dense<0.000000e+00> : vector<1xf32>
    %372 = vector.multi_reduction <add>, %371, %cst_77 [1] : vector<1x128xf32> to vector<1xf32>
    %373 = vector.shape_cast %372 : vector<1xf32> to vector<1x1xf32>
    %cst_78 = arith.constant 0.0322580636 : f32
    %374 = vector.broadcast %cst_78 : f32 to vector<1x1xf32>
    %375 = arith.mulf %373, %374 : vector<1x1xf32>
    %376 = math.sqrt %375 : vector<1x1xf32>
    %cst_79 = arith.constant 9.99999974E-6 : f32
    %377 = vector.broadcast %cst_79 : f32 to vector<1x1xf32>
    %378 = arith.addf %376, %377 : vector<1x1xf32>
    %379 = tpu.reciprocal %378 {approx = true} : vector<1x1xf32> -> vector<1x1xf32>
    %380 = vector.broadcast %379 : vector<1x1xf32> to vector<1x128xf32>
    %381 = arith.mulf %370, %380 : vector<1x128xf32>
    %382 = math.tanh %381 : vector<1x128xf32>
    %383 = arith.mulf %354, %382 : vector<1x128xf32>
    %384 = vector.extract_strided_slice %20 {offsets = [9, 0], sizes = [1, 512], strides = [1, 1]} : vector<10x512xf32> to vector<1x512xf32>
    %cst_80 = arith.constant dense<0.000000e+00> : vector<1x512xf32>
    %385 = tpu.matmul %383, %21, %cst_80 {dimension_numbers = #tpu.dot_dimension_numbers<[1], [0], [0], [1], [0, 0, 1, 1], [], []>} : vector<1x128xf32>, vector<128x512xf32>, vector<1x512xf32> -> vector<1x512xf32>
    %386 = arith.addf %384, %385 : vector<1x512xf32>
    %387 = arith.negf %386 : vector<1x512xf32>
    %388 = math.exp %387 : vector<1x512xf32>
    %cst_81 = arith.constant 1.000000e+00 : f32
    %389 = vector.broadcast %cst_81 : f32 to vector<1x512xf32>
    %390 = arith.addf %389, %388 : vector<1x512xf32>
    %391 = arith.divf %389, %390 : vector<1x512xf32>
    %392 = vector.extract_strided_slice %391 {offsets = [0, 0], sizes = [1, 128], strides = [1, 1]} : vector<1x512xf32> to vector<1x128xf32>
    %393 = vector.extract_strided_slice %391 {offsets = [0, 128], sizes = [1, 128], strides = [1, 1]} : vector<1x512xf32> to vector<1x128xf32>
    %394 = vector.extract_strided_slice %391 {offsets = [0, 256], sizes = [1, 128], strides = [1, 1]} : vector<1x512xf32> to vector<1x128xf32>
    %395 = vector.extract_strided_slice %391 {offsets = [0, 384], sizes = [1, 128], strides = [1, 1]} : vector<1x512xf32> to vector<1x128xf32>
    %396 = arith.mulf %392, %395 : vector<1x128xf32>
    %397 = arith.mulf %396, %4 : vector<1x128xf32>
    %cst_82 = arith.constant dense<0.000000e+00> : vector<1xf32>
    %398 = vector.multi_reduction <add>, %397, %cst_82 [1] : vector<1x128xf32> to vector<1xf32>
    %399 = vector.shape_cast %398 : vector<1xf32> to vector<1x1xf32>
    %400 = arith.mulf %393, %381 : vector<1x128xf32>
    %401 = vector.broadcast %399 : vector<1x1xf32> to vector<1x128xf32>
    %402 = arith.addf %400, %401 : vector<1x128xf32>
    %403 = arith.mulf %402, %4 : vector<1x128xf32>
    %cst_83 = arith.constant dense<0.000000e+00> : vector<1xf32>
    %404 = vector.multi_reduction <add>, %403, %cst_83 [1] : vector<1x128xf32> to vector<1xf32>
    %405 = vector.shape_cast %404 : vector<1xf32> to vector<1x1xf32>
    %cst_84 = arith.constant 3.125000e-02 : f32
    %406 = vector.broadcast %cst_84 : f32 to vector<1x1xf32>
    %407 = arith.mulf %405, %406 : vector<1x1xf32>
    %408 = vector.broadcast %407 : vector<1x1xf32> to vector<1x128xf32>
    %409 = arith.subf %402, %408 : vector<1x128xf32>
    %410 = arith.mulf %409, %4 : vector<1x128xf32>
    %411 = arith.mulf %410, %410 : vector<1x128xf32>
    %cst_85 = arith.constant dense<0.000000e+00> : vector<1xf32>
    %412 = vector.multi_reduction <add>, %411, %cst_85 [1] : vector<1x128xf32> to vector<1xf32>
    %413 = vector.shape_cast %412 : vector<1xf32> to vector<1x1xf32>
    %cst_86 = arith.constant 0.0322580636 : f32
    %414 = vector.broadcast %cst_86 : f32 to vector<1x1xf32>
    %415 = arith.mulf %413, %414 : vector<1x1xf32>
    %416 = math.sqrt %415 : vector<1x1xf32>
    %cst_87 = arith.constant 9.99999974E-6 : f32
    %417 = vector.broadcast %cst_87 : f32 to vector<1x1xf32>
    %418 = arith.addf %416, %417 : vector<1x1xf32>
    %419 = tpu.reciprocal %418 {approx = true} : vector<1x1xf32> -> vector<1x1xf32>
    %420 = vector.broadcast %419 : vector<1x1xf32> to vector<1x128xf32>
    %421 = arith.mulf %410, %420 : vector<1x128xf32>
    %422 = math.tanh %421 : vector<1x128xf32>
    %423 = arith.mulf %394, %422 : vector<1x128xf32>
    %c0_88 = arith.constant 0 : index
    %c0_89 = arith.constant 0 : index
    %424 = vector.load %arg3[%c0_88, %c0_89] : memref<128x1024xf32, #tpu.memory_space<vmem>>, vector<128x1024xf32>
    %cst_90 = arith.constant dense<0.000000e+00> : vector<1x1024xf32>
    %425 = tpu.matmul %423, %424, %cst_90 {dimension_numbers = #tpu.dot_dimension_numbers<[1], [0], [0], [1], [0, 0, 1, 1], [], []>} : vector<1x128xf32>, vector<128x1024xf32>, vector<1x1024xf32> -> vector<1x1024xf32>
    %c0_91 = arith.constant 0 : index
    %c0_92 = arith.constant 0 : index
    %426 = vector.load %arg4[%c0_91, %c0_92] : memref<3x1024xf32, #tpu.memory_space<vmem>>, vector<1x1024xf32>
    %427 = arith.addf %425, %426 : vector<1x1024xf32>
    %428 = arith.mulf %427, %9 : vector<1x1024xf32>
    %cst_93 = arith.constant dense<0.000000e+00> : vector<1xf32>
    %429 = vector.multi_reduction <add>, %428, %cst_93 [1] : vector<1x1024xf32> to vector<1xf32>
    %430 = vector.shape_cast %429 : vector<1xf32> to vector<1x1xf32>
    %cst_94 = arith.constant 1.000000e-03 : f32
    %431 = vector.broadcast %cst_94 : f32 to vector<1x1xf32>
    %432 = arith.mulf %430, %431 : vector<1x1xf32>
    %433 = vector.broadcast %432 : vector<1x1xf32> to vector<1x1024xf32>
    %434 = arith.subf %427, %433 : vector<1x1024xf32>
    %435 = arith.mulf %434, %9 : vector<1x1024xf32>
    %436 = arith.mulf %435, %435 : vector<1x1024xf32>
    %cst_95 = arith.constant dense<0.000000e+00> : vector<1xf32>
    %437 = vector.multi_reduction <add>, %436, %cst_95 [1] : vector<1x1024xf32> to vector<1xf32>
    %438 = vector.shape_cast %437 : vector<1xf32> to vector<1x1xf32>
    %cst_96 = arith.constant 1.000000e-03 : f32
    %439 = vector.broadcast %cst_96 : f32 to vector<1x1xf32>
    %440 = arith.mulf %438, %439 : vector<1x1xf32>
    %cst_97 = arith.constant 9.99999974E-6 : f32
    %441 = vector.broadcast %cst_97 : f32 to vector<1x1xf32>
    %442 = arith.addf %440, %441 : vector<1x1xf32>
    %443 = math.rsqrt %442 : vector<1x1xf32>
    %444 = vector.broadcast %443 : vector<1x1xf32> to vector<1x1024xf32>
    %445 = arith.mulf %435, %444 : vector<1x1024xf32>
    %c1_98 = arith.constant 1 : index
    %c0_99 = arith.constant 0 : index
    %446 = vector.load %arg4[%c1_98, %c0_99] : memref<3x1024xf32, #tpu.memory_space<vmem>>, vector<1x1024xf32>
    %447 = arith.mulf %445, %446 : vector<1x1024xf32>
    %c2 = arith.constant 2 : index
    %c0_100 = arith.constant 0 : index
    %448 = vector.load %arg4[%c2, %c0_100] : memref<3x1024xf32, #tpu.memory_space<vmem>>, vector<1x1024xf32>
    %449 = arith.addf %447, %448 : vector<1x1024xf32>
    %cst_101 = arith.constant 0.000000e+00 : f32
    %450 = vector.broadcast %cst_101 : f32 to vector<1x1024xf32>
    %451 = arith.maximumf %449, %450 : vector<1x1024xf32>
    %c0_102 = arith.constant 0 : index
    %c0_103 = arith.constant 0 : index
    %452 = vector.load %arg5[%c0_102, %c0_103] : memref<1024x128xf32, #tpu.memory_space<vmem>>, vector<1024x128xf32>
    %cst_104 = arith.constant dense<0.000000e+00> : vector<1x128xf32>
    %453 = tpu.matmul %451, %452, %cst_104 {dimension_numbers = #tpu.dot_dimension_numbers<[1], [0], [0], [1], [0, 0, 1, 1], [], []>} : vector<1x1024xf32>, vector<1024x128xf32>, vector<1x128xf32> -> vector<1x128xf32>
    %c0_105 = arith.constant 0 : index
    %c0_106 = arith.constant 0 : index
    %454 = vector.load %arg6[%c0_105, %c0_106] : memref<3x128xf32, #tpu.memory_space<vmem>>, vector<1x128xf32>
    %455 = arith.addf %453, %454 : vector<1x128xf32>
    %456 = arith.mulf %455, %14 : vector<1x128xf32>
    %cst_107 = arith.constant dense<0.000000e+00> : vector<1xf32>
    %457 = vector.multi_reduction <add>, %456, %cst_107 [1] : vector<1x128xf32> to vector<1xf32>
    %458 = vector.shape_cast %457 : vector<1xf32> to vector<1x1xf32>
    %cst_108 = arith.constant 0.00999999977 : f32
    %459 = vector.broadcast %cst_108 : f32 to vector<1x1xf32>
    %460 = arith.mulf %458, %459 : vector<1x1xf32>
    %461 = vector.broadcast %460 : vector<1x1xf32> to vector<1x128xf32>
    %462 = arith.subf %455, %461 : vector<1x128xf32>
    %463 = arith.mulf %462, %14 : vector<1x128xf32>
    %464 = arith.mulf %463, %463 : vector<1x128xf32>
    %cst_109 = arith.constant dense<0.000000e+00> : vector<1xf32>
    %465 = vector.multi_reduction <add>, %464, %cst_109 [1] : vector<1x128xf32> to vector<1xf32>
    %466 = vector.shape_cast %465 : vector<1xf32> to vector<1x1xf32>
    %cst_110 = arith.constant 0.00999999977 : f32
    %467 = vector.broadcast %cst_110 : f32 to vector<1x1xf32>
    %468 = arith.mulf %466, %467 : vector<1x1xf32>
    %cst_111 = arith.constant 9.99999974E-6 : f32
    %469 = vector.broadcast %cst_111 : f32 to vector<1x1xf32>
    %470 = arith.addf %468, %469 : vector<1x1xf32>
    %471 = math.rsqrt %470 : vector<1x1xf32>
    %472 = vector.broadcast %471 : vector<1x1xf32> to vector<1x128xf32>
    %473 = arith.mulf %463, %472 : vector<1x128xf32>
    %c1_112 = arith.constant 1 : index
    %c0_113 = arith.constant 0 : index
    %474 = vector.load %arg6[%c1_112, %c0_113] : memref<3x128xf32, #tpu.memory_space<vmem>>, vector<1x128xf32>
    %475 = arith.mulf %473, %474 : vector<1x128xf32>
    %c2_114 = arith.constant 2 : index
    %c0_115 = arith.constant 0 : index
    %476 = vector.load %arg6[%c2_114, %c0_115] : memref<3x128xf32, #tpu.memory_space<vmem>>, vector<1x128xf32>
    %477 = arith.addf %475, %476 : vector<1x128xf32>
    %cst_116 = arith.constant 0.000000e+00 : f32
    %478 = vector.broadcast %cst_116 : f32 to vector<1x128xf32>
    %479 = arith.maximumf %477, %478 : vector<1x128xf32>
    %c0_117 = arith.constant 0 : index
    %c0_118 = arith.constant 0 : index
    %480 = vector.load %arg7[%c0_117, %c0_118] : memref<2x128xf32, #tpu.memory_space<vmem>>, vector<1x128xf32>
    %481 = arith.mulf %479, %480 : vector<1x128xf32>
    %cst_119 = arith.constant dense<0.000000e+00> : vector<1xf32>
    %482 = vector.multi_reduction <add>, %481, %cst_119 [1] : vector<1x128xf32> to vector<1xf32>
    %483 = vector.shape_cast %482 : vector<1xf32> to vector<1x1xf32>
    %c1_120 = arith.constant 1 : index
    %c0_121 = arith.constant 0 : index
    %484 = vector.load %arg7[%c1_120, %c0_121] : memref<2x128xf32, #tpu.memory_space<vmem>>, vector<1x1xf32>
    %485 = arith.addf %483, %484 : vector<1x1xf32>
    %c0_122 = arith.constant 0 : index
    %c0_123 = arith.constant 0 : index
    %486 = vector.load %arg8[%c0_122, %c0_123] : memref<1x1xf32, #tpu.memory_space<vmem>>, vector<1x1xf32>
    tpu.vector_store %arg8[%c0_122, %c0_123], %485 {strides = array<i32>} : memref<1x1xf32, #tpu.memory_space<vmem>>, vector<1x1xf32>,
    return
  }
}

</mosaic_0001>

<bundles_post_ra>
// kernel: tpu_custom_call.1
= control target key start
LH: loop header
LB: loop body
LE: loop exit
PB: predicated region body
PF: predicated region fallthrough
CT: control target
= control target key end

     0   :  { %13 = vsyncpa [#allocation3], 0  ;;  %s5225_s0 = inlined_call_operand.vmem [shape: f32[10,1], index: 0, kind: input, shape index: {}]   ;;  %s5226_s1 = inlined_call_operand.vmem [shape: f32[2,512], index: 1, kind: input, shape index: {}]   ;;  %s5227_s2 = inlined_call_operand.hbm [shape: f32[128,512], index: 2, kind: input, shape index: {}]   ;;  %s5228_s3 = inlined_call_operand.hbm [shape: f32[128,1024], index: 3, kind: input, shape index: {}]   ;;  %s5229_s4 = inlined_call_operand.hbm [shape: f32[3,1024], index: 4, kind: input, shape index: {}]   ;;  %s5230_s5 = inlined_call_operand.hbm [shape: f32[1024,128], index: 5, kind: input, shape index: {}]   ;;  %s5231_s6 = inlined_call_operand.vmem [shape: f32[3,128], index: 6, kind: input, shape index: {}]   ;;  %s5232_s7 = inlined_call_operand.vmem [shape: f32[2,128], index: 7, kind: input, shape index: {}]   ;;  %s5233_s8 = inlined_call_operand.hbm [shape: f32[1,1], index: 8, kind: output, shape index: {}]  }
   0x1   :  { %14 = vsyncpa [#allocation6], 0 }
   0x2   :  { %15 = vsyncpa [#allocation9], 0  ;;  %s38_s29 = sshll.u32 %s5228_s3, 4  ;;  %s39_s29 = int_to_ptr.hbm [resolvable:$true] %s38_s29 }
   0x3   :  { %16 = vsyncpa [#allocation4], 0  ;;  %s3784_s30 = smov [#allocation5]   ;;  %s25_s12 = sshll.u32 %s5227_s2, 4  ;;  %s26_s12 = int_to_ptr.hbm [resolvable:$true] %s25_s12 }
   0x4   :  { %s40_s9 = sshll.u32 %s3784_s30, 4  ;;  %s3785_s13 = smov 1024   ;;  %s41_s9 = int_to_ptr.vmem [resolvable:$true] %s40_s9 }
   0x5   :  { %s3786_s14 = smov 64   ;;  %s3787_s15 = smov [#allocation2]  }
   0x6   :  { %46 = dma.hbm_to_vmem [thread:$0]  %s39_s29, 16384, %s41_s9, [#allocation6], %s3785_s13, %s3785_s13, %s3786_s14  }
   0x7   :  { %s27_s16 = sshll.u32 %s3787_s15, 4  ;;  %s3788_s17 = smov 512   ;;  %s28_s16 = int_to_ptr.vmem [resolvable:$true] %s27_s16 }
   0x8   :  { %s3789_s18 = smov 32   ;;  %s52_s20 = sshll.u32 %s5229_s4, 4  ;;  %s53_s20 = int_to_ptr.hbm [resolvable:$true] %s52_s20 }
   0x9   :  { %33 = dma.hbm_to_vmem [thread:$0]  %s26_s12, 8192, %s28_s16, [#allocation3], %s3788_s17, %s3788_s17, %s3789_s18  }
   0xa   :  { %s3790_s21 = smov [#allocation7]   ;;  %s62_s24 = sshll.u32 %s5230_s5, 4  ;;  %s63_s24 = int_to_ptr.hbm [resolvable:$true] %s62_s24 }
   0xb   :  { %s54_s22 = sshll.u32 %s3790_s21, 4  ;;  %s3791_s25 = smov [#allocation8]   ;;  %s55_s22 = int_to_ptr.vmem [resolvable:$true] %s54_s22 }
   0xc   :  { %57 = dma.hbm_to_vmem [thread:$0]  %s53_s20, 512, %s55_s22, [#allocation6]  }
   0xd   :  { %s64_s26 = sshll.u32 %s3791_s25, 4  ;;  %s3792_s27 = smov 128   ;;  %s65_s26 = int_to_ptr.vmem [resolvable:$true] %s64_s26 }
   0xe   :  { %s3793_s28 = smov 8  }
   0xf   :  { %70 = dma.hbm_to_vmem [thread:$0]  %s63_s24, 16384, %s65_s26, [#allocation9], %s3792_s27, %s3792_s27, %s3793_s28  }
  0x10   :  { %3776 = dma.done.wait [#allocation3], 8192  }
  0x11   :  { %3777 = vsyncadd [#allocation3], 4294959104 }
  0x12   :  { %3778 = dma.done.wait [#allocation6], 16896  }
  0x13   :  { %3779 = vsyncadd [#allocation6], 4294950400 }
  0x14   :  { %3780 = dma.done.wait [#allocation9], 16384  }
  0x15   :  { %3781 = vsyncadd [#allocation9], 4294950912  ;;  %v3856_v0 = vld [vmem:[%s5226_s1] ss:$2 sm:$0xf]  ;;  %vm156_vm0 = vcmask 1040384  }
  0x16   :  { %v145_v1 = vperm.slane %v3856_v0, 0  ;;  %v148_v2 = vperm.slane %v3856_v0, 3  ;;  %v3860_v3 = vld [vmem:[#allocation2 + $0x1e0] sm:$0xff]  ;;  %v3862_v4 = vld [vmem:[#allocation2 + $0x1f8] sm:$0xff]  ;;  %v146_v7 = vperm.slane %v3856_v0, 1  ;;  %vm149_vm1 = vcmask 7168  }
  0x17   :  { %v3866_v5 = vld [vmem:[#allocation2 + $0x1c0] sm:$0xff]  ;;  %v3868_v6 = vld [vmem:[#allocation2 + $0x1d8] sm:$0xff]  ;;  %v3907_v17 = vld [vmem:[#allocation2 + $0x1e8] sm:$0xff]  ;;  %v5234_v49 = vmov 0.0   ;;  %s3795_s20 = smov [#allocation10]  }
  0x18   :  { %3240 = vmatpush.msk.msra.mxu0 %vm156_vm0, %v145_v1  ;;  %3249 = vmatpush.msk.msra.mxu3 %vm156_vm0, %v148_v2  ;;  %v3873_v8 = vld [vmem:[#allocation2 + $0x1a0] sm:$0xff]  ;;  %v3875_v9 = vld [vmem:[#allocation2 + $0x1b8] sm:$0xff]  ;;  %v3914_v18 = vld [vmem:[%s5225_s0 + $0x8] sm:$0x3]  ;;  %s3222_s21 = sshll.u32 %s3795_s20, 4  ;;  %s3223_s21 = int_to_ptr.vmem [resolvable:$true] %s3222_s21 }
  0x19   :  { %v3880_v10 = vld [vmem:[%s5225_s0] sm:$0xff]  ;;  %3243 = vmatpush.msk.msra.mxu1 %vm156_vm0, %v146_v7  ;;  %v3887_v12 = vld [vmem:[#allocation2 + $0x198] sm:$0xff]  ;;  %v3923_v21 = vld [vmem:[#allocation2 + $0x1c8] sm:$0xff] }
  0x1a   :  { %321 = vmatpush.msrb.mxu0 %v3860_v3  ;;  %381 = vmatpush.msrb.mxu3 %v3862_v4  ;;  %v3885_v11 = vld [vmem:[#allocation2 + $0x180] sm:$0xff]  ;;  %v3897_v14 = vld [vmem:[#allocation2 + $0x178] sm:$0xff]  ;;  %v3935_v24 = vld [vmem:[#allocation2 + $0x1a8] sm:$0xff] }
  0x1b   :  { %3241 = vmatmul.msk.f32.vlgmr.msra.gmra.mxu0 %vm149_vm1, %v3880_v10  ;;  %3250 = vmatmul.msk.f32.vlgmr.msra.gmra.mxu3 %vm149_vm1, %v3880_v10  ;;  %v3895_v13 = vld [vmem:[#allocation2 + $0x160] sm:$0xff]  ;;  %v3905_v16 = vld [vmem:[#allocation2 + $0x158] sm:$0xff]  ;;  %v3944_v27 = vld [vmem:[#allocation2 + $0x188] sm:$0xff] }
  0x1c   :  { %322 = vmatpush.msrb.mxu0 %v3866_v5  ;;  %382 = vmatpush.msrb.mxu3 %v3868_v6  ;;  %v3903_v15 = vld [vmem:[#allocation2 + $0x140] sm:$0xff]  ;;  %v3918_v20 = vld [vmem:[#allocation2 + $0x138] sm:$0xff]  ;;  %v3953_v30 = vld [vmem:[#allocation2 + $0x168] sm:$0xff] }
  0x1d   :  { %3244 = vmatmul.msk.f32.vlgmr.msra.gmra.mxu1 %vm149_vm1, %v3880_v10  ;;  %v3916_v19 = vld [vmem:[#allocation2 + $0x120] sm:$0xff]  ;;  %v3927_v23 = vld [vmem:[#allocation2 + $0x118] sm:$0xff]  ;;  %v3962_v33 = vld [vmem:[#allocation2 + $0x148] sm:$0xff] }
  0x1e   :  { %323 = vmatpush.msrb.mxu0 %v3873_v8  ;;  %383 = vmatpush.msrb.mxu3 %v3875_v9  ;;  %v3925_v22 = vld [vmem:[#allocation2 + $0x100] sm:$0xff]  ;;  %v3939_v26 = vld [vmem:[#allocation2 + $0xf8] sm:$0xff]  ;;  %v3971_v36 = vld [vmem:[#allocation2 + $0x128] sm:$0xff] }
  0x1f   :  { %341 = vmatpush.msrb.mxu1 %v3907_v17  ;;  %v3937_v25 = vld [vmem:[#allocation2 + $0xe0] sm:$0xff]  ;;  %v3948_v29 = vld [vmem:[#allocation2 + $0xd8] sm:$0xff]  ;;  %v3980_v39 = vld [vmem:[#allocation2 + $0x108] sm:$0xff] }
  0x20   :  { %324 = vmatpush.msrb.mxu0 %v3885_v11  ;;  %384 = vmatpush.msrb.mxu3 %v3887_v12  ;;  %v3946_v28 = vld [vmem:[#allocation2 + $0xc0] sm:$0xff]  ;;  %v3957_v32 = vld [vmem:[#allocation2 + $0xb8] sm:$0xff]  ;;  %v3989_v42 = vld [vmem:[#allocation2 + $0xe8] sm:$0xff] }
  0x21   :  { %342 = vmatpush.msrb.mxu1 %v3923_v21  ;;  %v3955_v31 = vld [vmem:[#allocation2 + $0xa0] sm:$0xff]  ;;  %v3966_v35 = vld [vmem:[#allocation2 + $0x98] sm:$0xff]  ;;  %v3998_v45 = vld [vmem:[#allocation2 + $0xc8] sm:$0xff] }
  0x22   :  { %325 = vmatpush.msrb.mxu0 %v3895_v13  ;;  %385 = vmatpush.msrb.mxu3 %v3897_v14  ;;  %v3964_v34 = vld [vmem:[#allocation2 + $0x80] sm:$0xff]  ;;  %5357 = vst [vmem:[#allocation16_spill] sm:$0xff] %v3966_v35  ;;  %v3975_v38 = vld [vmem:[#allocation2 + $0x78] sm:$0xff]  ;;  %v4008_v48 = vld [vmem:[#allocation2 + $0xa8] sm:$0xff] }
  0x23   :  { %3242 = vmatmul.msk.f32.gmra.mxu0 %vm149_vm1, %v3914_v18  ;;  %3251 = vmatmul.msk.f32.gmra.mxu3 %vm149_vm1, %v3914_v18  ;;  %5356 = vst [vmem:[#allocation15_spill] sm:$0xff] %v3964_v34  ;;  %v3973_v37 = vld [vmem:[#allocation2 + $0x60] sm:$0xff]  ;;  %v3984_v41 = vld [vmem:[#allocation2 + $0x58] sm:$0xff]  ;;  %v4014_v50 = vld [vmem:[#allocation2 + $0x88] sm:$0xff] }
  0x24   :  { %326 = vmatpush.msrb.mxu0 %v3903_v15  ;;  %386 = vmatpush.msrb.mxu3 %v3905_v16  ;;  %5358 = vst [vmem:[#allocation17_spill] sm:$0xff] %v3973_v37  ;;  %v3982_v40 = vld [vmem:[#allocation2 + $0x40] sm:$0xff]  ;;  %v3993_v44 = vld [vmem:[#allocation2 + $0x38] sm:$0xff]  ;;  %v4020_v51 = vld [vmem:[#allocation2 + $0x68] sm:$0xff] }
  0x25   :  { %343 = vmatpush.msrb.mxu1 %v3935_v24  ;;  %5359 = vst [vmem:[#allocation18_spill] sm:$0xff] %v3975_v38  ;;  %v3991_v43 = vld [vmem:[#allocation2 + $0x20] sm:$0xff]  ;;  %v4002_v47 = vld [vmem:[#allocation2 + $0x18] sm:$0xff]  ;;  %v4025_v52 = vld [vmem:[#allocation2 + $0x48] sm:$0xff] }
  0x26   :  { %327 = vmatpush.msrb.mxu0 %v3916_v19  ;;  %387 = vmatpush.msrb.mxu3 %v3918_v20  ;;  %5360 = vst [vmem:[#allocation19_spill] sm:$0xff] %v3982_v40  ;;  %v4000_v46 = vld [vmem:[#allocation2] sm:$0xff]  ;;  %v4030_v53 = vld [vmem:[#allocation2 + $0x28] sm:$0xff] }
  0x27   :  { %344 = vmatpush.msrb.mxu1 %v3944_v27  ;;  %5361 = vst [vmem:[#allocation20_spill] sm:$0xff] %v3984_v41  ;;  %v4035_v54 = vld [vmem:[#allocation2 + $0x8] sm:$0xff]  ;;  %v4132_v56 = vld [vmem:[%s5226_s1 + $0x1] ss:$2 sm:$0xf] }
  0x28   :  { %328 = vmatpush.msrb.mxu0 %v3925_v22  ;;  %388 = vmatpush.msrb.mxu3 %v3927_v23  ;;  %5362 = vst [vmem:[#allocation21_spill] sm:$0xff] %v3991_v43  ;;  %v136_v58 = vperm.slane %v4132_v56, 0  ;;  %v139_v61 = vperm.slane %v4132_v56, 3 }
  0x29   :  { %345 = vmatpush.msrb.mxu1 %v3953_v30  ;;  %5363 = vst [vmem:[#allocation22_spill] sm:$0xff] %v3993_v44 }
  0x2a   :  { %329 = vmatpush.msrb.mxu0 %v3937_v25  ;;  %389 = vmatpush.msrb.mxu3 %v3939_v26  ;;  %5364 = vst [vmem:[#allocation23_spill] sm:$0xff] %v4000_v46 }
  0x2b   :  { %346 = vmatpush.msrb.mxu1 %v3962_v33  ;;  %5365 = vst [vmem:[#allocation24_spill] sm:$0xff] %v4002_v47 }
  0x2c   :  { %330 = vmatpush.msrb.mxu0 %v3946_v28  ;;  %390 = vmatpush.msrb.mxu3 %v3948_v29  ;;  %5366 = vst [vmem:[#allocation25_spill] sm:$0xff] %v4014_v50 }
  0x2d   :  { %347 = vmatpush.msrb.mxu1 %v3971_v36  ;;  %5367 = vst [vmem:[#allocation26_spill] sm:$0xff] %v4020_v51 }
  0x2e   :  { %331 = vmatpush.msrb.mxu0 %v3955_v31  ;;  %391 = vmatpush.msrb.mxu3 %v3957_v32  ;;  %5368 = vst [vmem:[#allocation27_spill] sm:$0xff] %v4025_v52 }
  0x2f   :  { %348 = vmatpush.msrb.mxu1 %v3980_v39  ;;  %5369 = vst [vmem:[#allocation28_spill] sm:$0xff] %v4030_v53 }
  0x30   :  { %332 = vmatpush.msrb.mxu0 %v3964_v34  ;;  %392 = vmatpush.msrb.mxu3 %v3966_v35  ;;  %5370 = vst [vmem:[#allocation29_spill] sm:$0xff] %v4035_v54 }
  0x31   :  { %349 = vmatpush.msrb.mxu1 %v3989_v42 }
  0x32   :  { %333 = vmatpush.msrb.mxu0 %v3973_v37  ;;  %393 = vmatpush.msrb.mxu3 %v3975_v38 }
  0x33   :  { %350 = vmatpush.msrb.mxu1 %v3998_v45 }
  0x34   :  { %334 = vmatpush.msrb.mxu0 %v3982_v40  ;;  %394 = vmatpush.msrb.mxu3 %v3984_v41 }
  0x35   :  { %351 = vmatpush.msrb.mxu1 %v4008_v48 }
  0x36   :  { %335 = vmatpush.msrb.mxu0 %v3991_v43  ;;  %395 = vmatpush.msrb.mxu3 %v3993_v44 }
  0x37   :  { %3245 = vmatmul.msk.f32.gmra.mxu1 %vm149_vm1, %v3914_v18 }
  0x38   :  { %336 = vmatpush.msrb.mxu0 %v4000_v46  ;;  %396 = vmatpush.msrb.mxu3 %v4002_v47 }
  0x39   :  { %337 = vmatmul.f32.vlgmr.msrb.gmra.mxu0 %v5234_v49  ;;  %397 = vmatmul.f32.vlgmr.msrb.gmra.mxu3 %v5234_v49 }
  0x3a   :  { %517 = vmatpush.msra.mxu0 %v3860_v3  ;;  %577 = vmatpush.msra.mxu3 %v3862_v4 }
  0x3b   :  { %352 = vmatpush.msrb.mxu1 %v4014_v50 }
  0x3c   :  { %518 = vmatpush.msra.mxu0 %v3866_v5  ;;  %578 = vmatpush.msra.mxu3 %v3868_v6 }
  0x3d   :  { %353 = vmatpush.msrb.mxu1 %v4020_v51 }
  0x3e   :  { %519 = vmatpush.msra.mxu0 %v3873_v8  ;;  %579 = vmatpush.msra.mxu3 %v3875_v9 }
  0x3f   :  { %354 = vmatpush.msrb.mxu1 %v4025_v52 }
  0x40   :  { %520 = vmatpush.msra.mxu0 %v3885_v11  ;;  %580 = vmatpush.msra.mxu3 %v3887_v12 }
  0x41   :  { %355 = vmatpush.msrb.mxu1 %v4030_v53 }
  0x42   :  { %521 = vmatpush.msra.mxu0 %v3895_v13  ;;  %581 = vmatpush.msra.mxu3 %v3897_v14 }
  0x43   :  { %356 = vmatpush.msrb.mxu1 %v4035_v54 }
  0x44   :  { %522 = vmatpush.msra.mxu0 %v3903_v15  ;;  %357 = vmatmul.f32.vlgmr.msrb.gmra.mxu1 %v5234_v49 }
  0x45   :  { %582 = vmatpush.msra.mxu3 %v3905_v16  ;;  %537 = vmatpush.msra.mxu1 %v3907_v17 }
  0x46   :  { %523 = vmatpush.msra.mxu0 %v3916_v19 }
  0x47   :  { %583 = vmatpush.msra.mxu3 %v3918_v20  ;;  %538 = vmatpush.msra.mxu1 %v3923_v21 }
  0x48   :  { %524 = vmatpush.msra.mxu0 %v3925_v22 }
  0x49   :  { %584 = vmatpush.msra.mxu3 %v3927_v23  ;;  %539 = vmatpush.msra.mxu1 %v3935_v24 }
  0x4a   :  { %525 = vmatpush.msra.mxu0 %v3937_v25 }
  0x4b   :  { %585 = vmatpush.msra.mxu3 %v3939_v26  ;;  %540 = vmatpush.msra.mxu1 %v3944_v27 }
  0x4c   :  { %526 = vmatpush.msra.mxu0 %v3946_v28 }
  0x4d   :  { %586 = vmatpush.msra.mxu3 %v3948_v29  ;;  %541 = vmatpush.msra.mxu1 %v3953_v30 }
  0x4e   :  { %527 = vmatpush.msra.mxu0 %v3955_v31 }
  0x4f   :  { %587 = vmatpush.msra.mxu3 %v3957_v32  ;;  %542 = vmatpush.msra.mxu1 %v3962_v33 }
  0x50   :  { %528 = vmatpush.msra.mxu0 %v3964_v34 }
  0x51   :  { %588 = vmatpush.msra.mxu3 %v3966_v35  ;;  %543 = vmatpush.msra.mxu1 %v3971_v36 }
  0x52   :  { %529 = vmatpush.msra.mxu0 %v3973_v37 }
  0x53   :  { %589 = vmatpush.msra.mxu3 %v3975_v38  ;;  %544 = vmatpush.msra.mxu1 %v3980_v39 }
  0x54   :  { %530 = vmatpush.msra.mxu0 %v3982_v40 }
  0x55   :  { %590 = vmatpush.msra.mxu3 %v3984_v41  ;;  %545 = vmatpush.msra.mxu1 %v3989_v42 }
  0x56   :  { %531 = vmatpush.msra.mxu0 %v3991_v43 }
  0x57   :  { %591 = vmatpush.msra.mxu3 %v3993_v44  ;;  %546 = vmatpush.msra.mxu1 %v3998_v45 }
  0x58   :  { %532 = vmatpush.msra.mxu0 %v4000_v46 }
  0x59   :  { %592 = vmatpush.msra.mxu3 %v4002_v47  ;;  %547 = vmatpush.msra.mxu1 %v4008_v48 }
  0x5a   :  { %732 = vmatpush.msrb.mxu0 %v3860_v3 }
  0x5b   :  { %792 = vmatpush.msrb.mxu3 %v3862_v4  ;;  %548 = vmatpush.msra.mxu1 %v4014_v50 }
  0x5c   :  { %733 = vmatpush.msrb.mxu0 %v3866_v5 }
  0x5d   :  { %793 = vmatpush.msrb.mxu3 %v3868_v6  ;;  %549 = vmatpush.msra.mxu1 %v4020_v51 }
  0x5e   :  { %734 = vmatpush.msrb.mxu0 %v3873_v8 }
  0x5f   :  { %794 = vmatpush.msrb.mxu3 %v3875_v9  ;;  %550 = vmatpush.msra.mxu1 %v4025_v52 }
  0x60   :  { %735 = vmatpush.msrb.mxu0 %v3885_v11 }
  0x61   :  { %795 = vmatpush.msrb.mxu3 %v3887_v12  ;;  %551 = vmatpush.msra.mxu1 %v4030_v53 }
  0x62   :  { %736 = vmatpush.msrb.mxu0 %v3895_v13 }
  0x63   :  { %796 = vmatpush.msrb.mxu3 %v3897_v14  ;;  %552 = vmatpush.msra.mxu1 %v4035_v54 }
  0x64   :  { %737 = vmatpush.msrb.mxu0 %v3903_v15 }
  0x65   :  { %797 = vmatpush.msrb.mxu3 %v3905_v16  ;;  %752 = vmatpush.msrb.mxu1 %v3907_v17 }
  0x66   :  { %738 = vmatpush.msrb.mxu0 %v3916_v19 }
  0x67   :  { %798 = vmatpush.msrb.mxu3 %v3918_v20  ;;  %753 = vmatpush.msrb.mxu1 %v3923_v21 }
  0x68   :  { %739 = vmatpush.msrb.mxu0 %v3925_v22 }
  0x69   :  { %799 = vmatpush.msrb.mxu3 %v3927_v23  ;;  %754 = vmatpush.msrb.mxu1 %v3935_v24 }
  0x6a   :  { %740 = vmatpush.msrb.mxu0 %v3937_v25 }
  0x6b   :  { %800 = vmatpush.msrb.mxu3 %v3939_v26  ;;  %755 = vmatpush.msrb.mxu1 %v3944_v27 }
  0x6c   :  { %741 = vmatpush.msrb.mxu0 %v3946_v28 }
  0x6d   :  { %801 = vmatpush.msrb.mxu3 %v3948_v29  ;;  %756 = vmatpush.msrb.mxu1 %v3953_v30 }
  0x6e   :  { %742 = vmatpush.msrb.mxu0 %v3955_v31 }
  0x6f   :  { %802 = vmatpush.msrb.mxu3 %v3957_v32  ;;  %757 = vmatpush.msrb.mxu1 %v3962_v33 }
  0x70   :  { %743 = vmatpush.msrb.mxu0 %v3964_v34 }
  0x71   :  { %803 = vmatpush.msrb.mxu3 %v3966_v35  ;;  %758 = vmatpush.msrb.mxu1 %v3971_v36 }
  0x72   :  { %744 = vmatpush.msrb.mxu0 %v3973_v37 }
  0x73   :  { %804 = vmatpush.msrb.mxu3 %v3975_v38  ;;  %759 = vmatpush.msrb.mxu1 %v3980_v39 }
  0x74   :  { %745 = vmatpush.msrb.mxu0 %v3982_v40 }
  0x75   :  { %805 = vmatpush.msrb.mxu3 %v3984_v41  ;;  %760 = vmatpush.msrb.mxu1 %v3989_v42 }
  0x76   :  { %746 = vmatpush.msrb.mxu0 %v3991_v43 }
  0x77   :  { %806 = vmatpush.msrb.mxu3 %v3993_v44  ;;  %761 = vmatpush.msrb.mxu1 %v3998_v45 }
  0x78   :  { %747 = vmatpush.msrb.mxu0 %v4000_v46 }
  0x79   :  { %807 = vmatpush.msrb.mxu3 %v4002_v47  ;;  %762 = vmatpush.msrb.mxu1 %v4008_v48 }
  0x7b   :  { %763 = vmatpush.msrb.mxu1 %v4014_v50 }
  0x7d   :  { %764 = vmatpush.msrb.mxu1 %v4020_v51 }
  0x7f   :  { %765 = vmatpush.msrb.mxu1 %v4025_v52 }
  0x81   :  { %766 = vmatpush.msrb.mxu1 %v4030_v53 }
  0x83   :  { %767 = vmatpush.msrb.mxu1 %v4035_v54 }
  0x98   :  { %v182_v55 = vpop.f32.mrf.mxu0 }
  0x99   :  { %v4140_v1 = vadd.f32 %v182_v55, %v136_v58  ;;  %v137_v55 = vperm.slane %v4132_v56, 1 }
  0x9b   :  { %5373 = vst [vmem:[#allocation32_spill] sm:$0xff] %v4140_v1 }
  0x9e   :  { %v251_v57 = vpop.f32.mrf.mxu3 }
  0x9f   :  { %v4143_v47 = vadd.f32 %v251_v57, %v139_v61 }
  0xa0   :  { %v185_v59 = vpop.f32.mrf.mxu0 }
  0xa1   :  { %v4135_v60 = vadd.f32 %v185_v59, %v136_v58  ;;  %5374 = vst [vmem:[#allocation33_spill] sm:$0xff] %v4143_v47  ;;  %v205_v59 = vpop.f32.mrf.mxu1 }
  0xa3   :  { %5371 = vst [vmem:[#allocation30_spill] sm:$0xff] %v4135_v60 }
  0xa6   :  { %v254_v62 = vpop.f32.mrf.mxu3 }
  0xa7   :  { %v4138_v63 = vadd.f32 %v254_v62, %v139_v61  ;;  %v91_v61 = vlaneseq }
  0xa9   :  { %5372 = vst [vmem:[#allocation31_spill] sm:$0xff] %v4138_v63 }
  0xb4   :  { %v208_v63 = vpop.f32.mrf.mxu1 }
  0xb5   :  { %v4147_v43 = vadd.f32 %v208_v63, %v137_v55 }
  0xb6   :  { %v338_v2 = vpop.f32.mrf.mxu0 }
  0xb7   :  { %v401_v7 = vadd.f32 %v338_v2, %v4140_v1  ;;  %5375 = vst [vmem:[#allocation34_spill] sm:$0xff] %v4147_v43 }
  0xb9   :  { %v3252_v49 = vmul.f32 -1.442695, %v401_v7 }
  0xbb   :  { %3304 = vpow2.f32 %v3252_v49 }
  0xbc   :  { %v398_v54 = vpop.f32.mrf.mxu3 }
  0xbd   :  { %v404_v46 = vadd.f32 %v398_v54, %v4143_v47  ;;  %v4149_v47 = vand.u32 127, %v91_v61 }
  0xbf   :  { %v3255_v44 = vmul.f32 -1.442695, %v404_v46  ;;  %5376 = vst [vmem:[#allocation35_spill] sm:$0xff] %v4149_v47  ;;  %vm93_vm6 = vcmp.lt.s32.totalorder %v4149_v47, 32 }
  0xc1   :  { %v3305_v60 = vpop.eup %3304  ;;  %3306 = vpow2.f32 %v3255_v44 }
  0xc2   :  { %v417_v53 = vadd.f32 1.0, %v3305_v60 }
  0xc4   :  { %3308 = vrcp.f32 %v417_v53  ;;  %vm426_vm3 = vweird.f32 %v417_v53  ;;  %v432_v1 = vand.u32 2147483648, %v417_v53 }
  0xc7   :  { %v3307_v62 = vpop.eup %3306 }
  0xc8   :  { %v420_v58 = vadd.f32 1.0, %v3307_v62  ;;  %v430_v62 = vand.u32 2147483647, %v417_v53 }
  0xca   :  { %v3309_v2 = vpop.eup %3308  ;;  %3310 = vrcp.f32 %v420_v58  ;;  %v477_v41 = vand.u32 2147483648, %v420_v58  ;;  %v475_v63 = vand.u32 2147483647, %v420_v58  ;;  %vm471_vm7 = vweird.f32 %v420_v58 }
  0xcb   :  { %v422_v57 = vmul.f32 %v3309_v2, %v417_v53  ;;  %vm427_vm2 = vweird.f32 %v3309_v2  ;;  %vm431_vm9 = vcmp.eq.f32.partialorder %v430_v62, 8.507059e+37  ;;  %v4161_v62 = vld [vmem:[#allocation2 + $0x1f0] sm:$0xff] }
  0xcc   :  { %vm428_vm5 = vmor %vm426_vm3, %vm427_vm2  ;;  %v478_v61 = vor.u32 1.1754944e-38, %v477_v41  ;;  %vm476_vm10 = vcmp.eq.f32.partialorder %v475_v63, 8.507059e+37  ;;  %v4178_v63 = vld [vmem:[#allocation2 + $0x150] sm:$0xff] }
  0xcd   :  { %v423_v49 = vsub.f32 1.0, %v422_v57 }
  0xcf   :  { %v424_v7 = vmul.f32 %v3309_v2, %v423_v49  ;;  %v433_v49 = vor.u32 1.1754944e-38, %v432_v1 }
  0xd0   :  { %v3311_v54 = vpop.eup %3310 }
  0xd1   :  { %v467_v46 = vmul.f32 %v3311_v54, %v420_v58  ;;  %v425_v44 = vadd.f32 %v3309_v2, %v424_v7  ;;  %vm472_vm4 = vweird.f32 %v3311_v54 }
  0xd2   :  { %vm473_vm8 = vmor %vm471_vm7, %vm472_vm4 }
  0xd3   :  { %v468_v60 = vsub.f32 1.0, %v467_v46  ;;  %v429_v57 = vsel %vm428_vm5, %v3309_v2, %v425_v44  ;;  %v5377_v46 = vmov 0.0   ;;  %v4157_v2 = vadd.f32 %v205_v59, %v137_v55  ;;  %v4172_v59 = vld [vmem:[#allocation2 + $0x190] sm:$0xff] }
  0xd4   :  { %v4153_v40 = vsel %vm93_vm6, 1.0, %v5377_v46  ;;  %v434_v38 = vsel %vm431_vm9, %v433_v49, %v429_v57  ;;  %v147_v44 = vperm.slane %v3856_v0, 2  ;;  %v4175_v0 = vld [vmem:[#allocation2 + $0x170] sm:$0xff] }
  0xd5   :  { %v469_v52 = vmul.f32 %v3311_v54, %v468_v60  ;;  %5378 = vst [vmem:[#allocation36_spill] sm:$0xff] %v4153_v40  ;;  %v4181_v49 = vld [vmem:[#allocation2 + $0x130] sm:$0xff] }
  0xd6   :  { %5379 = vst [vmem:[#allocation37_spill] sm:$0xff] %v4157_v2  ;;  %3246 = vmatpush.msk.msra.mxu2 %vm156_vm0, %v147_v44  ;;  %v4201_v44 = vld [vmem:[#allocation2 + $0x70] sm:$0xff] }
  0xd7   :  { %v470_v43 = vadd.f32 %v3311_v54, %v469_v52  ;;  %v358_v52 = vpop.f32.mrf.mxu1  ;;  %3247 = vmatmul.msk.f32.vlgmr.msra.gmra.mxu2 %vm149_vm1, %v3880_v10  ;;  %5381 = vst [vmem:[#allocation39_spill] sm:$0xff] %v4201_v44 }
  0xd8   :  { %v402_v1 = vadd.f32 %v358_v52, %v4157_v2  ;;  %361 = vmatpush.msrb.mxu2 %v4161_v62 }
  0xd9   :  { %v474_v7 = vsel %vm473_vm8, %v3311_v54, %v470_v43 }
  0xda   :  { %v479_v53 = vsel %vm476_vm10, %v478_v61, %v474_v7  ;;  %v3253_v41 = vmul.f32 -1.442695, %v402_v1  ;;  %v4186_v61 = vld [vmem:[#allocation2 + $0x110] sm:$0xff] }
  0xdb   :  { %v481_v60 = vmul.f32 %v479_v53, %v434_v38  ;;  %v4164_v38 = vld [vmem:[#allocation2 + $0x1d0] sm:$0xff] }
  0xdc   :  { %3312 = vpow2.f32 %v3253_v41  ;;  %362 = vmatpush.msrb.mxu2 %v4164_v38  ;;  %v4192_v1 = vld [vmem:[#allocation2 + $0xd0] sm:$0xff] }
  0xdd   :  { %v482_v51 = vmul.f32 %v4153_v40, %v481_v60  ;;  %v4189_v60 = vld [vmem:[#allocation2 + $0xf0] sm:$0xff] }
  0xde   :  { %v4195_v41 = vld [vmem:[#allocation2 + $0xb0] sm:$0xff] }
  0xdf   :  { %v483_v37 = vsel %vm156_vm0, %v482_v51, 0.0  ;;  %v4167_v51 = vld [vmem:[#allocation2 + $0x1b0] sm:$0xff]  ;;  %3248 = vmatmul.msk.f32.gmra.mxu2 %vm149_vm1, %v3914_v18 }
  0xe0   :  { %484 = vadd.xlane.f32.xlu0 %v483_v37  ;;  %363 = vmatpush.msrb.mxu2 %v4167_v51 }
  0xe2   :  { %v3313_v43 = vpop.eup %3312  ;;  %364 = vmatpush.msrb.mxu2 %v4172_v59 }
  0xe3   :  { %v418_v58 = vadd.f32 1.0, %v3313_v43 }
  0xe4   :  { %365 = vmatpush.msrb.mxu2 %v4175_v0 }
  0xe5   :  { %3314 = vrcp.f32 %v418_v58  ;;  %vm441_vm11 = vweird.f32 %v418_v58  ;;  %v447_v10 = vand.u32 2147483648, %v418_v58  ;;  %v445_v53 = vand.u32 2147483647, %v418_v58 }
  0xe6   :  { %366 = vmatpush.msrb.mxu2 %v4178_v63 }
  0xe7   :  { %v448_v52 = vor.u32 1.1754944e-38, %v447_v10  ;;  %vm446_vm14 = vcmp.eq.f32.partialorder %v445_v53, 8.507059e+37  ;;  %v4207_v10 = vld [vmem:[#allocation2 + $0x30] sm:$0xff] }
  0xe8   :  { %367 = vmatpush.msrb.mxu2 %v4181_v49  ;;  %5383 = vst [vmem:[#allocation41_spill] sm:$0xff] %v4207_v10  ;;  %v4211_v53 = vld [vmem:[#allocation2 + $0x10] sm:$0xff] }
  0xe9   :  { %5384 = vst [vmem:[#allocation42_spill] sm:$0xff] %v4211_v53 }
  0xea   :  { %368 = vmatpush.msrb.mxu2 %v4186_v61 }
  0xeb   :  { %v3315_v54 = vpop.eup %3314 }
  0xec   :  { %v437_v37 = vmul.f32 %v3315_v54, %v418_v58  ;;  %vm442_vm12 = vweird.f32 %v3315_v54  ;;  %369 = vmatpush.msrb.mxu2 %v4189_v60  ;;  %v4198_v58 = vld [vmem:[#allocation2 + $0x90] sm:$0xff] }
  0xed   :  { %vm443_vm13 = vmor %vm441_vm11, %vm442_vm12  ;;  %5380 = vst [vmem:[#allocation38_spill] sm:$0xff] %v4198_v58 }
  0xee   :  { %v438_v55 = vsub.f32 1.0, %v437_v37  ;;  %370 = vmatpush.msrb.mxu2 %v4192_v1 }
  0xf0   :  { %v439_v57 = vmul.f32 %v3315_v54, %v438_v55  ;;  %371 = vmatpush.msrb.mxu2 %v4195_v41 }
  0xf2   :  { %v440_v7 = vadd.f32 %v3315_v54, %v439_v57  ;;  %372 = vmatpush.msrb.mxu2 %v4198_v58  ;;  %v4204_v57 = vld [vmem:[#allocation2 + $0x50] sm:$0xff] }
  0xf3   :  { %5382 = vst [vmem:[#allocation40_spill] sm:$0xff] %v4204_v57 }
  0xf4   :  { %v444_v18 = vsel %vm443_vm13, %v3315_v54, %v440_v7  ;;  %373 = vmatpush.msrb.mxu2 %v4201_v44 }
  0xf5   :  { %v449_v43 = vsel %vm446_vm14, %v448_v52, %v444_v18  ;;  %vm691_vm14 = vcmask 1041409  }
  0xf6   :  { %v486_v37 = vmul.f32 0.0, %v449_v43  ;;  %374 = vmatpush.msrb.mxu2 %v4204_v57  ;;  %v138_v43 = vperm.slane %v4132_v56, 2 }
  0xf8   :  { %375 = vmatpush.msrb.mxu2 %v4207_v10 }
  0xfa   :  { %376 = vmatpush.msrb.mxu2 %v4211_v53 }
  0xfb   :  { %377 = vmatmul.f32.vlgmr.msrb.gmra.mxu2 %v5377_v46 }
  0xfc   :  { %557 = vmatpush.msra.mxu2 %v4161_v62 }
  0xfe   :  { %558 = vmatpush.msra.mxu2 %v4164_v38 }
 0x100   :  { %559 = vmatpush.msra.mxu2 %v4167_v51 }
 0x102   :  { %560 = vmatpush.msra.mxu2 %v4172_v59 }
 0x104   :  { %561 = vmatpush.msra.mxu2 %v4175_v0 }
 0x106   :  { %562 = vmatpush.msra.mxu2 %v4178_v63 }
 0x108   :  { %563 = vmatpush.msra.mxu2 %v4181_v49 }
 0x10a   :  { %564 = vmatpush.msra.mxu2 %v4186_v61 }
 0x10c   :  { %565 = vmatpush.msra.mxu2 %v4189_v60 }
 0x10e   :  { %566 = vmatpush.msra.mxu2 %v4192_v1 }
 0x110   :  { %567 = vmatpush.msra.mxu2 %v4195_v41 }
 0x112   :  { %568 = vmatpush.msra.mxu2 %v4198_v58 }
 0x114   :  { %569 = vmatpush.msra.mxu2 %v4201_v44 }
 0x116   :  { %570 = vmatpush.msra.mxu2 %v4204_v57 }
 0x118   :  { %571 = vmatpush.msra.mxu2 %v4207_v10 }
 0x11a   :  { %572 = vmatpush.msra.mxu2 %v4211_v53 }
 0x11c   :  { %772 = vmatpush.msrb.mxu2 %v4161_v62 }
 0x11e   :  { %773 = vmatpush.msrb.mxu2 %v4164_v38 }
 0x120   :  { %774 = vmatpush.msrb.mxu2 %v4167_v51 }
 0x122   :  { %775 = vmatpush.msrb.mxu2 %v4172_v59 }
 0x124   :  { %776 = vmatpush.msrb.mxu2 %v4175_v0 }
 0x126   :  { %777 = vmatpush.msrb.mxu2 %v4178_v63 }
 0x128   :  { %778 = vmatpush.msrb.mxu2 %v4181_v49 }
 0x12a   :  { %779 = vmatpush.msrb.mxu2 %v4186_v61 }
 0x12c   :  { %780 = vmatpush.msrb.mxu2 %v4189_v60 }
 0x12e   :  { %781 = vmatpush.msrb.mxu2 %v4192_v1 }
 0x130   :  { %782 = vmatpush.msrb.mxu2 %v4195_v41 }
 0x132   :  { %783 = vmatpush.msrb.mxu2 %v4198_v58 }
 0x134   :  { %784 = vmatpush.msrb.mxu2 %v4201_v44 }
 0x136   :  { %785 = vmatpush.msrb.mxu2 %v4204_v57 }
 0x138   :  { %786 = vmatpush.msrb.mxu2 %v4207_v10 }
 0x13a   :  { %787 = vmatpush.msrb.mxu2 %v4211_v53 }
 0x153   :  { %v485_v55 = vpop.xlane.xlu0 %484 }
 0x154   :  { %v487_v54 = vadd.f32 %v486_v37, %v485_v55 }
 0x156   :  { %v488_v7 = vmul.f32 %v4153_v40, %v487_v54 }
 0x158   :  { %v489_v52 = vsel %vm156_vm0, %v488_v7, 0.0 }
 0x159   :  { %490 = vadd.xlane.f32.xlu0 %v489_v52 }
 0x15a   :  { %v228_v18 = vpop.f32.mrf.mxu2 }
 0x15b   :  { %v4254_v57 = vadd.f32 %v228_v18, %v138_v43 }
 0x15d   :  { %5386 = vst [vmem:[#allocation44_spill] sm:$0xff] %v4254_v57 }
 0x162   :  { %v231_v37 = vpop.f32.mrf.mxu2 }
 0x163   :  { %v4250_v55 = vadd.f32 %v231_v37, %v138_v43 }
 0x165   :  { %5385 = vst [vmem:[#allocation43_spill] sm:$0xff] %v4250_v55 }
 0x17e   :  { %v378_v10 = vpop.f32.mrf.mxu2 }
 0x17f   :  { %v403_v53 = vadd.f32 %v378_v10, %v4254_v57 }
 0x181   :  { %v3254_v35 = vmul.f32 -1.442695, %v403_v53 }
 0x183   :  { %3316 = vpow2.f32 %v3254_v35 }
 0x189   :  { %v3317_v37 = vpop.eup %3316 }
 0x1cc   :  { %v491_v7 = vpop.xlane.xlu0 %490 }
 0x1cd   :  { %v492_v52 = vmul.f32 0.03125, %v491_v7  ;;  %v419_v7 = vadd.f32 1.0, %v3317_v37 }
 0x1cf   :  { %v493_v46 = vsub.f32 %v487_v54, %v492_v52  ;;  %vm456_vm2 = vweird.f32 %v419_v7  ;;  %v462_v37 = vand.u32 2147483648, %v419_v7 }
 0x1d1   :  { %v494_v47 = vmul.f32 %v4153_v40, %v493_v46 }
 0x1d3   :  { %v495_v2 = vmul.f32 %v494_v47, %v494_v47 }
 0x1d5   :  { %v496_v44 = vsel %vm156_vm0, %v495_v2, 0.0 }
 0x1d6   :  { %497 = vadd.xlane.f32.xlu1 %v496_v44 }
 0x249   :  { %v498_v56 = vpop.xlane.xlu1 %497 }
 0x24a   :  { %v499_v58 = vmul.f32 0.032258064, %v498_v56 }
 0x24c   :  { %3318 = vrsqrt.f32 %v499_v58  ;;  %vm507_vm15 = vcmp.eq.f32.partialorder %v499_v58, inf  ;;  %v510_v43 = vand.u32 2147483648, %v499_v58  ;;  %vm509_vm1 = vcmp.eq.f32.partialorder %v499_v58, 0.0 }
 0x24d   :  { %3320 = vrcp.f32 %v419_v7 }
 0x252   :  { %v3319_v55 = vpop.eup %3318 }
 0x253   :  { %v501_v54 = vmul.f32 %v3319_v55, %v499_v58  ;;  %v3321_v44 = vpop.eup %3320 }
 0x254   :  { %v452_v50 = vmul.f32 %v3321_v44, %v419_v7  ;;  %vm457_vm3 = vweird.f32 %v3321_v44 }
 0x255   :  { %v502_v52 = vmul.f32 %v3319_v55, %v501_v54  ;;  %vm458_vm4 = vmor %vm456_vm2, %vm457_vm3 }
 0x256   :  { %v453_v56 = vsub.f32 1.0, %v452_v50 }
 0x257   :  { %v503_v46 = vmul.f32 0.5, %v502_v52 }
 0x258   :  { %v454_v57 = vmul.f32 %v3321_v44, %v453_v56 }
 0x259   :  { %v504_v40 = vsub.f32 1.5, %v503_v46 }
 0x25a   :  { %v455_v52 = vadd.f32 %v3321_v44, %v454_v57 }
 0x25b   :  { %v505_v2 = vmul.f32 %v3319_v55, %v504_v40  ;;  %v460_v40 = vand.u32 2147483647, %v419_v7  ;;  %v463_v55 = vor.u32 1.1754944e-38, %v462_v37 }
 0x25c   :  { %v459_v46 = vsel %vm458_vm4, %v3321_v44, %v455_v52 }
 0x25d   :  { %v506_v18 = vmul.f32 %v505_v2, %v499_v58  ;;  %vm461_vm5 = vcmp.eq.f32.partialorder %v460_v40, 8.507059e+37 }
 0x25e   :  { %v464_v2 = vsel %vm461_vm5, %v463_v55, %v459_v46 }
 0x25f   :  { %v508_v10 = vsel %vm507_vm15, %v499_v58, %v506_v18 }
 0x260   :  { %v511_v35 = vsel %vm509_vm1, %v510_v43, %v508_v10 }
 0x261   :  { %v512_v53 = vadd.f32 1e-05, %v511_v35 }
 0x263   :  { %3322 = vrcp.f32 %v512_v53 }
 0x269   :  { %v3323_v34 = vpop.eup %3322 }
 0x26a   :  { %v4257_v54 = vmul.f32 %v3323_v34, %v494_v47 }
 0x26c   :  { %3324 = vtanh.f32 %v4257_v54 }
 0x272   :  { %v3325_v58 = vpop.eup %3324 }
 0x273   :  { %v516_v18 = vmul.f32 %v3325_v58, %v464_v2 }
 0x275   :  { %533 = vmatmul.f32.vlgmr.msra.gmra.mxu0 %v516_v18  ;;  %553 = vmatmul.f32.vlgmr.msra.gmra.mxu1 %v516_v18 }
 0x276   :  { %573 = vmatmul.f32.vlgmr.msra.gmra.mxu2 %v516_v18  ;;  %593 = vmatmul.f32.vlgmr.msra.gmra.mxu3 %v516_v18 }
 0x277   :  { %947 = vmatpush.msra.mxu0 %v3860_v3  ;;  %967 = vmatpush.msra.mxu1 %v3907_v17  ;;  %v5387_v3 = vld [vmem:[#allocation15_spill] sm:$0xff]  ;;  %v5399_v17 = vld [vmem:[#allocation21_spill] sm:$0xff] }
 0x278   :  { %987 = vmatpush.msra.mxu2 %v4161_v62  ;;  %1007 = vmatpush.msra.mxu3 %v3862_v4  ;;  %v5388_v4 = vld [vmem:[#allocation25_spill] sm:$0xff] }
 0x279   :  { %948 = vmatpush.msra.mxu0 %v3866_v5  ;;  %968 = vmatpush.msra.mxu1 %v3923_v21  ;;  %v5389_v5 = vld [vmem:[#allocation38_spill] sm:$0xff] }
 0x27a   :  { %988 = vmatpush.msra.mxu2 %v4164_v38  ;;  %1008 = vmatpush.msra.mxu3 %v3868_v6  ;;  %v5390_v6 = vld [vmem:[#allocation16_spill] sm:$0xff]  ;;  %v5402_v21 = vld [vmem:[#allocation22_spill] sm:$0xff] }
 0x27b   :  { %949 = vmatpush.msra.mxu0 %v3873_v8  ;;  %969 = vmatpush.msra.mxu1 %v3935_v24  ;;  %v5391_v8 = vld [vmem:[#allocation17_spill] sm:$0xff]  ;;  %v5405_v24 = vld [vmem:[#allocation42_spill] sm:$0xff] }
 0x27c   :  { %989 = vmatpush.msra.mxu2 %v4167_v51  ;;  %1009 = vmatpush.msra.mxu3 %v3875_v9  ;;  %v5392_v9 = vld [vmem:[#allocation26_spill] sm:$0xff] }
 0x27d   :  { %950 = vmatpush.msra.mxu0 %v3885_v11  ;;  %970 = vmatpush.msra.mxu1 %v3944_v27  ;;  %v5393_v11 = vld [vmem:[#allocation39_spill] sm:$0xff] }
 0x27e   :  { %990 = vmatpush.msra.mxu2 %v4172_v59  ;;  %1010 = vmatpush.msra.mxu3 %v3887_v12  ;;  %v5394_v12 = vld [vmem:[#allocation18_spill] sm:$0xff] }
 0x27f   :  { %951 = vmatpush.msra.mxu0 %v3895_v13  ;;  %971 = vmatpush.msra.mxu1 %v3953_v30  ;;  %v5395_v13 = vld [vmem:[#allocation19_spill] sm:$0xff] }
 0x280   :  { %991 = vmatpush.msra.mxu2 %v4175_v0  ;;  %1011 = vmatpush.msra.mxu3 %v3897_v14  ;;  %v5396_v14 = vld [vmem:[#allocation27_spill] sm:$0xff] }
 0x281   :  { %952 = vmatpush.msra.mxu0 %v3903_v15  ;;  %972 = vmatpush.msra.mxu1 %v3962_v33  ;;  %v5397_v15 = vld [vmem:[#allocation40_spill] sm:$0xff]  ;;  %v5408_v33 = vld [vmem:[#allocation33_spill] sm:$0xff] }
 0x282   :  { %992 = vmatpush.msra.mxu2 %v4178_v63  ;;  %1012 = vmatpush.msra.mxu3 %v3905_v16  ;;  %v5398_v16 = vld [vmem:[#allocation20_spill] sm:$0xff] }
 0x283   :  { %953 = vmatpush.msra.mxu0 %v3916_v19  ;;  %973 = vmatpush.msra.mxu1 %v3971_v36  ;;  %v5400_v19 = vld [vmem:[#allocation28_spill] sm:$0xff] }
 0x284   :  { %993 = vmatpush.msra.mxu2 %v4181_v49  ;;  %1013 = vmatpush.msra.mxu3 %v3918_v20  ;;  %v5401_v20 = vld [vmem:[#allocation41_spill] sm:$0xff] }
 0x285   :  { %954 = vmatpush.msra.mxu0 %v3925_v22  ;;  %974 = vmatpush.msra.mxu1 %v3980_v39  ;;  %v5403_v22 = vld [vmem:[#allocation23_spill] sm:$0xff] }
 0x286   :  { %994 = vmatpush.msra.mxu2 %v4186_v61  ;;  %1014 = vmatpush.msra.mxu3 %v3927_v23  ;;  %v5404_v23 = vld [vmem:[#allocation29_spill] sm:$0xff] }
 0x287   :  { %955 = vmatpush.msra.mxu0 %v3937_v25  ;;  %975 = vmatpush.msra.mxu1 %v3989_v42  ;;  %v5406_v25 = vld [vmem:[#allocation24_spill] sm:$0xff] }
 0x288   :  { %995 = vmatpush.msra.mxu2 %v4189_v60  ;;  %1015 = vmatpush.msra.mxu3 %v3939_v26 }
 0x289   :  { %956 = vmatpush.msra.mxu0 %v3946_v28  ;;  %976 = vmatpush.msra.mxu1 %v3998_v45  ;;  %v5407_v28 = vld [vmem:[#allocation32_spill] sm:$0xff] }
 0x28a   :  { %996 = vmatpush.msra.mxu2 %v4192_v1  ;;  %1016 = vmatpush.msra.mxu3 %v3948_v29 }
 0x28b   :  { %957 = vmatpush.msra.mxu0 %v3955_v31  ;;  %977 = vmatpush.msra.mxu1 %v4008_v48 }
 0x28c   :  { %997 = vmatpush.msra.mxu2 %v4195_v41  ;;  %1017 = vmatpush.msra.mxu3 %v3957_v32 }
 0x28d   :  { %958 = vmatpush.msra.mxu0 %v5387_v3  ;;  %978 = vmatpush.msra.mxu1 %v5388_v4 }
 0x28e   :  { %998 = vmatpush.msra.mxu2 %v5389_v5  ;;  %1018 = vmatpush.msra.mxu3 %v5390_v6 }
 0x28f   :  { %959 = vmatpush.msra.mxu0 %v5391_v8  ;;  %979 = vmatpush.msra.mxu1 %v5392_v9  ;;  %v5409_v8 = vld [vmem:[#allocation36_spill] sm:$0xff] }
 0x290   :  { %999 = vmatpush.msra.mxu2 %v5393_v11  ;;  %1019 = vmatpush.msra.mxu3 %v5394_v12 }
 0x291   :  { %960 = vmatpush.msra.mxu0 %v5395_v13  ;;  %980 = vmatpush.msra.mxu1 %v5396_v14 }
 0x292   :  { %1000 = vmatpush.msra.mxu2 %v5397_v15  ;;  %1020 = vmatpush.msra.mxu3 %v5398_v16  ;;  %v5410_v16 = vld [vmem:[#allocation37_spill] sm:$0xff] }
 0x293   :  { %961 = vmatpush.msra.mxu0 %v5399_v17  ;;  %981 = vmatpush.msra.mxu1 %v5400_v19 }
 0x294   :  { %1001 = vmatpush.msra.mxu2 %v5401_v20  ;;  %1021 = vmatpush.msra.mxu3 %v5402_v21 }
 0x295   :  { %962 = vmatpush.msra.mxu0 %v5403_v22  ;;  %982 = vmatpush.msra.mxu1 %v5404_v23 }
 0x296   :  { %1002 = vmatpush.msra.mxu2 %v5405_v24  ;;  %1022 = vmatpush.msra.mxu3 %v5406_v25 }
 0x2f2   :  { %v534_v26 = vpop.f32.mrf.mxu0  ;;  %v554_v13 = vpop.f32.mrf.mxu1 }
 0x2f3   :  { %v601_v27 = vrot.slane %v534_v26, 7  ;;  %v602_v14 = vrot.slane %v554_v13, 7 }
 0x2f5   :  { %v609_v29 = vadd.f32 %v601_v27, %v5407_v28  ;;  %v610_v17 = vadd.f32 %v602_v14, %v5410_v16 }
 0x2f7   :  { %v3256_v30 = vmul.f32 -1.442695, %v609_v29  ;;  %v3257_v19 = vmul.f32 -1.442695, %v610_v17 }
 0x2f9   :  { %3326 = vpow2.f32 %v3256_v30  ;;  %v594_v31 = vpop.f32.mrf.mxu3 }
 0x2fa   :  { %v604_v32 = vrot.slane %v594_v31, 7 }
 0x2fc   :  { %v612_v34 = vadd.f32 %v604_v32, %v5408_v33 }
 0x2fe   :  { %v3259_v36 = vmul.f32 -1.442695, %v612_v34 }
 0x2ff   :  { %v3327_v39 = vpop.eup %3326 }
 0x300   :  { %v625_v42 = vadd.f32 1.0, %v3327_v39  ;;  %3328 = vpow2.f32 %v3259_v36  ;;  %v696_v39 = vrot.slane %v4257_v54, 7  ;;  %v5411_v54 = vld [vmem:[#allocation44_spill] sm:$0xff] }
 0x302   :  { %3330 = vrcp.f32 %v625_v42  ;;  %vm634_vm7 = vweird.f32 %v625_v42  ;;  %v640_v53 = vand.u32 2147483648, %v625_v42  ;;  %v638_v37 = vand.u32 2147483647, %v625_v42 }
 0x304   :  { %v641_v58 = vor.u32 1.1754944e-38, %v640_v53  ;;  %vm639_vm12 = vcmp.eq.f32.partialorder %v638_v37, 8.507059e+37  ;;  %v574_v53 = vpop.f32.mrf.mxu2 }
 0x306   :  { %v3329_v45 = vpop.eup %3328 }
 0x307   :  { %v628_v48 = vadd.f32 1.0, %v3329_v45 }
 0x308   :  { %v3331_v47 = vpop.eup %3330 }
 0x309   :  { %v630_v50 = vmul.f32 %v3331_v47, %v625_v42  ;;  %3332 = vrcp.f32 %v628_v48  ;;  %vm635_vm6 = vweird.f32 %v3331_v47  ;;  %v685_v56 = vand.u32 2147483648, %v628_v48 }
 0x30a   :  { %v683_v40 = vand.u32 2147483647, %v628_v48  ;;  %vm636_vm9 = vmor %vm634_vm7, %vm635_vm6  ;;  %vm679_vm10 = vweird.f32 %v628_v48  ;;  %3334 = vpow2.f32 %v3257_v19 }
 0x30b   :  { %v631_v57 = vsub.f32 1.0, %v630_v50  ;;  %v686_v2 = vor.u32 1.1754944e-38, %v685_v56  ;;  %v603_v56 = vrot.slane %v574_v53, 7  ;;  %v4375_v53 = vld [vmem:[#allocation2 + $0x198] sm:$0xff] }
 0x30c   :  { %vm684_vm13 = vcmp.eq.f32.partialorder %v683_v40, 8.507059e+37 }
 0x30d   :  { %v632_v7 = vmul.f32 %v3331_v47, %v631_v57  ;;  %v611_v37 = vadd.f32 %v603_v56, %v5411_v54  ;;  %v4378_v56 = vld [vmem:[#allocation2 + $0x160] sm:$0xff] }
 0x30f   :  { %v3333_v44 = vpop.eup %3332  ;;  %v633_v10 = vadd.f32 %v3331_v47, %v632_v7 }
 0x310   :  { %v675_v43 = vmul.f32 %v3333_v44, %v628_v48  ;;  %vm680_vm8 = vweird.f32 %v3333_v44  ;;  %v3335_v21 = vpop.eup %3334 }
 0x311   :  { %v637_v55 = vsel %vm636_vm9, %v3331_v47, %v633_v10  ;;  %vm681_vm11 = vmor %vm679_vm10, %vm680_vm8  ;;  %v626_v22 = vadd.f32 1.0, %v3335_v21 }
 0x312   :  { %v676_v35 = vsub.f32 1.0, %v675_v43  ;;  %v642_v3 = vsel %vm639_vm12, %v641_v58, %v637_v55 }
 0x313   :  { %3336 = vrcp.f32 %v626_v22  ;;  %v655_v30 = vand.u32 2147483648, %v626_v22  ;;  %vm649_vm1 = vweird.f32 %v626_v22  ;;  %v653_v31 = vand.u32 2147483647, %v626_v22 }
 0x314   :  { %v677_v52 = vmul.f32 %v3333_v44, %v676_v35 }
 0x315   :  { %v656_v34 = vor.u32 1.1754944e-38, %v655_v30  ;;  %vm654_vm3 = vcmp.eq.f32.partialorder %v653_v31, 8.507059e+37 }
 0x316   :  { %v678_v46 = vadd.f32 %v3333_v44, %v677_v52  ;;  %v3258_v52 = vmul.f32 -1.442695, %v611_v37  ;;  %v4385_v37 = vld [vmem:[#allocation2 + $0x178] sm:$0xff] }
 0x318   :  { %v682_v18 = vsel %vm681_vm11, %v3333_v44, %v678_v46  ;;  %3338 = vpow2.f32 %v3258_v52  ;;  %v4388_v52 = vld [vmem:[#allocation2 + $0x140] sm:$0xff] }
 0x319   :  { %v687_v4 = vsel %vm684_vm13, %v686_v2, %v682_v18  ;;  %v3337_v23 = vpop.eup %3336 }
 0x31a   :  { %v689_v6 = vmul.f32 %v687_v4, %v642_v3  ;;  %v645_v25 = vmul.f32 %v3337_v23, %v626_v22  ;;  %vm650_vm15 = vweird.f32 %v3337_v23 }
 0x31b   :  { %vm651_vm2 = vmor %vm649_vm1, %vm650_vm15 }
 0x31c   :  { %v690_v9 = vmul.f32 %v5409_v8, %v689_v6  ;;  %v646_v26 = vsub.f32 1.0, %v645_v25 }
 0x31e   :  { %v692_v12 = vsel %vm691_vm14, %v690_v9, 0.0  ;;  %v647_v27 = vmul.f32 %v3337_v23, %v646_v26  ;;  %v3339_v46 = vpop.eup %3338 }
 0x31f   :  { %693 = vadd.xlane.f32.xlu1 %v692_v12  ;;  %v627_v2 = vadd.f32 1.0, %v3339_v46  ;;  %v4405_v46 = vld [vmem:[#allocation2 + $0x138] sm:$0xff] }
 0x320   :  { %v648_v29 = vadd.f32 %v3337_v23, %v647_v27 }
 0x321   :  { %v670_v30 = vand.u32 2147483648, %v627_v2  ;;  %vm664_vm7 = vweird.f32 %v627_v2  ;;  %v668_v31 = vand.u32 2147483647, %v627_v2 }
 0x322   :  { %v652_v32 = vsel %vm651_vm2, %v3337_v23, %v648_v29 }
 0x323   :  { %v657_v36 = vsel %vm654_vm3, %v656_v34, %v652_v32  ;;  %v671_v34 = vor.u32 1.1754944e-38, %v670_v30  ;;  %vm669_vm9 = vcmp.eq.f32.partialorder %v668_v31, 8.507059e+37 }
 0x324   :  { %v698_v42 = vmul.f32 %v696_v39, %v657_v36 }
 0x392   :  { %v694_v45 = vpop.xlane.xlu1 %693 }
 0x393   :  { %v699_v47 = vadd.f32 %v698_v42, %v694_v45 }
 0x395   :  { %v700_v48 = vmul.f32 %v5409_v8, %v699_v47 }
 0x397   :  { %v701_v50 = vsel %vm691_vm14, %v700_v48, 0.0  ;;  %v4341_v48 = vld [vmem:[#allocation2 + $0x1e8] sm:$0xff] }
 0x398   :  { %702 = vadd.xlane.f32.xlu2 %v701_v50  ;;  %v4345_v50 = vld [vmem:[#allocation2 + $0x1f8] sm:$0xff] }
 0x40b   :  { %v703_v57 = vpop.xlane.xlu2 %702 }
 0x40c   :  { %v704_v7 = vmul.f32 0.03125, %v703_v57  ;;  %v4348_v57 = vld [vmem:[#allocation2 + $0x1c0] sm:$0xff] }
 0x40e   :  { %v705_v44 = vsub.f32 %v699_v47, %v704_v7  ;;  %v4338_v47 = vld [vmem:[#allocation2 + $0x1e0] sm:$0xff]  ;;  %v4351_v7 = vld [vmem:[#allocation2 + $0x1c8] sm:$0xff] }
 0x410   :  { %v706_v43 = vmul.f32 %v5409_v8, %v705_v44  ;;  %v4355_v44 = vld [vmem:[#allocation2 + $0x1d8] sm:$0xff] }
 0x412   :  { %v707_v10 = vmul.f32 %v706_v43, %v706_v43 }
 0x414   :  { %v708_v35 = vsel %vm691_vm14, %v707_v10, 0.0  ;;  %v4365_v10 = vld [vmem:[#allocation2 + $0x1b8] sm:$0xff] }
 0x415   :  { %709 = vadd.xlane.f32.xlu2 %v708_v35  ;;  %v4368_v35 = vld [vmem:[#allocation2 + $0x180] sm:$0xff] }
 0x488   :  { %v710_v40 = vpop.xlane.xlu2 %709 }
 0x489   :  { %v711_v55 = vmul.f32 0.032258064, %v710_v40  ;;  %v4395_v40 = vld [vmem:[#allocation2 + $0x158] sm:$0xff] }
 0x48b   :  { %3340 = vrsqrt.f32 %v711_v55  ;;  %vm719_vm4 = vcmp.eq.f32.partialorder %v711_v55, inf  ;;  %v722_v14 = vand.u32 2147483648, %v711_v55  ;;  %vm721_vm5 = vcmp.eq.f32.partialorder %v711_v55, 0.0 }
 0x48c   :  { %3342 = vrcp.f32 %v627_v2 }
 0x491   :  { %v3341_v58 = vpop.eup %3340 }
 0x492   :  { %v713_v18 = vmul.f32 %v3341_v58, %v711_v55  ;;  %v3343_v12 = vpop.eup %3342 }
 0x493   :  { %v660_v17 = vmul.f32 %v3343_v12, %v627_v2  ;;  %vm665_vm6 = vweird.f32 %v3343_v12  ;;  %v4415_v2 = vld [vmem:[#allocation2 + $0x118] sm:$0xff] }
 0x494   :  { %v714_v3 = vmul.f32 %v3341_v58, %v713_v18  ;;  %vm666_vm8 = vmor %vm664_vm7, %vm665_vm6  ;;  %v4418_v18 = vld [vmem:[#allocation2 + $0xe0] sm:$0xff] }
 0x495   :  { %v661_v23 = vsub.f32 1.0, %v660_v17  ;;  %v4458_v17 = vld [vmem:[#allocation2 + $0x60] sm:$0xff] }
 0x496   :  { %v715_v4 = vmul.f32 0.5, %v714_v3  ;;  %v4425_v3 = vld [vmem:[#allocation2 + $0xf8] sm:$0xff]  ;;  %5419 = vst [vmem:[#allocation18_spill] sm:$0xff] %v4458_v17 }
 0x497   :  { %v662_v25 = vmul.f32 %v3343_v12, %v661_v23  ;;  %v4478_v23 = vld [vmem:[#allocation2 + $0x20] sm:$0xff] }
 0x498   :  { %v716_v6 = vsub.f32 1.5, %v715_v4  ;;  %v4428_v4 = vld [vmem:[#allocation2 + $0xc0] sm:$0xff]  ;;  %5425 = vst [vmem:[#allocation28_spill] sm:$0xff] %v4478_v23 }
 0x499   :  { %v663_v29 = vadd.f32 %v3343_v12, %v662_v25  ;;  %v4485_v25 = vld [vmem:[#allocation2 + $0x38] sm:$0xff] }
 0x49a   :  { %v717_v9 = vmul.f32 %v3341_v58, %v716_v6  ;;  %v4408_v58 = vld [vmem:[#allocation2 + $0x100] sm:$0xff]  ;;  %v4435_v6 = vld [vmem:[#allocation2 + $0xd8] sm:$0xff]  ;;  %5427 = vst [vmem:[#allocation22_spill] sm:$0xff] %v4485_v25 }
 0x49b   :  { %v667_v32 = vsel %vm666_vm8, %v3343_v12, %v663_v29  ;;  %5412 = vst [vmem:[#allocation15_spill] sm:$0xff] %v4435_v6  ;;  %v4445_v12 = vld [vmem:[#allocation2 + $0xb8] sm:$0xff] }
 0x49c   :  { %v718_v13 = vmul.f32 %v717_v9, %v711_v55  ;;  %v672_v39 = vsel %vm669_vm9, %v671_v34, %v667_v32  ;;  %v4438_v9 = vld [vmem:[#allocation2 + $0xa0] sm:$0xff]  ;;  %5415 = vst [vmem:[#allocation16_spill] sm:$0xff] %v4445_v12  ;;  %v4495_v29 = vld [vmem:[#allocation2 + $0x18] sm:$0xff] }
 0x49d   :  { %5413 = vst [vmem:[#allocation25_spill] sm:$0xff] %v4438_v9 }
 0x49e   :  { %v720_v19 = vsel %vm719_vm4, %v711_v55, %v718_v13  ;;  %v4398_v55 = vld [vmem:[#allocation2 + $0x120] sm:$0xff]  ;;  %5430 = vst [vmem:[#allocation42_spill] sm:$0xff] %v4495_v29  ;;  %vm906_vm4 = vcmask 1042434  }
 0x49f   :  { %v723_v21 = vsel %vm721_vm5, %v722_v14, %v720_v19  ;;  %v4448_v13 = vld [vmem:[#allocation2 + $0x80] sm:$0xff]  ;;  %v4455_v14 = vld [vmem:[#allocation2 + $0x98] sm:$0xff] }
 0x4a0   :  { %v724_v22 = vadd.f32 1e-05, %v723_v21  ;;  %5416 = vst [vmem:[#allocation17_spill] sm:$0xff] %v4448_v13  ;;  %v4465_v19 = vld [vmem:[#allocation2 + $0x78] sm:$0xff]  ;;  %v4468_v21 = vld [vmem:[#allocation2 + $0x40] sm:$0xff] }
 0x4a1   :  { %5418 = vst [vmem:[#allocation39_spill] sm:$0xff] %v4455_v14 }
 0x4a2   :  { %3344 = vrcp.f32 %v724_v22  ;;  %5421 = vst [vmem:[#allocation27_spill] sm:$0xff] %v4465_v19  ;;  %v4475_v22 = vld [vmem:[#allocation2 + $0x58] sm:$0xff] }
 0x4a3   :  { %5422 = vst [vmem:[#allocation40_spill] sm:$0xff] %v4468_v21 }
 0x4a4   :  { %5424 = vst [vmem:[#allocation21_spill] sm:$0xff] %v4475_v22 }
 0x4a8   :  { %v3345_v26 = vpop.eup %3344 }
 0x4a9   :  { %v4335_v27 = vmul.f32 %v3345_v26, %v706_v43  ;;  %v4358_v43 = vld [vmem:[#allocation2 + $0x1a0] sm:$0xff] }
 0x4aa   :  { %v4488_v26 = vld [vmem:[#allocation2] sm:$0xff] }
 0x4ab   :  { %3346 = vtanh.f32 %v4335_v27  ;;  %5428 = vst [vmem:[#allocation23_spill] sm:$0xff] %v4488_v26 }
 0x4b1   :  { %v3347_v36 = vpop.eup %3346 }
 0x4b2   :  { %v728_v42 = vmul.f32 %v3347_v36, %v672_v39 }
 0x4b4   :  { %v730_v45 = vrot.slane %v728_v42, 1 }
 0x4b6   :  { %748 = vmatmul.f32.vlgmr.msrb.gmra.mxu0 %v730_v45  ;;  %768 = vmatmul.f32.vlgmr.msrb.gmra.mxu1 %v730_v45 }
 0x4b7   :  { %788 = vmatmul.f32.vlgmr.msrb.gmra.mxu2 %v730_v45  ;;  %808 = vmatmul.f32.vlgmr.msrb.gmra.mxu3 %v730_v45 }
 0x4b8   :  { %1162 = vmatpush.msrb.mxu0 %v4338_v47  ;;  %1182 = vmatpush.msrb.mxu1 %v4341_v48 }
 0x4b9   :  { %1202 = vmatpush.msrb.mxu2 %v4161_v62  ;;  %1222 = vmatpush.msrb.mxu3 %v4345_v50  ;;  %v4361_v62 = vld [vmem:[#allocation2 + $0x1a8] sm:$0xff] }
 0x4ba   :  { %1163 = vmatpush.msrb.mxu0 %v4348_v57  ;;  %1183 = vmatpush.msrb.mxu1 %v4351_v7 }
 0x4bb   :  { %1203 = vmatpush.msrb.mxu2 %v4164_v38  ;;  %1223 = vmatpush.msrb.mxu3 %v4355_v44  ;;  %v4371_v38 = vld [vmem:[#allocation2 + $0x188] sm:$0xff] }
 0x4bc   :  { %1164 = vmatpush.msrb.mxu0 %v4358_v43  ;;  %1184 = vmatpush.msrb.mxu1 %v4361_v62 }
 0x4bd   :  { %1204 = vmatpush.msrb.mxu2 %v4167_v51  ;;  %1224 = vmatpush.msrb.mxu3 %v4365_v10  ;;  %v4381_v51 = vld [vmem:[#allocation2 + $0x168] sm:$0xff] }
 0x4be   :  { %1165 = vmatpush.msrb.mxu0 %v4368_v35  ;;  %1185 = vmatpush.msrb.mxu1 %v4371_v38 }
 0x4bf   :  { %1205 = vmatpush.msrb.mxu2 %v4172_v59  ;;  %1225 = vmatpush.msrb.mxu3 %v4375_v53  ;;  %v4391_v59 = vld [vmem:[#allocation2 + $0x148] sm:$0xff] }
 0x4c0   :  { %1166 = vmatpush.msrb.mxu0 %v4378_v56  ;;  %1186 = vmatpush.msrb.mxu1 %v4381_v51 }
 0x4c1   :  { %1206 = vmatpush.msrb.mxu2 %v4175_v0  ;;  %1226 = vmatpush.msrb.mxu3 %v4385_v37  ;;  %v4401_v0 = vld [vmem:[#allocation2 + $0x128] sm:$0xff] }
 0x4c2   :  { %1167 = vmatpush.msrb.mxu0 %v4388_v52  ;;  %1187 = vmatpush.msrb.mxu1 %v4391_v59 }
 0x4c3   :  { %1207 = vmatpush.msrb.mxu2 %v4178_v63  ;;  %1227 = vmatpush.msrb.mxu3 %v4395_v40  ;;  %v4411_v63 = vld [vmem:[#allocation2 + $0x108] sm:$0xff] }
 0x4c4   :  { %1168 = vmatpush.msrb.mxu0 %v4398_v55  ;;  %1188 = vmatpush.msrb.mxu1 %v4401_v0 }
 0x4c5   :  { %1208 = vmatpush.msrb.mxu2 %v4181_v49  ;;  %1228 = vmatpush.msrb.mxu3 %v4405_v46  ;;  %v4421_v49 = vld [vmem:[#allocation2 + $0xe8] sm:$0xff] }
 0x4c6   :  { %1169 = vmatpush.msrb.mxu0 %v4408_v58  ;;  %1189 = vmatpush.msrb.mxu1 %v4411_v63 }
 0x4c7   :  { %1209 = vmatpush.msrb.mxu2 %v4186_v61  ;;  %1229 = vmatpush.msrb.mxu3 %v4415_v2  ;;  %v4431_v61 = vld [vmem:[#allocation2 + $0xc8] sm:$0xff] }
 0x4c8   :  { %1170 = vmatpush.msrb.mxu0 %v4418_v18  ;;  %1190 = vmatpush.msrb.mxu1 %v4421_v49 }
 0x4c9   :  { %1210 = vmatpush.msrb.mxu2 %v4189_v60  ;;  %1230 = vmatpush.msrb.mxu3 %v4425_v3  ;;  %v4441_v60 = vld [vmem:[#allocation2 + $0xa8] sm:$0xff] }
 0x4ca   :  { %1171 = vmatpush.msrb.mxu0 %v4428_v4  ;;  %1191 = vmatpush.msrb.mxu1 %v4431_v61  ;;  %5414 = vst [vmem:[#allocation38_spill] sm:$0xff] %v4441_v60 }
 0x4cb   :  { %1211 = vmatpush.msrb.mxu2 %v4192_v1  ;;  %1231 = vmatpush.msrb.mxu3 %v4435_v6  ;;  %v4451_v1 = vld [vmem:[#allocation2 + $0x88] sm:$0xff] }
 0x4cc   :  { %1172 = vmatpush.msrb.mxu0 %v4438_v9  ;;  %1192 = vmatpush.msrb.mxu1 %v4441_v60  ;;  %5417 = vst [vmem:[#allocation26_spill] sm:$0xff] %v4451_v1 }
 0x4cd   :  { %1212 = vmatpush.msrb.mxu2 %v4195_v41  ;;  %1232 = vmatpush.msrb.mxu3 %v4445_v12  ;;  %v4461_v41 = vld [vmem:[#allocation2 + $0x68] sm:$0xff] }
 0x4ce   :  { %1173 = vmatpush.msrb.mxu0 %v4448_v13  ;;  %1193 = vmatpush.msrb.mxu1 %v4451_v1  ;;  %5420 = vst [vmem:[#allocation19_spill] sm:$0xff] %v4461_v41 }
 0x4cf   :  { %1213 = vmatpush.msrb.mxu2 %v5389_v5  ;;  %1233 = vmatpush.msrb.mxu3 %v4455_v14  ;;  %v4471_v5 = vld [vmem:[#allocation2 + $0x48] sm:$0xff] }
 0x4d0   :  { %1174 = vmatpush.msrb.mxu0 %v4458_v17  ;;  %1194 = vmatpush.msrb.mxu1 %v4461_v41  ;;  %5423 = vst [vmem:[#allocation20_spill] sm:$0xff] %v4471_v5 }
 0x4d1   :  { %1214 = vmatpush.msrb.mxu2 %v5393_v11  ;;  %1234 = vmatpush.msrb.mxu3 %v4465_v19  ;;  %v4481_v11 = vld [vmem:[#allocation2 + $0x28] sm:$0xff] }
 0x4d2   :  { %1175 = vmatpush.msrb.mxu0 %v4468_v21  ;;  %1195 = vmatpush.msrb.mxu1 %v4471_v5  ;;  %5426 = vst [vmem:[#allocation41_spill] sm:$0xff] %v4481_v11 }
 0x4d3   :  { %1215 = vmatpush.msrb.mxu2 %v5397_v15  ;;  %1235 = vmatpush.msrb.mxu3 %v4475_v22  ;;  %v4491_v15 = vld [vmem:[#allocation2 + $0x8] sm:$0xff] }
 0x4d4   :  { %1176 = vmatpush.msrb.mxu0 %v4478_v23  ;;  %1196 = vmatpush.msrb.mxu1 %v4481_v11  ;;  %5429 = vst [vmem:[#allocation29_spill] sm:$0xff] %v4491_v15 }
 0x4d5   :  { %1216 = vmatpush.msrb.mxu2 %v5401_v20  ;;  %1236 = vmatpush.msrb.mxu3 %v4485_v25 }
 0x4d6   :  { %1177 = vmatpush.msrb.mxu0 %v4488_v26  ;;  %1197 = vmatpush.msrb.mxu1 %v4491_v15 }
 0x4d7   :  { %1217 = vmatpush.msrb.mxu2 %v5405_v24  ;;  %1237 = vmatpush.msrb.mxu3 %v4495_v29 }
 0x533   :  { %v749_v30 = vpop.f32.mrf.mxu0 }
 0x534   :  { %v816_v20 = vrot.slane %v749_v30, 6 }
 0x536   :  { %v824_v31 = vadd.f32 %v816_v20, %v5407_v28 }
 0x538   :  { %v3260_v32 = vmul.f32 -1.442695, %v824_v31 }
 0x53a   :  { %3348 = vpow2.f32 %v3260_v32  ;;  %v809_v34 = vpop.f32.mrf.mxu3 }
 0x53b   :  { %v819_v36 = vrot.slane %v809_v34, 6 }
 0x53d   :  { %v827_v39 = vadd.f32 %v819_v36, %v5408_v33 }
 0x53f   :  { %v3263_v42 = vmul.f32 -1.442695, %v827_v39 }
 0x540   :  { %v3349_v45 = vpop.eup %3348 }
 0x541   :  { %v840_v26 = vadd.f32 1.0, %v3349_v45  ;;  %3350 = vpow2.f32 %v3263_v42 }
 0x543   :  { %3352 = vrcp.f32 %v840_v26  ;;  %vm849_vm11 = vweird.f32 %v840_v26  ;;  %v855_v34 = vand.u32 2147483648, %v840_v26  ;;  %v853_v39 = vand.u32 2147483647, %v840_v26 }
 0x545   :  { %vm854_vm2 = vcmp.eq.f32.partialorder %v853_v39, 8.507059e+37 }
 0x547   :  { %v3351_v24 = vpop.eup %3350 }
 0x548   :  { %v843_v25 = vadd.f32 1.0, %v3351_v24  ;;  %v856_v24 = vor.u32 1.1754944e-38, %v855_v34 }
 0x549   :  { %v3353_v15 = vpop.eup %3352 }
 0x54a   :  { %v845_v11 = vmul.f32 %v3353_v15, %v840_v26  ;;  %3354 = vrcp.f32 %v843_v25  ;;  %vm850_vm10 = vweird.f32 %v3353_v15  ;;  %v900_v36 = vand.u32 2147483648, %v843_v25 }
 0x54b   :  { %v898_v42 = vand.u32 2147483647, %v843_v25  ;;  %vm851_vm13 = vmor %vm849_vm11, %vm850_vm10  ;;  %vm894_vm15 = vweird.f32 %v843_v25 }
 0x54c   :  { %v846_v29 = vsub.f32 1.0, %v845_v11  ;;  %v901_v11 = vor.u32 1.1754944e-38, %v900_v36 }
 0x54d   :  { %vm899_vm3 = vcmp.eq.f32.partialorder %v898_v42, 8.507059e+37 }
 0x54e   :  { %v847_v30 = vmul.f32 %v3353_v15, %v846_v29 }
 0x550   :  { %v3355_v23 = vpop.eup %3354  ;;  %v848_v31 = vadd.f32 %v3353_v15, %v847_v30 }
 0x551   :  { %v890_v20 = vmul.f32 %v3355_v23, %v843_v25  ;;  %vm895_vm12 = vweird.f32 %v3355_v23 }
 0x552   :  { %v852_v45 = vsel %vm851_vm13, %v3353_v15, %v848_v31  ;;  %vm896_vm1 = vmor %vm894_vm15, %vm895_vm12 }
 0x553   :  { %v891_v32 = vsub.f32 1.0, %v890_v20  ;;  %v857_v30 = vsel %vm854_vm2, %v856_v24, %v852_v45 }
 0x555   :  { %v892_v33 = vmul.f32 %v3355_v23, %v891_v32  ;;  %v769_v32 = vpop.f32.mrf.mxu1 }
 0x556   :  { %v817_v21 = vrot.slane %v769_v32, 6 }
 0x557   :  { %v893_v28 = vadd.f32 %v3355_v23, %v892_v33 }
 0x558   :  { %v825_v33 = vadd.f32 %v817_v21, %v5410_v16  ;;  %v911_v21 = vrot.slane %v4335_v27, 7 }
 0x559   :  { %v897_v29 = vsel %vm896_vm1, %v3355_v23, %v893_v28 }
 0x55a   :  { %v902_v22 = vsel %vm899_vm3, %v901_v11, %v897_v29  ;;  %v3261_v25 = vmul.f32 -1.442695, %v825_v33 }
 0x55b   :  { %v904_v20 = vmul.f32 %v902_v22, %v857_v30 }
 0x55c   :  { %3356 = vpow2.f32 %v3261_v25 }
 0x55d   :  { %v905_v5 = vmul.f32 %v5409_v8, %v904_v20 }
 0x55f   :  { %v907_v26 = vsel %vm906_vm4, %v905_v5, 0.0 }
 0x560   :  { %908 = vadd.xlane.f32.xlu0 %v907_v26 }
 0x562   :  { %v3357_v15 = vpop.eup %3356 }
 0x563   :  { %v841_v31 = vadd.f32 1.0, %v3357_v15 }
 0x565   :  { %3358 = vrcp.f32 %v841_v31  ;;  %v870_v39 = vand.u32 2147483648, %v841_v31  ;;  %vm864_vm6 = vweird.f32 %v841_v31  ;;  %v868_v42 = vand.u32 2147483647, %v841_v31 }
 0x567   :  { %v871_v45 = vor.u32 1.1754944e-38, %v870_v39  ;;  %vm869_vm8 = vcmp.eq.f32.partialorder %v868_v42, 8.507059e+37 }
 0x56b   :  { %v3359_v28 = vpop.eup %3358 }
 0x56c   :  { %v860_v23 = vmul.f32 %v3359_v28, %v841_v31  ;;  %vm865_vm5 = vweird.f32 %v3359_v28 }
 0x56d   :  { %vm866_vm7 = vmor %vm864_vm6, %vm865_vm5 }
 0x56e   :  { %v861_v34 = vsub.f32 1.0, %v860_v23  ;;  %v789_v23 = vpop.f32.mrf.mxu2 }
 0x570   :  { %v862_v36 = vmul.f32 %v3359_v28, %v861_v34  ;;  %v818_v34 = vrot.slane %v789_v23, 6 }
 0x572   :  { %v863_v22 = vadd.f32 %v3359_v28, %v862_v36  ;;  %v826_v27 = vadd.f32 %v818_v34, %v5411_v54 }
 0x574   :  { %v867_v5 = vsel %vm866_vm7, %v3359_v28, %v863_v22  ;;  %v3262_v36 = vmul.f32 -1.442695, %v826_v27 }
 0x575   :  { %v872_v24 = vsel %vm869_vm8, %v871_v45, %v867_v5 }
 0x576   :  { %v913_v11 = vmul.f32 %v911_v21, %v872_v24  ;;  %3360 = vpow2.f32 %v3262_v36 }
 0x57c   :  { %v3361_v42 = vpop.eup %3360 }
 0x57d   :  { %v842_v45 = vadd.f32 1.0, %v3361_v42 }
 0x57f   :  { %v885_v42 = vand.u32 2147483648, %v842_v45  ;;  %vm879_vm12 = vweird.f32 %v842_v45 }
 0x5d3   :  { %v909_v29 = vpop.xlane.xlu0 %908 }
 0x5d4   :  { %v914_v30 = vadd.f32 %v913_v11, %v909_v29 }
 0x5d6   :  { %v915_v20 = vmul.f32 %v5409_v8, %v914_v30 }
 0x5d8   :  { %v916_v26 = vsel %vm906_vm4, %v915_v20, 0.0 }
 0x5d9   :  { %917 = vadd.xlane.f32.xlu1 %v916_v26 }
 0x64c   :  { %v918_v32 = vpop.xlane.xlu1 %917 }
 0x64d   :  { %v919_v33 = vmul.f32 0.03125, %v918_v32 }
 0x64f   :  { %v920_v25 = vsub.f32 %v914_v30, %v919_v33 }
 0x651   :  { %v921_v15 = vmul.f32 %v5409_v8, %v920_v25 }
 0x653   :  { %v922_v31 = vmul.f32 %v921_v15, %v921_v15 }
 0x655   :  { %v923_v28 = vsel %vm906_vm4, %v922_v31, 0.0 }
 0x656   :  { %924 = vadd.xlane.f32.xlu2 %v923_v28 }
 0x6c9   :  { %v925_v22 = vpop.xlane.xlu2 %924 }
 0x6ca   :  { %v926_v39 = vmul.f32 0.032258064, %v925_v22 }
 0x6cc   :  { %3362 = vrsqrt.f32 %v926_v39  ;;  %vm934_vm9 = vcmp.eq.f32.partialorder %v926_v39, inf  ;;  %v937_v32 = vand.u32 2147483648, %v926_v39  ;;  %vm936_vm10 = vcmp.eq.f32.partialorder %v926_v39, 0.0 }
 0x6cd   :  { %3364 = vrcp.f32 %v842_v45 }
 0x6d2   :  { %v3363_v5 = vpop.eup %3362 }
 0x6d3   :  { %v928_v24 = vmul.f32 %v3363_v5, %v926_v39  ;;  %v3365_v20 = vpop.eup %3364 }
 0x6d4   :  { %v875_v33 = vmul.f32 %v3365_v20, %v842_v45  ;;  %vm880_vm11 = vweird.f32 %v3365_v20 }
 0x6d5   :  { %v929_v21 = vmul.f32 %v3363_v5, %v928_v24  ;;  %vm881_vm13 = vmor %vm879_vm12, %vm880_vm11 }
 0x6d6   :  { %v876_v23 = vsub.f32 1.0, %v875_v33  ;;  %v4544_v33 = vld [vmem:[#allocation2 + $0x150] sm:$0xff] }
 0x6d7   :  { %v930_v11 = vmul.f32 0.5, %v929_v21  ;;  %v886_v21 = vor.u32 1.1754944e-38, %v885_v42  ;;  %v5434_v42 = vld [vmem:[#allocation40_spill] sm:$0xff] }
 0x6d8   :  { %v877_v34 = vmul.f32 %v3365_v20, %v876_v23  ;;  %v4568_v23 = vld [vmem:[#allocation2 + $0xd0] sm:$0xff] }
 0x6d9   :  { %v931_v29 = vsub.f32 1.5, %v930_v11 }
 0x6da   :  { %v878_v22 = vadd.f32 %v3365_v20, %v877_v34  ;;  %v4574_v34 = vld [vmem:[#allocation2 + $0xb0] sm:$0xff] }
 0x6db   :  { %v932_v30 = vmul.f32 %v3363_v5, %v931_v29  ;;  %v883_v5 = vand.u32 2147483647, %v842_v45  ;;  %v4520_v45 = vld [vmem:[#allocation2 + $0x1d0] sm:$0xff]  ;;  %5431 = vst [vmem:[#allocation24_spill] sm:$0xff] %v4574_v34 }
 0x6dc   :  { %v882_v24 = vsel %vm881_vm13, %v3365_v20, %v878_v22  ;;  %v4526_v20 = vld [vmem:[#allocation2 + $0x1b0] sm:$0xff] }
 0x6dd   :  { %v933_v26 = vmul.f32 %v932_v30, %v926_v39  ;;  %vm884_vm15 = vcmp.eq.f32.partialorder %v883_v5, 8.507059e+37  ;;  %v4586_v22 = vld [vmem:[#allocation2 + $0x70] sm:$0xff] }
 0x6de   :  { %v887_v11 = vsel %vm884_vm15, %v886_v21, %v882_v24  ;;  %5433 = vst [vmem:[#allocation37_spill] sm:$0xff] %v4586_v22  ;;  %v5435_v5 = vld [vmem:[#allocation20_spill] sm:$0xff]  ;;  %v5437_v21 = vld [vmem:[#allocation21_spill] sm:$0xff] }
 0x6df   :  { %v935_v25 = vsel %vm934_vm9, %v926_v39, %v933_v26  ;;  %v4532_v26 = vld [vmem:[#allocation2 + $0x190] sm:$0xff]  ;;  %vm1121_vm9 = vcmask 1043459  }
 0x6e0   :  { %v938_v31 = vsel %vm936_vm10, %v937_v32, %v935_v25  ;;  %v4538_v32 = vld [vmem:[#allocation2 + $0x170] sm:$0xff] }
 0x6e1   :  { %v939_v28 = vadd.f32 1e-05, %v938_v31  ;;  %v4550_v25 = vld [vmem:[#allocation2 + $0x130] sm:$0xff] }
 0x6e2   :  { %v4556_v31 = vld [vmem:[#allocation2 + $0x110] sm:$0xff] }
 0x6e3   :  { %3366 = vrcp.f32 %v939_v28  ;;  %v4562_v28 = vld [vmem:[#allocation2 + $0xf0] sm:$0xff] }
 0x6e4   :  { %v4592_v24 = vld [vmem:[#allocation2 + $0x50] sm:$0xff] }
 0x6e5   :  { %5436 = vst [vmem:[#allocation44_spill] sm:$0xff] %v4592_v24 }
 0x6e9   :  { %v3367_v27 = vpop.eup %3366 }
 0x6ea   :  { %v4509_v36 = vmul.f32 %v3367_v27, %v921_v15  ;;  %v4514_v15 = vld [vmem:[#allocation2 + $0x1f0] sm:$0xff] }
 0x6eb   :  { %v4580_v27 = vld [vmem:[#allocation2 + $0x90] sm:$0xff] }
 0x6ec   :  { %3368 = vtanh.f32 %v4509_v36  ;;  %5432 = vst [vmem:[#allocation36_spill] sm:$0xff] %v4580_v27 }
 0x6f2   :  { %v3369_v39 = vpop.eup %3368 }
 0x6f3   :  { %v943_v29 = vmul.f32 %v3369_v39, %v887_v11  ;;  %v5438_v39 = vld [vmem:[#allocation28_spill] sm:$0xff]  ;;  %v5439_v11 = vld [vmem:[#allocation41_spill] sm:$0xff] }
 0x6f5   :  { %v945_v30 = vrot.slane %v943_v29, 2  ;;  %v4598_v29 = vld [vmem:[#allocation2 + $0x30] sm:$0xff] }
 0x6f6   :  { %5440 = vst [vmem:[#allocation45_spill] sm:$0xff] %v4598_v29 }
 0x6f7   :  { %963 = vmatmul.f32.vlgmr.msra.gmra.mxu0 %v945_v30  ;;  %983 = vmatmul.f32.vlgmr.msra.gmra.mxu1 %v945_v30 }
 0x6f8   :  { %1003 = vmatmul.f32.vlgmr.msra.gmra.mxu2 %v945_v30  ;;  %1023 = vmatmul.f32.vlgmr.msra.gmra.mxu3 %v945_v30  ;;  %v5441_v30 = vld [vmem:[#allocation22_spill] sm:$0xff] }
 0x6f9   :  { %1377 = vmatpush.msra.mxu0 %v4338_v47  ;;  %1397 = vmatpush.msra.mxu1 %v4341_v48 }
 0x6fa   :  { %1417 = vmatpush.msra.mxu2 %v4514_v15  ;;  %1437 = vmatpush.msra.mxu3 %v4345_v50 }
 0x6fb   :  { %1378 = vmatpush.msra.mxu0 %v4348_v57  ;;  %1398 = vmatpush.msra.mxu1 %v4351_v7 }
 0x6fc   :  { %1418 = vmatpush.msra.mxu2 %v4520_v45  ;;  %1438 = vmatpush.msra.mxu3 %v4355_v44 }
 0x6fd   :  { %1379 = vmatpush.msra.mxu0 %v4358_v43  ;;  %1399 = vmatpush.msra.mxu1 %v4361_v62 }
 0x6fe   :  { %1419 = vmatpush.msra.mxu2 %v4526_v20  ;;  %1439 = vmatpush.msra.mxu3 %v4365_v10 }
 0x6ff   :  { %1380 = vmatpush.msra.mxu0 %v4368_v35  ;;  %1400 = vmatpush.msra.mxu1 %v4371_v38 }
 0x700   :  { %1420 = vmatpush.msra.mxu2 %v4532_v26  ;;  %1440 = vmatpush.msra.mxu3 %v4375_v53 }
 0x701   :  { %1381 = vmatpush.msra.mxu0 %v4378_v56  ;;  %1401 = vmatpush.msra.mxu1 %v4381_v51 }
 0x702   :  { %1421 = vmatpush.msra.mxu2 %v4538_v32  ;;  %1441 = vmatpush.msra.mxu3 %v4385_v37 }
 0x703   :  { %1382 = vmatpush.msra.mxu0 %v4388_v52  ;;  %1402 = vmatpush.msra.mxu1 %v4391_v59 }
 0x704   :  { %1422 = vmatpush.msra.mxu2 %v4544_v33  ;;  %1442 = vmatpush.msra.mxu3 %v4395_v40 }
 0x705   :  { %1383 = vmatpush.msra.mxu0 %v4398_v55  ;;  %1403 = vmatpush.msra.mxu1 %v4401_v0 }
 0x706   :  { %1423 = vmatpush.msra.mxu2 %v4550_v25  ;;  %1443 = vmatpush.msra.mxu3 %v4405_v46 }
 0x707   :  { %1384 = vmatpush.msra.mxu0 %v4408_v58  ;;  %1404 = vmatpush.msra.mxu1 %v4411_v63 }
 0x708   :  { %1424 = vmatpush.msra.mxu2 %v4556_v31  ;;  %1444 = vmatpush.msra.mxu3 %v4415_v2 }
 0x709   :  { %1385 = vmatpush.msra.mxu0 %v4418_v18  ;;  %1405 = vmatpush.msra.mxu1 %v4421_v49 }
 0x70a   :  { %1425 = vmatpush.msra.mxu2 %v4562_v28  ;;  %1445 = vmatpush.msra.mxu3 %v4425_v3 }
 0x70b   :  { %1386 = vmatpush.msra.mxu0 %v4428_v4  ;;  %1406 = vmatpush.msra.mxu1 %v4431_v61 }
 0x70c   :  { %1426 = vmatpush.msra.mxu2 %v4568_v23  ;;  %1446 = vmatpush.msra.mxu3 %v4435_v6 }
 0x70d   :  { %1387 = vmatpush.msra.mxu0 %v4438_v9  ;;  %1407 = vmatpush.msra.mxu1 %v4441_v60 }
 0x70e   :  { %1427 = vmatpush.msra.mxu2 %v4574_v34  ;;  %1447 = vmatpush.msra.mxu3 %v4445_v12 }
 0x70f   :  { %1388 = vmatpush.msra.mxu0 %v4448_v13  ;;  %1408 = vmatpush.msra.mxu1 %v4451_v1 }
 0x710   :  { %1428 = vmatpush.msra.mxu2 %v4580_v27  ;;  %1448 = vmatpush.msra.mxu3 %v4455_v14  ;;  %v5447_v14 = vld [vmem:[#allocation33_spill] sm:$0xff] }
 0x711   :  { %1389 = vmatpush.msra.mxu0 %v4458_v17  ;;  %1409 = vmatpush.msra.mxu1 %v4461_v41 }
 0x712   :  { %1429 = vmatpush.msra.mxu2 %v4586_v22  ;;  %1449 = vmatpush.msra.mxu3 %v4465_v19  ;;  %v5442_v19 = vld [vmem:[#allocation23_spill] sm:$0xff]  ;;  %v5446_v22 = vld [vmem:[#allocation32_spill] sm:$0xff] }
 0x713   :  { %1390 = vmatpush.msra.mxu0 %v5434_v42  ;;  %1410 = vmatpush.msra.mxu1 %v5435_v5  ;;  %v5443_v42 = vld [vmem:[#allocation29_spill] sm:$0xff] }
 0x714   :  { %1430 = vmatpush.msra.mxu2 %v4592_v24  ;;  %1450 = vmatpush.msra.mxu3 %v5437_v21  ;;  %v4604_v5 = vld [vmem:[#allocation2 + $0x10] sm:$0xff]  ;;  %v5445_v24 = vld [vmem:[#allocation42_spill] sm:$0xff] }
 0x715   :  { %1391 = vmatpush.msra.mxu0 %v5438_v39  ;;  %1411 = vmatpush.msra.mxu1 %v5439_v11  ;;  %5444 = vst [vmem:[#allocation46_spill] sm:$0xff] %v4604_v5 }
 0x716   :  { %1431 = vmatpush.msra.mxu2 %v4598_v29  ;;  %1451 = vmatpush.msra.mxu3 %v5441_v30 }
 0x717   :  { %1392 = vmatpush.msra.mxu0 %v5442_v19  ;;  %1412 = vmatpush.msra.mxu1 %v5443_v42 }
 0x718   :  { %1432 = vmatpush.msra.mxu2 %v4604_v5  ;;  %1452 = vmatpush.msra.mxu3 %v5445_v24 }
 0x774   :  { %v964_v21 = vpop.f32.mrf.mxu0 }
 0x775   :  { %v1031_v39 = vrot.slane %v964_v21, 5 }
 0x777   :  { %v1039_v11 = vadd.f32 %v1031_v39, %v5446_v22 }
 0x779   :  { %v3264_v41 = vmul.f32 -1.442695, %v1039_v11 }
 0x77b   :  { %3370 = vpow2.f32 %v3264_v41  ;;  %v1024_v17 = vpop.f32.mrf.mxu3 }
 0x77c   :  { %v1034_v29 = vrot.slane %v1024_v17, 5 }
 0x77e   :  { %v1042_v30 = vadd.f32 %v1034_v29, %v5447_v14 }
 0x780   :  { %v3267_v27 = vmul.f32 -1.442695, %v1042_v30 }
 0x781   :  { %v3371_v19 = vpop.eup %3370 }
 0x782   :  { %v1055_v1 = vadd.f32 1.0, %v3371_v19  ;;  %3372 = vpow2.f32 %v3267_v27 }
 0x784   :  { %3374 = vrcp.f32 %v1055_v1  ;;  %vm1064_vm2 = vweird.f32 %v1055_v1  ;;  %v1070_v17 = vand.u32 2147483648, %v1055_v1  ;;  %v1068_v30 = vand.u32 2147483647, %v1055_v1 }
 0x786   :  { %vm1069_vm7 = vcmp.eq.f32.partialorder %v1068_v30, 8.507059e+37 }
 0x788   :  { %v3373_v42 = vpop.eup %3372 }
 0x789   :  { %v1058_v5 = vadd.f32 1.0, %v3373_v42  ;;  %v1071_v42 = vor.u32 1.1754944e-38, %v1070_v17 }
 0x78a   :  { %v3375_v13 = vpop.eup %3374 }
 0x78b   :  { %v1060_v12 = vmul.f32 %v3375_v13, %v1055_v1  ;;  %3376 = vrcp.f32 %v1058_v5  ;;  %vm1065_vm1 = vweird.f32 %v3375_v13  ;;  %v1115_v29 = vand.u32 2147483648, %v1058_v5 }
 0x78c   :  { %v1113_v19 = vand.u32 2147483647, %v1058_v5  ;;  %vm1066_vm4 = vmor %vm1064_vm2, %vm1065_vm1  ;;  %vm1109_vm5 = vweird.f32 %v1058_v5 }
 0x78d   :  { %v1061_v24 = vsub.f32 1.0, %v1060_v12  ;;  %v1116_v12 = vor.u32 1.1754944e-38, %v1115_v29 }
 0x78e   :  { %vm1114_vm8 = vcmp.eq.f32.partialorder %v1113_v19, 8.507059e+37 }
 0x78f   :  { %v1062_v21 = vmul.f32 %v3375_v13, %v1061_v24 }
 0x791   :  { %v3377_v34 = vpop.eup %3376  ;;  %v1063_v11 = vadd.f32 %v3375_v13, %v1062_v21 }
 0x792   :  { %v1105_v39 = vmul.f32 %v3377_v34, %v1058_v5  ;;  %vm1110_vm3 = vweird.f32 %v3377_v34 }
 0x793   :  { %v1067_v27 = vsel %vm1066_vm4, %v3375_v13, %v1063_v11  ;;  %vm1111_vm6 = vmor %vm1109_vm5, %vm1110_vm3 }
 0x794   :  { %v1106_v41 = vsub.f32 1.0, %v1105_v39  ;;  %v1072_v21 = vsel %vm1069_vm7, %v1071_v42, %v1067_v27 }
 0x796   :  { %v1107_v14 = vmul.f32 %v3377_v34, %v1106_v41  ;;  %v984_v41 = vpop.f32.mrf.mxu1 }
 0x797   :  { %v1032_v6 = vrot.slane %v984_v41, 5 }
 0x798   :  { %v1108_v22 = vadd.f32 %v3377_v34, %v1107_v14 }
 0x799   :  { %v1040_v13 = vadd.f32 %v1032_v6, %v5410_v16  ;;  %v1126_v6 = vrot.slane %v4509_v36, 7 }
 0x79a   :  { %v1112_v24 = vsel %vm1111_vm6, %v3377_v34, %v1108_v22 }
 0x79b   :  { %v1117_v60 = vsel %vm1114_vm8, %v1116_v12, %v1112_v24  ;;  %v3265_v14 = vmul.f32 -1.442695, %v1040_v13 }
 0x79c   :  { %v1119_v39 = vmul.f32 %v1117_v60, %v1072_v21 }
 0x79d   :  { %3378 = vpow2.f32 %v3265_v14 }
 0x79e   :  { %v1120_v9 = vmul.f32 %v5409_v8, %v1119_v39 }
 0x7a0   :  { %v1122_v1 = vsel %vm1121_vm9, %v1120_v9, 0.0 }
 0x7a1   :  { %1123 = vadd.xlane.f32.xlu0 %v1122_v1 }
 0x7a3   :  { %v3379_v5 = vpop.eup %3378 }
 0x7a4   :  { %v1056_v11 = vadd.f32 1.0, %v3379_v5 }
 0x7a6   :  { %3380 = vrcp.f32 %v1056_v11  ;;  %v1085_v30 = vand.u32 2147483648, %v1056_v11  ;;  %vm1079_vm11 = vweird.f32 %v1056_v11  ;;  %v1083_v19 = vand.u32 2147483647, %v1056_v11 }
 0x7a8   :  { %v1086_v27 = vor.u32 1.1754944e-38, %v1085_v30  ;;  %vm1084_vm13 = vcmp.eq.f32.partialorder %v1083_v19, 8.507059e+37 }
 0x7ac   :  { %v3381_v34 = vpop.eup %3380 }
 0x7ad   :  { %v1075_v22 = vmul.f32 %v3381_v34, %v1056_v11  ;;  %vm1080_vm10 = vweird.f32 %v3381_v34 }
 0x7ae   :  { %vm1081_vm12 = vmor %vm1079_vm11, %vm1080_vm10 }
 0x7af   :  { %v1076_v17 = vsub.f32 1.0, %v1075_v22  ;;  %v1004_v22 = vpop.f32.mrf.mxu2 }
 0x7b1   :  { %v1077_v29 = vmul.f32 %v3381_v34, %v1076_v17  ;;  %v1033_v17 = vrot.slane %v1004_v22, 5 }
 0x7b3   :  { %v1078_v60 = vadd.f32 %v3381_v34, %v1077_v29  ;;  %v1041_v36 = vadd.f32 %v1033_v17, %v5411_v54 }
 0x7b5   :  { %v1082_v9 = vsel %vm1081_vm12, %v3381_v34, %v1078_v60  ;;  %v3266_v29 = vmul.f32 -1.442695, %v1041_v36 }
 0x7b6   :  { %v1087_v42 = vsel %vm1084_vm13, %v1086_v27, %v1082_v9 }
 0x7b7   :  { %v1128_v12 = vmul.f32 %v1126_v6, %v1087_v42  ;;  %3382 = vpow2.f32 %v3266_v29 }
 0x7bd   :  { %v3383_v19 = vpop.eup %3382 }
 0x7be   :  { %v1057_v27 = vadd.f32 1.0, %v3383_v19 }
 0x7c0   :  { %v1100_v19 = vand.u32 2147483648, %v1057_v27  ;;  %vm1094_vm3 = vweird.f32 %v1057_v27 }
 0x814   :  { %v1124_v24 = vpop.xlane.xlu0 %1123 }
 0x815   :  { %v1129_v21 = vadd.f32 %v1128_v12, %v1124_v24 }
 0x817   :  { %v1130_v39 = vmul.f32 %v5409_v8, %v1129_v21 }
 0x819   :  { %v1131_v1 = vsel %vm1121_vm9, %v1130_v39, 0.0 }
 0x81a   :  { %1132 = vadd.xlane.f32.xlu1 %v1131_v1 }
 0x88d   :  { %v1133_v41 = vpop.xlane.xlu1 %1132 }
 0x88e   :  { %v1134_v13 = vmul.f32 0.03125, %v1133_v41 }
 0x890   :  { %v1135_v14 = vsub.f32 %v1129_v21, %v1134_v13 }
 0x892   :  { %v1136_v5 = vmul.f32 %v5409_v8, %v1135_v14 }
 0x894   :  { %v1137_v11 = vmul.f32 %v1136_v5, %v1136_v5 }
 0x896   :  { %v1138_v34 = vsel %vm1121_vm9, %v1137_v11, 0.0 }
 0x897   :  { %1139 = vadd.xlane.f32.xlu2 %v1138_v34 }
 0x90a   :  { %v1140_v60 = vpop.xlane.xlu2 %1139 }
 0x90b   :  { %v1141_v30 = vmul.f32 0.032258064, %v1140_v60 }
 0x90d   :  { %3384 = vrsqrt.f32 %v1141_v30  ;;  %vm1149_vm15 = vcmp.eq.f32.partialorder %v1141_v30, inf  ;;  %v1152_v41 = vand.u32 2147483648, %v1141_v30  ;;  %vm1151_vm1 = vcmp.eq.f32.partialorder %v1141_v30, 0.0 }
 0x90e   :  { %3386 = vrcp.f32 %v1057_v27 }
 0x913   :  { %v3385_v9 = vpop.eup %3384 }
 0x914   :  { %v1143_v42 = vmul.f32 %v3385_v9, %v1141_v30  ;;  %v3387_v39 = vpop.eup %3386 }
 0x915   :  { %v1090_v13 = vmul.f32 %v3387_v39, %v1057_v27  ;;  %vm1095_vm2 = vweird.f32 %v3387_v39 }
 0x916   :  { %v1144_v6 = vmul.f32 %v3385_v9, %v1143_v42  ;;  %vm1096_vm4 = vmor %vm1094_vm3, %vm1095_vm2 }
 0x917   :  { %v1091_v22 = vsub.f32 1.0, %v1090_v13 }
 0x918   :  { %v1145_v12 = vmul.f32 0.5, %v1144_v6  ;;  %v1101_v6 = vor.u32 1.1754944e-38, %v1100_v19 }
 0x919   :  { %v1092_v17 = vmul.f32 %v3387_v39, %v1091_v22 }
 0x91a   :  { %v1146_v24 = vsub.f32 1.5, %v1145_v12 }
 0x91b   :  { %v1093_v60 = vadd.f32 %v3387_v39, %v1092_v17 }
 0x91c   :  { %v1147_v21 = vmul.f32 %v3385_v9, %v1146_v24  ;;  %v1098_v9 = vand.u32 2147483647, %v1057_v27 }
 0x91d   :  { %v1097_v42 = vsel %vm1096_vm4, %v3387_v39, %v1093_v60 }
 0x91e   :  { %v1148_v1 = vmul.f32 %v1147_v21, %v1141_v30  ;;  %vm1099_vm5 = vcmp.eq.f32.partialorder %v1098_v9, 8.507059e+37 }
 0x91f   :  { %v1102_v12 = vsel %vm1099_vm5, %v1101_v6, %v1097_v42 }
 0x920   :  { %v1150_v14 = vsel %vm1149_vm15, %v1141_v30, %v1148_v1  ;;  %v5474_v1 = vld [vmem:[#allocation33_spill] sm:$0xff]  ;;  %vm1336_vm15 = vcmask 1044484  }
 0x921   :  { %v1153_v11 = vsel %vm1151_vm1, %v1152_v41, %v1150_v14 }
 0x922   :  { %v1154_v34 = vadd.f32 1e-05, %v1153_v11 }
 0x924   :  { %3388 = vrcp.f32 %v1154_v34 }
 0x92a   :  { %v3389_v36 = vpop.eup %3388 }
 0x92b   :  { %v4619_v29 = vmul.f32 %v3389_v36, %v1136_v5 }
 0x92d   :  { %3390 = vtanh.f32 %v4619_v29 }
 0x933   :  { %v3391_v30 = vpop.eup %3390 }
 0x934   :  { %v1158_v24 = vmul.f32 %v3391_v30, %v1102_v12 }
 0x936   :  { %v1160_v21 = vrot.slane %v1158_v24, 3 }
 0x938   :  { %1178 = vmatmul.f32.vlgmr.msrb.gmra.mxu0 %v1160_v21  ;;  %1198 = vmatmul.f32.vlgmr.msrb.gmra.mxu1 %v1160_v21 }
 0x939   :  { %1218 = vmatmul.f32.vlgmr.msrb.gmra.mxu2 %v1160_v21  ;;  %1238 = vmatmul.f32.vlgmr.msrb.gmra.mxu3 %v1160_v21 }
 0x93a   :  { %1592 = vmatpush.msrb.mxu0 %v4338_v47  ;;  %1612 = vmatpush.msrb.mxu1 %v4341_v48  ;;  %v5448_v47 = vld [vmem:[#allocation15_spill] sm:$0xff]  ;;  %v5449_v48 = vld [vmem:[#allocation25_spill] sm:$0xff] }
 0x93b   :  { %1632 = vmatpush.msrb.mxu2 %v4514_v15  ;;  %1652 = vmatpush.msrb.mxu3 %v4345_v50  ;;  %v5450_v50 = vld [vmem:[#allocation38_spill] sm:$0xff] }
 0x93c   :  { %1593 = vmatpush.msrb.mxu0 %v4348_v57  ;;  %1613 = vmatpush.msrb.mxu1 %v4351_v7  ;;  %v5451_v57 = vld [vmem:[#allocation24_spill] sm:$0xff] }
 0x93d   :  { %1633 = vmatpush.msrb.mxu2 %v4520_v45  ;;  %1653 = vmatpush.msrb.mxu3 %v4355_v44  ;;  %v5452_v7 = vld [vmem:[#allocation16_spill] sm:$0xff]  ;;  %v5453_v44 = vld [vmem:[#allocation17_spill] sm:$0xff] }
 0x93e   :  { %1594 = vmatpush.msrb.mxu0 %v4358_v43  ;;  %1614 = vmatpush.msrb.mxu1 %v4361_v62  ;;  %v5454_v43 = vld [vmem:[#allocation26_spill] sm:$0xff]  ;;  %v5455_v62 = vld [vmem:[#allocation36_spill] sm:$0xff] }
 0x93f   :  { %1634 = vmatpush.msrb.mxu2 %v4526_v20  ;;  %1654 = vmatpush.msrb.mxu3 %v4365_v10  ;;  %v5456_v10 = vld [vmem:[#allocation39_spill] sm:$0xff] }
 0x940   :  { %1595 = vmatpush.msrb.mxu0 %v4368_v35  ;;  %1615 = vmatpush.msrb.mxu1 %v4371_v38  ;;  %v5457_v35 = vld [vmem:[#allocation18_spill] sm:$0xff]  ;;  %v5458_v38 = vld [vmem:[#allocation19_spill] sm:$0xff] }
 0x941   :  { %1635 = vmatpush.msrb.mxu2 %v4532_v26  ;;  %1655 = vmatpush.msrb.mxu3 %v4375_v53  ;;  %v5459_v53 = vld [vmem:[#allocation37_spill] sm:$0xff] }
 0x942   :  { %1596 = vmatpush.msrb.mxu0 %v4378_v56  ;;  %1616 = vmatpush.msrb.mxu1 %v4381_v51  ;;  %v5460_v56 = vld [vmem:[#allocation27_spill] sm:$0xff]  ;;  %v5461_v51 = vld [vmem:[#allocation40_spill] sm:$0xff] }
 0x943   :  { %1636 = vmatpush.msrb.mxu2 %v4538_v32  ;;  %1656 = vmatpush.msrb.mxu3 %v4385_v37  ;;  %v5462_v37 = vld [vmem:[#allocation20_spill] sm:$0xff] }
 0x944   :  { %1597 = vmatpush.msrb.mxu0 %v4388_v52  ;;  %1617 = vmatpush.msrb.mxu1 %v4391_v59  ;;  %v5463_v52 = vld [vmem:[#allocation44_spill] sm:$0xff]  ;;  %v5464_v59 = vld [vmem:[#allocation21_spill] sm:$0xff] }
 0x945   :  { %1637 = vmatpush.msrb.mxu2 %v4544_v33  ;;  %1657 = vmatpush.msrb.mxu3 %v4395_v40  ;;  %v5465_v40 = vld [vmem:[#allocation28_spill] sm:$0xff] }
 0x946   :  { %1598 = vmatpush.msrb.mxu0 %v4398_v55  ;;  %1618 = vmatpush.msrb.mxu1 %v4401_v0  ;;  %v5466_v55 = vld [vmem:[#allocation41_spill] sm:$0xff] }
 0x947   :  { %1638 = vmatpush.msrb.mxu2 %v4550_v25  ;;  %1658 = vmatpush.msrb.mxu3 %v4405_v46  ;;  %v5467_v0 = vld [vmem:[#allocation45_spill] sm:$0xff]  ;;  %v5468_v46 = vld [vmem:[#allocation22_spill] sm:$0xff] }
 0x948   :  { %1599 = vmatpush.msrb.mxu0 %v4408_v58  ;;  %1619 = vmatpush.msrb.mxu1 %v4411_v63  ;;  %v5469_v58 = vld [vmem:[#allocation23_spill] sm:$0xff]  ;;  %v5470_v63 = vld [vmem:[#allocation29_spill] sm:$0xff] }
 0x949   :  { %1639 = vmatpush.msrb.mxu2 %v4556_v31  ;;  %1659 = vmatpush.msrb.mxu3 %v4415_v2  ;;  %v5471_v2 = vld [vmem:[#allocation46_spill] sm:$0xff] }
 0x94a   :  { %1600 = vmatpush.msrb.mxu0 %v4418_v18  ;;  %1620 = vmatpush.msrb.mxu1 %v4421_v49  ;;  %v5472_v18 = vld [vmem:[#allocation42_spill] sm:$0xff] }
 0x94b   :  { %1640 = vmatpush.msrb.mxu2 %v4562_v28  ;;  %1660 = vmatpush.msrb.mxu3 %v4425_v3 }
 0x94c   :  { %1601 = vmatpush.msrb.mxu0 %v4428_v4  ;;  %1621 = vmatpush.msrb.mxu1 %v4431_v61  ;;  %v5473_v4 = vld [vmem:[#allocation32_spill] sm:$0xff] }
 0x94d   :  { %1641 = vmatpush.msrb.mxu2 %v4568_v23  ;;  %1661 = vmatpush.msrb.mxu3 %v5448_v47 }
 0x94e   :  { %1602 = vmatpush.msrb.mxu0 %v5449_v48  ;;  %1622 = vmatpush.msrb.mxu1 %v5450_v50 }
 0x94f   :  { %1642 = vmatpush.msrb.mxu2 %v5451_v57  ;;  %1662 = vmatpush.msrb.mxu3 %v5452_v7 }
 0x950   :  { %1603 = vmatpush.msrb.mxu0 %v5453_v44  ;;  %1623 = vmatpush.msrb.mxu1 %v5454_v43 }
 0x951   :  { %1643 = vmatpush.msrb.mxu2 %v5455_v62  ;;  %1663 = vmatpush.msrb.mxu3 %v5456_v10 }
 0x952   :  { %1604 = vmatpush.msrb.mxu0 %v5457_v35  ;;  %1624 = vmatpush.msrb.mxu1 %v5458_v38 }
 0x953   :  { %1644 = vmatpush.msrb.mxu2 %v5459_v53  ;;  %1664 = vmatpush.msrb.mxu3 %v5460_v56 }
 0x954   :  { %1605 = vmatpush.msrb.mxu0 %v5461_v51  ;;  %1625 = vmatpush.msrb.mxu1 %v5462_v37 }
 0x955   :  { %1645 = vmatpush.msrb.mxu2 %v5463_v52  ;;  %1665 = vmatpush.msrb.mxu3 %v5464_v59 }
 0x956   :  { %1606 = vmatpush.msrb.mxu0 %v5465_v40  ;;  %1626 = vmatpush.msrb.mxu1 %v5466_v55 }
 0x957   :  { %1646 = vmatpush.msrb.mxu2 %v5467_v0  ;;  %1666 = vmatpush.msrb.mxu3 %v5468_v46 }
 0x958   :  { %1607 = vmatpush.msrb.mxu0 %v5469_v58  ;;  %1627 = vmatpush.msrb.mxu1 %v5470_v63 }
 0x959   :  { %1647 = vmatpush.msrb.mxu2 %v5471_v2  ;;  %1667 = vmatpush.msrb.mxu3 %v5472_v18 }
 0x9b5   :  { %v1179_v49 = vpop.f32.mrf.mxu0  ;;  %v1199_v59 = vpop.f32.mrf.mxu1 }
 0x9b6   :  { %v1246_v3 = vrot.slane %v1179_v49, 4  ;;  %v1247_v40 = vrot.slane %v1199_v59, 4 }
 0x9b8   :  { %v1254_v61 = vadd.f32 %v1246_v3, %v5473_v4  ;;  %v1255_v55 = vadd.f32 %v1247_v40, %v5410_v16 }
 0x9ba   :  { %v3268_v5 = vmul.f32 -1.442695, %v1254_v61  ;;  %v3269_v46 = vmul.f32 -1.442695, %v1255_v55 }
 0x9bc   :  { %3392 = vpow2.f32 %v3268_v5  ;;  %v1239_v27 = vpop.f32.mrf.mxu3 }
 0x9bd   :  { %v1249_v39 = vrot.slane %v1239_v27, 4 }
 0x9bf   :  { %v1257_v41 = vadd.f32 %v1249_v39, %v5474_v1 }
 0x9c1   :  { %v3271_v13 = vmul.f32 -1.442695, %v1257_v41 }
 0x9c2   :  { %v3393_v14 = vpop.eup %3392 }
 0x9c3   :  { %v1270_v11 = vadd.f32 1.0, %v3393_v14  ;;  %3394 = vpow2.f32 %v3271_v13 }
 0x9c5   :  { %3396 = vrcp.f32 %v1270_v11  ;;  %vm1279_vm7 = vweird.f32 %v1270_v11  ;;  %v1285_v12 = vand.u32 2147483648, %v1270_v11  ;;  %v1283_v21 = vand.u32 2147483647, %v1270_v11 }
 0x9c7   :  { %v1286_v44 = vor.u32 1.1754944e-38, %v1285_v12  ;;  %vm1284_vm12 = vcmp.eq.f32.partialorder %v1283_v21, 8.507059e+37 }
 0x9c9   :  { %v3395_v34 = vpop.eup %3394 }
 0x9ca   :  { %v1273_v17 = vadd.f32 1.0, %v3395_v34 }
 0x9cb   :  { %v3397_v22 = vpop.eup %3396 }
 0x9cc   :  { %v1275_v36 = vmul.f32 %v3397_v22, %v1270_v11  ;;  %3398 = vrcp.f32 %v1273_v17  ;;  %vm1280_vm6 = vweird.f32 %v3397_v22  ;;  %v1330_v24 = vand.u32 2147483648, %v1273_v17 }
 0x9cd   :  { %v1328_v48 = vand.u32 2147483647, %v1273_v17  ;;  %vm1281_vm9 = vmor %vm1279_vm7, %vm1280_vm6  ;;  %vm1324_vm10 = vweird.f32 %v1273_v17  ;;  %3400 = vpow2.f32 %v3269_v46  ;;  %v1341_v11 = vrot.slane %v4619_v29, 7 }
 0x9ce   :  { %v1276_v60 = vsub.f32 1.0, %v1275_v36  ;;  %v1331_v43 = vor.u32 1.1754944e-38, %v1330_v24  ;;  %v1219_v24 = vpop.f32.mrf.mxu2 }
 0x9cf   :  { %vm1329_vm13 = vcmp.eq.f32.partialorder %v1328_v48, 8.507059e+37  ;;  %v1248_v21 = vrot.slane %v1219_v24, 4  ;;  %v4737_v24 = vld [vmem:[#allocation2 + $0x198] sm:$0xff] }
 0x9d0   :  { %v1277_v19 = vmul.f32 %v3397_v22, %v1276_v60 }
 0x9d1   :  { %v1256_v29 = vadd.f32 %v1248_v21, %v5411_v54  ;;  %v4740_v21 = vld [vmem:[#allocation2 + $0x160] sm:$0xff] }
 0x9d2   :  { %v3399_v9 = vpop.eup %3398  ;;  %v1278_v6 = vadd.f32 %v3397_v22, %v1277_v19 }
 0x9d3   :  { %v1320_v42 = vmul.f32 %v3399_v9, %v1273_v17  ;;  %vm1325_vm8 = vweird.f32 %v3399_v9  ;;  %v3401_v58 = vpop.eup %3400 }
 0x9d4   :  { %v1282_v50 = vsel %vm1281_vm9, %v3397_v22, %v1278_v6  ;;  %vm1326_vm11 = vmor %vm1324_vm10, %vm1325_vm8  ;;  %v1271_v63 = vadd.f32 1.0, %v3401_v58 }
 0x9d5   :  { %v1321_v30 = vsub.f32 1.0, %v1320_v42  ;;  %v1287_v35 = vsel %vm1284_vm12, %v1286_v44, %v1282_v50 }
 0x9d6   :  { %3402 = vrcp.f32 %v1271_v63  ;;  %v1300_v27 = vand.u32 2147483648, %v1271_v63  ;;  %vm1294_vm2 = vweird.f32 %v1271_v63  ;;  %v1298_v39 = vand.u32 2147483647, %v1271_v63 }
 0x9d7   :  { %v1322_v47 = vmul.f32 %v3399_v9, %v1321_v30 }
 0x9d8   :  { %v1301_v13 = vor.u32 1.1754944e-38, %v1300_v27  ;;  %vm1299_vm4 = vcmp.eq.f32.partialorder %v1298_v39, 8.507059e+37 }
 0x9d9   :  { %v1323_v7 = vadd.f32 %v3399_v9, %v1322_v47  ;;  %v3270_v47 = vmul.f32 -1.442695, %v1256_v29  ;;  %v4747_v29 = vld [vmem:[#allocation2 + $0x178] sm:$0xff] }
 0x9db   :  { %v1327_v10 = vsel %vm1326_vm11, %v3399_v9, %v1323_v7  ;;  %3404 = vpow2.f32 %v3270_v47  ;;  %v4750_v47 = vld [vmem:[#allocation2 + $0x140] sm:$0xff] }
 0x9dc   :  { %v1332_v38 = vsel %vm1329_vm13, %v1331_v43, %v1327_v10  ;;  %v3403_v18 = vpop.eup %3402 }
 0x9dd   :  { %v1334_v56 = vmul.f32 %v1332_v38, %v1287_v35  ;;  %v1290_v49 = vmul.f32 %v3403_v18, %v1271_v63  ;;  %vm1295_vm1 = vweird.f32 %v3403_v18 }
 0x9de   :  { %vm1296_vm3 = vmor %vm1294_vm2, %vm1295_vm1 }
 0x9df   :  { %v1335_v51 = vmul.f32 %v5409_v8, %v1334_v56  ;;  %v1291_v3 = vsub.f32 1.0, %v1290_v49 }
 0x9e1   :  { %v1337_v37 = vsel %vm1336_vm15, %v1335_v51, 0.0  ;;  %v1292_v61 = vmul.f32 %v3403_v18, %v1291_v3  ;;  %v3405_v7 = vpop.eup %3404 }
 0x9e2   :  { %1338 = vadd.xlane.f32.xlu0 %v1337_v37  ;;  %v1272_v43 = vadd.f32 1.0, %v3405_v7  ;;  %v4767_v7 = vld [vmem:[#allocation2 + $0x138] sm:$0xff] }
 0x9e3   :  { %v1293_v5 = vadd.f32 %v3403_v18, %v1292_v61 }
 0x9e4   :  { %v1315_v27 = vand.u32 2147483648, %v1272_v43  ;;  %vm1309_vm8 = vweird.f32 %v1272_v43  ;;  %v1313_v39 = vand.u32 2147483647, %v1272_v43 }
 0x9e5   :  { %v1297_v41 = vsel %vm1296_vm3, %v3403_v18, %v1293_v5 }
 0x9e6   :  { %v1302_v14 = vsel %vm1299_vm4, %v1301_v13, %v1297_v41  ;;  %v1316_v13 = vor.u32 1.1754944e-38, %v1315_v27  ;;  %vm1314_vm10 = vcmp.eq.f32.partialorder %v1313_v39, 8.507059e+37 }
 0x9e7   :  { %v1343_v34 = vmul.f32 %v1341_v11, %v1302_v14 }
 0xa55   :  { %v1339_v22 = vpop.xlane.xlu0 %1338 }
 0xa56   :  { %v1344_v17 = vadd.f32 %v1343_v34, %v1339_v22 }
 0xa58   :  { %v1345_v36 = vmul.f32 %v5409_v8, %v1344_v17 }
 0xa5a   :  { %v1346_v60 = vsel %vm1336_vm15, %v1345_v36, 0.0  ;;  %v4703_v36 = vld [vmem:[#allocation2 + $0x1e8] sm:$0xff] }
 0xa5b   :  { %1347 = vadd.xlane.f32.xlu1 %v1346_v60  ;;  %v4707_v60 = vld [vmem:[#allocation2 + $0x1f8] sm:$0xff] }
 0xace   :  { %v1348_v19 = vpop.xlane.xlu1 %1347 }
 0xacf   :  { %v1349_v9 = vmul.f32 0.03125, %v1348_v19  ;;  %v4710_v19 = vld [vmem:[#allocation2 + $0x1c0] sm:$0xff] }
 0xad1   :  { %v1350_v42 = vsub.f32 %v1344_v17, %v1349_v9  ;;  %v4700_v17 = vld [vmem:[#allocation2 + $0x1e0] sm:$0xff]  ;;  %v4713_v9 = vld [vmem:[#allocation2 + $0x1c8] sm:$0xff] }
 0xad3   :  { %v1351_v6 = vmul.f32 %v5409_v8, %v1350_v42  ;;  %v4717_v42 = vld [vmem:[#allocation2 + $0x1d8] sm:$0xff] }
 0xad5   :  { %v1352_v30 = vmul.f32 %v1351_v6, %v1351_v6 }
 0xad7   :  { %v1353_v12 = vsel %vm1336_vm15, %v1352_v30, 0.0  ;;  %v4727_v30 = vld [vmem:[#allocation2 + $0x1b8] sm:$0xff] }
 0xad8   :  { %1354 = vadd.xlane.f32.xlu2 %v1353_v12  ;;  %v4730_v12 = vld [vmem:[#allocation2 + $0x180] sm:$0xff] }
 0xb4b   :  { %v1355_v48 = vpop.xlane.xlu2 %1354 }
 0xb4c   :  { %v1356_v50 = vmul.f32 0.032258064, %v1355_v48  ;;  %v4757_v48 = vld [vmem:[#allocation2 + $0x158] sm:$0xff] }
 0xb4e   :  { %3406 = vrsqrt.f32 %v1356_v50  ;;  %vm1364_vm5 = vcmp.eq.f32.partialorder %v1356_v50, inf  ;;  %v1367_v40 = vand.u32 2147483648, %v1356_v50  ;;  %vm1366_vm6 = vcmp.eq.f32.partialorder %v1356_v50, 0.0 }
 0xb4f   :  { %3408 = vrcp.f32 %v1272_v43 }
 0xb54   :  { %v3407_v44 = vpop.eup %3406 }
 0xb55   :  { %v1358_v10 = vmul.f32 %v3407_v44, %v1356_v50  ;;  %v3409_v37 = vpop.eup %3408 }
 0xb56   :  { %v1305_v55 = vmul.f32 %v3409_v37, %v1272_v43  ;;  %vm1310_vm7 = vweird.f32 %v3409_v37  ;;  %v4777_v43 = vld [vmem:[#allocation2 + $0x118] sm:$0xff] }
 0xb57   :  { %v1359_v35 = vmul.f32 %v3407_v44, %v1358_v10  ;;  %vm1311_vm9 = vmor %vm1309_vm8, %vm1310_vm7  ;;  %v4780_v10 = vld [vmem:[#allocation2 + $0xe0] sm:$0xff] }
 0xb58   :  { %v1306_v18 = vsub.f32 1.0, %v1305_v55  ;;  %v4820_v55 = vld [vmem:[#allocation2 + $0x60] sm:$0xff] }
 0xb59   :  { %v1360_v38 = vmul.f32 0.5, %v1359_v35  ;;  %v4787_v35 = vld [vmem:[#allocation2 + $0xf8] sm:$0xff]  ;;  %5482 = vst [vmem:[#allocation36_spill] sm:$0xff] %v4820_v55 }
 0xb5a   :  { %v1307_v49 = vmul.f32 %v3409_v37, %v1306_v18  ;;  %v4840_v18 = vld [vmem:[#allocation2 + $0x20] sm:$0xff] }
 0xb5b   :  { %v1361_v56 = vsub.f32 1.5, %v1360_v38  ;;  %v4790_v38 = vld [vmem:[#allocation2 + $0xc0] sm:$0xff]  ;;  %5488 = vst [vmem:[#allocation40_spill] sm:$0xff] %v4840_v18 }
 0xb5c   :  { %v1308_v5 = vadd.f32 %v3409_v37, %v1307_v49  ;;  %v4847_v49 = vld [vmem:[#allocation2 + $0x38] sm:$0xff] }
 0xb5d   :  { %v1362_v51 = vmul.f32 %v3407_v44, %v1361_v56  ;;  %v4770_v44 = vld [vmem:[#allocation2 + $0x100] sm:$0xff]  ;;  %v4797_v56 = vld [vmem:[#allocation2 + $0xd8] sm:$0xff]  ;;  %5490 = vst [vmem:[#allocation44_spill] sm:$0xff] %v4847_v49 }
 0xb5e   :  { %v1312_v41 = vsel %vm1311_vm9, %v3409_v37, %v1308_v5  ;;  %5475 = vst [vmem:[#allocation15_spill] sm:$0xff] %v4797_v56  ;;  %v4807_v37 = vld [vmem:[#allocation2 + $0xb8] sm:$0xff] }
 0xb5f   :  { %v1363_v59 = vmul.f32 %v1362_v51, %v1356_v50  ;;  %v1317_v11 = vsel %vm1314_vm10, %v1316_v13, %v1312_v41  ;;  %v4800_v51 = vld [vmem:[#allocation2 + $0xa0] sm:$0xff]  ;;  %5478 = vst [vmem:[#allocation24_spill] sm:$0xff] %v4807_v37  ;;  %v4857_v5 = vld [vmem:[#allocation2 + $0x18] sm:$0xff] }
 0xb60   :  { %5476 = vst [vmem:[#allocation25_spill] sm:$0xff] %v4800_v51 }
 0xb61   :  { %v1365_v46 = vsel %vm1364_vm5, %v1356_v50, %v1363_v59  ;;  %v4760_v50 = vld [vmem:[#allocation2 + $0x120] sm:$0xff]  ;;  %5493 = vst [vmem:[#allocation41_spill] sm:$0xff] %v4857_v5  ;;  %vm1551_vm5 = vcmask 1045509  }
 0xb62   :  { %v1368_v58 = vsel %vm1366_vm6, %v1367_v40, %v1365_v46  ;;  %v4810_v59 = vld [vmem:[#allocation2 + $0x80] sm:$0xff]  ;;  %v4817_v40 = vld [vmem:[#allocation2 + $0x98] sm:$0xff] }
 0xb63   :  { %v1369_v63 = vadd.f32 1e-05, %v1368_v58  ;;  %5479 = vst [vmem:[#allocation16_spill] sm:$0xff] %v4810_v59  ;;  %v4827_v46 = vld [vmem:[#allocation2 + $0x78] sm:$0xff]  ;;  %v4830_v58 = vld [vmem:[#allocation2 + $0x40] sm:$0xff] }
 0xb64   :  { %5481 = vst [vmem:[#allocation26_spill] sm:$0xff] %v4817_v40 }
 0xb65   :  { %3410 = vrcp.f32 %v1369_v63  ;;  %5484 = vst [vmem:[#allocation18_spill] sm:$0xff] %v4827_v46  ;;  %v4837_v63 = vld [vmem:[#allocation2 + $0x58] sm:$0xff] }
 0xb66   :  { %5485 = vst [vmem:[#allocation19_spill] sm:$0xff] %v4830_v58 }
 0xb67   :  { %5487 = vst [vmem:[#allocation27_spill] sm:$0xff] %v4837_v63 }
 0xb6b   :  { %v3411_v3 = vpop.eup %3410 }
 0xb6c   :  { %v4697_v61 = vmul.f32 %v3411_v3, %v1351_v6  ;;  %v4720_v6 = vld [vmem:[#allocation2 + $0x1a0] sm:$0xff] }
 0xb6d   :  { %v4850_v3 = vld [vmem:[#allocation2] sm:$0xff] }
 0xb6e   :  { %3412 = vtanh.f32 %v4697_v61  ;;  %5491 = vst [vmem:[#allocation21_spill] sm:$0xff] %v4850_v3 }
 0xb74   :  { %v3413_v14 = vpop.eup %3412 }
 0xb75   :  { %v1373_v34 = vmul.f32 %v3413_v14, %v1317_v11 }
 0xb77   :  { %v1375_v22 = vrot.slane %v1373_v34, 4 }
 0xb79   :  { %1393 = vmatmul.f32.vlgmr.msra.gmra.mxu0 %v1375_v22  ;;  %1413 = vmatmul.f32.vlgmr.msra.gmra.mxu1 %v1375_v22 }
 0xb7a   :  { %1433 = vmatmul.f32.vlgmr.msra.gmra.mxu2 %v1375_v22  ;;  %1453 = vmatmul.f32.vlgmr.msra.gmra.mxu3 %v1375_v22 }
 0xb7b   :  { %1807 = vmatpush.msra.mxu0 %v4700_v17  ;;  %1827 = vmatpush.msra.mxu1 %v4703_v36 }
 0xb7c   :  { %1847 = vmatpush.msra.mxu2 %v4514_v15  ;;  %1867 = vmatpush.msra.mxu3 %v4707_v60  ;;  %v4723_v15 = vld [vmem:[#allocation2 + $0x1a8] sm:$0xff] }
 0xb7d   :  { %1808 = vmatpush.msra.mxu0 %v4710_v19  ;;  %1828 = vmatpush.msra.mxu1 %v4713_v9 }
 0xb7e   :  { %1848 = vmatpush.msra.mxu2 %v4520_v45  ;;  %1868 = vmatpush.msra.mxu3 %v4717_v42  ;;  %v4733_v45 = vld [vmem:[#allocation2 + $0x188] sm:$0xff] }
 0xb7f   :  { %1809 = vmatpush.msra.mxu0 %v4720_v6  ;;  %1829 = vmatpush.msra.mxu1 %v4723_v15 }
 0xb80   :  { %1849 = vmatpush.msra.mxu2 %v4526_v20  ;;  %1869 = vmatpush.msra.mxu3 %v4727_v30  ;;  %v4743_v20 = vld [vmem:[#allocation2 + $0x168] sm:$0xff] }
 0xb81   :  { %1810 = vmatpush.msra.mxu0 %v4730_v12  ;;  %1830 = vmatpush.msra.mxu1 %v4733_v45 }
 0xb82   :  { %1850 = vmatpush.msra.mxu2 %v4532_v26  ;;  %1870 = vmatpush.msra.mxu3 %v4737_v24  ;;  %v4753_v26 = vld [vmem:[#allocation2 + $0x148] sm:$0xff] }
 0xb83   :  { %1811 = vmatpush.msra.mxu0 %v4740_v21  ;;  %1831 = vmatpush.msra.mxu1 %v4743_v20 }
 0xb84   :  { %1851 = vmatpush.msra.mxu2 %v4538_v32  ;;  %1871 = vmatpush.msra.mxu3 %v4747_v29  ;;  %v4763_v32 = vld [vmem:[#allocation2 + $0x128] sm:$0xff] }
 0xb85   :  { %1812 = vmatpush.msra.mxu0 %v4750_v47  ;;  %1832 = vmatpush.msra.mxu1 %v4753_v26 }
 0xb86   :  { %1852 = vmatpush.msra.mxu2 %v4544_v33  ;;  %1872 = vmatpush.msra.mxu3 %v4757_v48  ;;  %v4773_v33 = vld [vmem:[#allocation2 + $0x108] sm:$0xff] }
 0xb87   :  { %1813 = vmatpush.msra.mxu0 %v4760_v50  ;;  %1833 = vmatpush.msra.mxu1 %v4763_v32 }
 0xb88   :  { %1853 = vmatpush.msra.mxu2 %v4550_v25  ;;  %1873 = vmatpush.msra.mxu3 %v4767_v7  ;;  %v4783_v25 = vld [vmem:[#allocation2 + $0xe8] sm:$0xff] }
 0xb89   :  { %1814 = vmatpush.msra.mxu0 %v4770_v44  ;;  %1834 = vmatpush.msra.mxu1 %v4773_v33 }
 0xb8a   :  { %1854 = vmatpush.msra.mxu2 %v4556_v31  ;;  %1874 = vmatpush.msra.mxu3 %v4777_v43  ;;  %v4793_v31 = vld [vmem:[#allocation2 + $0xc8] sm:$0xff] }
 0xb8b   :  { %1815 = vmatpush.msra.mxu0 %v4780_v10  ;;  %1835 = vmatpush.msra.mxu1 %v4783_v25 }
 0xb8c   :  { %1855 = vmatpush.msra.mxu2 %v4562_v28  ;;  %1875 = vmatpush.msra.mxu3 %v4787_v35  ;;  %v4803_v28 = vld [vmem:[#allocation2 + $0xa8] sm:$0xff] }
 0xb8d   :  { %1816 = vmatpush.msra.mxu0 %v4790_v38  ;;  %1836 = vmatpush.msra.mxu1 %v4793_v31  ;;  %5477 = vst [vmem:[#allocation38_spill] sm:$0xff] %v4803_v28 }
 0xb8e   :  { %1856 = vmatpush.msra.mxu2 %v4568_v23  ;;  %1876 = vmatpush.msra.mxu3 %v4797_v56  ;;  %v4813_v23 = vld [vmem:[#allocation2 + $0x88] sm:$0xff] }
 0xb8f   :  { %1817 = vmatpush.msra.mxu0 %v4800_v51  ;;  %1837 = vmatpush.msra.mxu1 %v4803_v28  ;;  %5480 = vst [vmem:[#allocation17_spill] sm:$0xff] %v4813_v23 }
 0xb90   :  { %1857 = vmatpush.msra.mxu2 %v5451_v57  ;;  %1877 = vmatpush.msra.mxu3 %v4807_v37  ;;  %v4823_v57 = vld [vmem:[#allocation2 + $0x68] sm:$0xff] }
 0xb91   :  { %1818 = vmatpush.msra.mxu0 %v4810_v59  ;;  %1838 = vmatpush.msra.mxu1 %v4813_v23  ;;  %5483 = vst [vmem:[#allocation39_spill] sm:$0xff] %v4823_v57 }
 0xb92   :  { %1858 = vmatpush.msra.mxu2 %v5455_v62  ;;  %1878 = vmatpush.msra.mxu3 %v4817_v40  ;;  %v4833_v62 = vld [vmem:[#allocation2 + $0x48] sm:$0xff] }
 0xb93   :  { %1819 = vmatpush.msra.mxu0 %v4820_v55  ;;  %1839 = vmatpush.msra.mxu1 %v4823_v57  ;;  %5486 = vst [vmem:[#allocation37_spill] sm:$0xff] %v4833_v62 }
 0xb94   :  { %1859 = vmatpush.msra.mxu2 %v5459_v53  ;;  %1879 = vmatpush.msra.mxu3 %v4827_v46  ;;  %v4843_v53 = vld [vmem:[#allocation2 + $0x28] sm:$0xff] }
 0xb95   :  { %1820 = vmatpush.msra.mxu0 %v4830_v58  ;;  %1840 = vmatpush.msra.mxu1 %v4833_v62  ;;  %5489 = vst [vmem:[#allocation20_spill] sm:$0xff] %v4843_v53 }
 0xb96   :  { %1860 = vmatpush.msra.mxu2 %v5463_v52  ;;  %1880 = vmatpush.msra.mxu3 %v4837_v63  ;;  %v4853_v52 = vld [vmem:[#allocation2 + $0x8] sm:$0xff] }
 0xb97   :  { %1821 = vmatpush.msra.mxu0 %v4840_v18  ;;  %1841 = vmatpush.msra.mxu1 %v4843_v53  ;;  %5492 = vst [vmem:[#allocation28_spill] sm:$0xff] %v4853_v52 }
 0xb98   :  { %1861 = vmatpush.msra.mxu2 %v5467_v0  ;;  %1881 = vmatpush.msra.mxu3 %v4847_v49 }
 0xb99   :  { %1822 = vmatpush.msra.mxu0 %v4850_v3  ;;  %1842 = vmatpush.msra.mxu1 %v4853_v52 }
 0xb9a   :  { %1862 = vmatpush.msra.mxu2 %v5471_v2  ;;  %1882 = vmatpush.msra.mxu3 %v4857_v5 }
 0xbf6   :  { %v1394_v27 = vpop.f32.mrf.mxu0 }
 0xbf7   :  { %v1461_v0 = vrot.slane %v1394_v27, 3 }
 0xbf9   :  { %v1469_v39 = vadd.f32 %v1461_v0, %v5473_v4 }
 0xbfb   :  { %v3272_v41 = vmul.f32 -1.442695, %v1469_v39 }
 0xbfd   :  { %3414 = vpow2.f32 %v3272_v41  ;;  %v1454_v13 = vpop.f32.mrf.mxu3 }
 0xbfe   :  { %v1464_v14 = vrot.slane %v1454_v13, 3 }
 0xc00   :  { %v1472_v11 = vadd.f32 %v1464_v14, %v5474_v1 }
 0xc02   :  { %v3275_v34 = vmul.f32 -1.442695, %v1472_v11 }
 0xc03   :  { %v3415_v22 = vpop.eup %3414 }
 0xc04   :  { %v1485_v3 = vadd.f32 1.0, %v3415_v22  ;;  %3416 = vpow2.f32 %v3275_v34 }
 0xc06   :  { %3418 = vrcp.f32 %v1485_v3  ;;  %vm1494_vm12 = vweird.f32 %v1485_v3  ;;  %v1500_v13 = vand.u32 2147483648, %v1485_v3  ;;  %v1498_v11 = vand.u32 2147483647, %v1485_v3 }
 0xc08   :  { %vm1499_vm3 = vcmp.eq.f32.partialorder %v1498_v11, 8.507059e+37 }
 0xc0a   :  { %v3417_v2 = vpop.eup %3416 }
 0xc0b   :  { %v1488_v49 = vadd.f32 1.0, %v3417_v2  ;;  %v1501_v2 = vor.u32 1.1754944e-38, %v1500_v13 }
 0xc0c   :  { %v3419_v52 = vpop.eup %3418 }
 0xc0d   :  { %v1490_v53 = vmul.f32 %v3419_v52, %v1485_v3  ;;  %3420 = vrcp.f32 %v1488_v49  ;;  %vm1495_vm11 = vweird.f32 %v3419_v52  ;;  %v1545_v14 = vand.u32 2147483648, %v1488_v49 }
 0xc0e   :  { %v1543_v34 = vand.u32 2147483647, %v1488_v49  ;;  %vm1496_vm15 = vmor %vm1494_vm12, %vm1495_vm11  ;;  %vm1539_vm1 = vweird.f32 %v1488_v49 }
 0xc0f   :  { %v1491_v5 = vsub.f32 1.0, %v1490_v53  ;;  %v1546_v53 = vor.u32 1.1754944e-38, %v1545_v14 }
 0xc10   :  { %vm1544_vm4 = vcmp.eq.f32.partialorder %v1543_v34, 8.507059e+37 }
 0xc11   :  { %v1492_v27 = vmul.f32 %v3419_v52, %v1491_v5 }
 0xc13   :  { %v3421_v18 = vpop.eup %3420  ;;  %v1493_v39 = vadd.f32 %v3419_v52, %v1492_v27 }
 0xc14   :  { %v1535_v0 = vmul.f32 %v3421_v18, %v1488_v49  ;;  %vm1540_vm13 = vweird.f32 %v3421_v18 }
 0xc15   :  { %v1497_v22 = vsel %vm1496_vm15, %v3419_v52, %v1493_v39  ;;  %vm1541_vm2 = vmor %vm1539_vm1, %vm1540_vm13 }
 0xc16   :  { %v1536_v41 = vsub.f32 1.0, %v1535_v0  ;;  %v1502_v27 = vsel %vm1499_vm3, %v1501_v2, %v1497_v22 }
 0xc18   :  { %v1537_v1 = vmul.f32 %v3421_v18, %v1536_v41  ;;  %v1414_v41 = vpop.f32.mrf.mxu1 }
 0xc19   :  { %v1462_v58 = vrot.slane %v1414_v41, 3 }
 0xc1a   :  { %v1538_v4 = vadd.f32 %v3421_v18, %v1537_v1 }
 0xc1b   :  { %v1470_v1 = vadd.f32 %v1462_v58, %v5410_v16  ;;  %v1556_v58 = vrot.slane %v4697_v61, 7 }
 0xc1c   :  { %v1542_v5 = vsel %vm1541_vm2, %v3421_v18, %v1538_v4 }
 0xc1d   :  { %v1547_v63 = vsel %vm1544_vm4, %v1546_v53, %v1542_v5  ;;  %v3273_v49 = vmul.f32 -1.442695, %v1470_v1 }
 0xc1e   :  { %v1549_v0 = vmul.f32 %v1547_v63, %v1502_v27 }
 0xc1f   :  { %3422 = vpow2.f32 %v3273_v49 }
 0xc20   :  { %v1550_v62 = vmul.f32 %v5409_v8, %v1549_v0 }
 0xc22   :  { %v1552_v3 = vsel %vm1551_vm5, %v1550_v62, 0.0 }
 0xc23   :  { %1553 = vadd.xlane.f32.xlu0 %v1552_v3 }
 0xc25   :  { %v3423_v52 = vpop.eup %3422 }
 0xc26   :  { %v1486_v39 = vadd.f32 1.0, %v3423_v52 }
 0xc28   :  { %3424 = vrcp.f32 %v1486_v39  ;;  %v1515_v11 = vand.u32 2147483648, %v1486_v39  ;;  %vm1509_vm7 = vweird.f32 %v1486_v39  ;;  %v1513_v34 = vand.u32 2147483647, %v1486_v39 }
 0xc2a   :  { %v1516_v22 = vor.u32 1.1754944e-38, %v1515_v11  ;;  %vm1514_vm9 = vcmp.eq.f32.partialorder %v1513_v34, 8.507059e+37 }
 0xc2e   :  { %v3425_v4 = vpop.eup %3424 }
 0xc2f   :  { %v1505_v18 = vmul.f32 %v3425_v4, %v1486_v39  ;;  %vm1510_vm6 = vweird.f32 %v3425_v4 }
 0xc30   :  { %vm1511_vm8 = vmor %vm1509_vm7, %vm1510_vm6 }
 0xc31   :  { %v1506_v13 = vsub.f32 1.0, %v1505_v18  ;;  %v1434_v18 = vpop.f32.mrf.mxu2 }
 0xc33   :  { %v1507_v14 = vmul.f32 %v3425_v4, %v1506_v13  ;;  %v1463_v13 = vrot.slane %v1434_v18, 3 }
 0xc35   :  { %v1508_v63 = vadd.f32 %v3425_v4, %v1507_v14  ;;  %v1471_v61 = vadd.f32 %v1463_v13, %v5411_v54 }
 0xc37   :  { %v1512_v62 = vsel %vm1511_vm8, %v3425_v4, %v1508_v63  ;;  %v3274_v14 = vmul.f32 -1.442695, %v1471_v61 }
 0xc38   :  { %v1517_v2 = vsel %vm1514_vm9, %v1516_v22, %v1512_v62 }
 0xc39   :  { %v1558_v53 = vmul.f32 %v1556_v58, %v1517_v2  ;;  %3426 = vpow2.f32 %v3274_v14 }
 0xc3f   :  { %v3427_v34 = vpop.eup %3426 }
 0xc40   :  { %v1487_v22 = vadd.f32 1.0, %v3427_v34 }
 0xc42   :  { %v1530_v34 = vand.u32 2147483648, %v1487_v22  ;;  %vm1524_vm13 = vweird.f32 %v1487_v22 }
 0xc96   :  { %v1554_v5 = vpop.xlane.xlu0 %1553 }
 0xc97   :  { %v1559_v27 = vadd.f32 %v1558_v53, %v1554_v5 }
 0xc99   :  { %v1560_v0 = vmul.f32 %v5409_v8, %v1559_v27 }
 0xc9b   :  { %v1561_v3 = vsel %vm1551_vm5, %v1560_v0, 0.0 }
 0xc9c   :  { %1562 = vadd.xlane.f32.xlu1 %v1561_v3 }
 0xd0f   :  { %v1563_v41 = vpop.xlane.xlu1 %1562 }
 0xd10   :  { %v1564_v1 = vmul.f32 0.03125, %v1563_v41 }
 0xd12   :  { %v1565_v49 = vsub.f32 %v1559_v27, %v1564_v1 }
 0xd14   :  { %v1566_v52 = vmul.f32 %v5409_v8, %v1565_v49 }
 0xd16   :  { %v1567_v39 = vmul.f32 %v1566_v52, %v1566_v52 }
 0xd18   :  { %v1568_v4 = vsel %vm1551_vm5, %v1567_v39, 0.0 }
 0xd19   :  { %1569 = vadd.xlane.f32.xlu2 %v1568_v4 }
 0xd8c   :  { %v1570_v63 = vpop.xlane.xlu2 %1569 }
 0xd8d   :  { %v1571_v11 = vmul.f32 0.032258064, %v1570_v63 }
 0xd8f   :  { %3428 = vrsqrt.f32 %v1571_v11  ;;  %vm1579_vm10 = vcmp.eq.f32.partialorder %v1571_v11, inf  ;;  %v1582_v41 = vand.u32 2147483648, %v1571_v11  ;;  %vm1581_vm11 = vcmp.eq.f32.partialorder %v1571_v11, 0.0 }
 0xd90   :  { %3430 = vrcp.f32 %v1487_v22 }
 0xd95   :  { %v3429_v62 = vpop.eup %3428 }
 0xd96   :  { %v1573_v2 = vmul.f32 %v3429_v62, %v1571_v11  ;;  %v3431_v0 = vpop.eup %3430 }
 0xd97   :  { %v1520_v1 = vmul.f32 %v3431_v0, %v1487_v22  ;;  %vm1525_vm12 = vweird.f32 %v3431_v0 }
 0xd98   :  { %v1574_v58 = vmul.f32 %v3429_v62, %v1573_v2  ;;  %vm1526_vm15 = vmor %vm1524_vm13, %vm1525_vm12 }
 0xd99   :  { %v1521_v18 = vsub.f32 1.0, %v1520_v1  ;;  %v4906_v1 = vld [vmem:[#allocation2 + $0x150] sm:$0xff] }
 0xd9a   :  { %v1575_v53 = vmul.f32 0.5, %v1574_v58  ;;  %v1531_v58 = vor.u32 1.1754944e-38, %v1530_v34  ;;  %v5497_v34 = vld [vmem:[#allocation19_spill] sm:$0xff] }
 0xd9b   :  { %v1522_v13 = vmul.f32 %v3431_v0, %v1521_v18  ;;  %v4930_v18 = vld [vmem:[#allocation2 + $0xd0] sm:$0xff] }
 0xd9c   :  { %v1576_v5 = vsub.f32 1.5, %v1575_v53 }
 0xd9d   :  { %v1523_v63 = vadd.f32 %v3431_v0, %v1522_v13  ;;  %v4936_v13 = vld [vmem:[#allocation2 + $0xb0] sm:$0xff] }
 0xd9e   :  { %v1577_v27 = vmul.f32 %v3429_v62, %v1576_v5  ;;  %v1528_v62 = vand.u32 2147483647, %v1487_v22  ;;  %v4882_v22 = vld [vmem:[#allocation2 + $0x1d0] sm:$0xff]  ;;  %5494 = vst [vmem:[#allocation45_spill] sm:$0xff] %v4936_v13 }
 0xd9f   :  { %v1527_v2 = vsel %vm1526_vm15, %v3431_v0, %v1523_v63  ;;  %v4888_v0 = vld [vmem:[#allocation2 + $0x1b0] sm:$0xff] }
 0xda0   :  { %v1578_v3 = vmul.f32 %v1577_v27, %v1571_v11  ;;  %vm1529_vm1 = vcmp.eq.f32.partialorder %v1528_v62, 8.507059e+37  ;;  %v4948_v63 = vld [vmem:[#allocation2 + $0x70] sm:$0xff] }
 0xda1   :  { %v1532_v53 = vsel %vm1529_vm1, %v1531_v58, %v1527_v2  ;;  %5496 = vst [vmem:[#allocation23_spill] sm:$0xff] %v4948_v63  ;;  %v5498_v62 = vld [vmem:[#allocation37_spill] sm:$0xff]  ;;  %v5500_v58 = vld [vmem:[#allocation27_spill] sm:$0xff] }
 0xda2   :  { %v1580_v49 = vsel %vm1579_vm10, %v1571_v11, %v1578_v3  ;;  %v4894_v3 = vld [vmem:[#allocation2 + $0x190] sm:$0xff]  ;;  %vm1766_vm10 = vcmask 1046534  }
 0xda3   :  { %v1583_v39 = vsel %vm1581_vm11, %v1582_v41, %v1580_v49  ;;  %v4900_v41 = vld [vmem:[#allocation2 + $0x170] sm:$0xff] }
 0xda4   :  { %v1584_v4 = vadd.f32 1e-05, %v1583_v39  ;;  %v4912_v49 = vld [vmem:[#allocation2 + $0x130] sm:$0xff] }
 0xda5   :  { %v4918_v39 = vld [vmem:[#allocation2 + $0x110] sm:$0xff] }
 0xda6   :  { %3432 = vrcp.f32 %v1584_v4  ;;  %v4924_v4 = vld [vmem:[#allocation2 + $0xf0] sm:$0xff] }
 0xda7   :  { %v4954_v2 = vld [vmem:[#allocation2 + $0x50] sm:$0xff] }
 0xda8   :  { %5499 = vst [vmem:[#allocation29_spill] sm:$0xff] %v4954_v2 }
 0xdac   :  { %v3433_v61 = vpop.eup %3432 }
 0xdad   :  { %v4871_v14 = vmul.f32 %v3433_v61, %v1566_v52  ;;  %v4876_v52 = vld [vmem:[#allocation2 + $0x1f0] sm:$0xff] }
 0xdae   :  { %v4942_v61 = vld [vmem:[#allocation2 + $0x90] sm:$0xff] }
 0xdaf   :  { %3434 = vtanh.f32 %v4871_v14  ;;  %5495 = vst [vmem:[#allocation22_spill] sm:$0xff] %v4942_v61 }
 0xdb5   :  { %v3435_v11 = vpop.eup %3434 }
 0xdb6   :  { %v1588_v5 = vmul.f32 %v3435_v11, %v1532_v53  ;;  %v5501_v11 = vld [vmem:[#allocation40_spill] sm:$0xff] }
 0xdb7   :  { %v5502_v53 = vld [vmem:[#allocation20_spill] sm:$0xff] }
 0xdb8   :  { %v1590_v27 = vrot.slane %v1588_v5, 5  ;;  %v4960_v5 = vld [vmem:[#allocation2 + $0x30] sm:$0xff] }
 0xdb9   :  { %5503 = vst [vmem:[#allocation46_spill] sm:$0xff] %v4960_v5 }
 0xdba   :  { %1608 = vmatmul.f32.vlgmr.msrb.gmra.mxu0 %v1590_v27  ;;  %1628 = vmatmul.f32.vlgmr.msrb.gmra.mxu1 %v1590_v27 }
 0xdbb   :  { %1648 = vmatmul.f32.vlgmr.msrb.gmra.mxu2 %v1590_v27  ;;  %1668 = vmatmul.f32.vlgmr.msrb.gmra.mxu3 %v1590_v27  ;;  %v5504_v27 = vld [vmem:[#allocation44_spill] sm:$0xff] }
 0xdbc   :  { %2022 = vmatpush.msrb.mxu0 %v4700_v17  ;;  %2042 = vmatpush.msrb.mxu1 %v4703_v36 }
 0xdbd   :  { %2062 = vmatpush.msrb.mxu2 %v4876_v52  ;;  %2082 = vmatpush.msrb.mxu3 %v4707_v60 }
 0xdbe   :  { %2023 = vmatpush.msrb.mxu0 %v4710_v19  ;;  %2043 = vmatpush.msrb.mxu1 %v4713_v9 }
 0xdbf   :  { %2063 = vmatpush.msrb.mxu2 %v4882_v22  ;;  %2083 = vmatpush.msrb.mxu3 %v4717_v42 }
 0xdc0   :  { %2024 = vmatpush.msrb.mxu0 %v4720_v6  ;;  %2044 = vmatpush.msrb.mxu1 %v4723_v15 }
 0xdc1   :  { %2064 = vmatpush.msrb.mxu2 %v4888_v0  ;;  %2084 = vmatpush.msrb.mxu3 %v4727_v30 }
 0xdc2   :  { %2025 = vmatpush.msrb.mxu0 %v4730_v12  ;;  %2045 = vmatpush.msrb.mxu1 %v4733_v45 }
 0xdc3   :  { %2065 = vmatpush.msrb.mxu2 %v4894_v3  ;;  %2085 = vmatpush.msrb.mxu3 %v4737_v24 }
 0xdc4   :  { %2026 = vmatpush.msrb.mxu0 %v4740_v21  ;;  %2046 = vmatpush.msrb.mxu1 %v4743_v20 }
 0xdc5   :  { %2066 = vmatpush.msrb.mxu2 %v4900_v41  ;;  %2086 = vmatpush.msrb.mxu3 %v4747_v29 }
 0xdc6   :  { %2027 = vmatpush.msrb.mxu0 %v4750_v47  ;;  %2047 = vmatpush.msrb.mxu1 %v4753_v26 }
 0xdc7   :  { %2067 = vmatpush.msrb.mxu2 %v4906_v1  ;;  %2087 = vmatpush.msrb.mxu3 %v4757_v48 }
 0xdc8   :  { %2028 = vmatpush.msrb.mxu0 %v4760_v50  ;;  %2048 = vmatpush.msrb.mxu1 %v4763_v32 }
 0xdc9   :  { %2068 = vmatpush.msrb.mxu2 %v4912_v49  ;;  %2088 = vmatpush.msrb.mxu3 %v4767_v7 }
 0xdca   :  { %2029 = vmatpush.msrb.mxu0 %v4770_v44  ;;  %2049 = vmatpush.msrb.mxu1 %v4773_v33 }
 0xdcb   :  { %2069 = vmatpush.msrb.mxu2 %v4918_v39  ;;  %2089 = vmatpush.msrb.mxu3 %v4777_v43 }
 0xdcc   :  { %2030 = vmatpush.msrb.mxu0 %v4780_v10  ;;  %2050 = vmatpush.msrb.mxu1 %v4783_v25 }
 0xdcd   :  { %2070 = vmatpush.msrb.mxu2 %v4924_v4  ;;  %2090 = vmatpush.msrb.mxu3 %v4787_v35 }
 0xdce   :  { %2031 = vmatpush.msrb.mxu0 %v4790_v38  ;;  %2051 = vmatpush.msrb.mxu1 %v4793_v31 }
 0xdcf   :  { %2071 = vmatpush.msrb.mxu2 %v4930_v18  ;;  %2091 = vmatpush.msrb.mxu3 %v4797_v56 }
 0xdd0   :  { %2032 = vmatpush.msrb.mxu0 %v4800_v51  ;;  %2052 = vmatpush.msrb.mxu1 %v4803_v28 }
 0xdd1   :  { %2072 = vmatpush.msrb.mxu2 %v4936_v13  ;;  %2092 = vmatpush.msrb.mxu3 %v4807_v37 }
 0xdd2   :  { %2033 = vmatpush.msrb.mxu0 %v4810_v59  ;;  %2053 = vmatpush.msrb.mxu1 %v4813_v23 }
 0xdd3   :  { %2073 = vmatpush.msrb.mxu2 %v4942_v61  ;;  %2093 = vmatpush.msrb.mxu3 %v4817_v40  ;;  %v5510_v40 = vld [vmem:[#allocation33_spill] sm:$0xff] }
 0xdd4   :  { %2034 = vmatpush.msrb.mxu0 %v4820_v55  ;;  %2054 = vmatpush.msrb.mxu1 %v4823_v57 }
 0xdd5   :  { %2074 = vmatpush.msrb.mxu2 %v4948_v63  ;;  %2094 = vmatpush.msrb.mxu3 %v4827_v46  ;;  %v5505_v46 = vld [vmem:[#allocation21_spill] sm:$0xff]  ;;  %v5509_v63 = vld [vmem:[#allocation32_spill] sm:$0xff] }
 0xdd6   :  { %2035 = vmatpush.msrb.mxu0 %v5497_v34  ;;  %2055 = vmatpush.msrb.mxu1 %v5498_v62  ;;  %v5506_v34 = vld [vmem:[#allocation28_spill] sm:$0xff] }
 0xdd7   :  { %2075 = vmatpush.msrb.mxu2 %v4954_v2  ;;  %2095 = vmatpush.msrb.mxu3 %v5500_v58  ;;  %v4966_v62 = vld [vmem:[#allocation2 + $0x10] sm:$0xff] }
 0xdd8   :  { %2036 = vmatpush.msrb.mxu0 %v5501_v11  ;;  %2056 = vmatpush.msrb.mxu1 %v5502_v53  ;;  %5507 = vst [vmem:[#allocation42_spill] sm:$0xff] %v4966_v62  ;;  %v5508_v2 = vld [vmem:[#allocation41_spill] sm:$0xff] }
 0xdd9   :  { %2076 = vmatpush.msrb.mxu2 %v4960_v5  ;;  %2096 = vmatpush.msrb.mxu3 %v5504_v27 }
 0xdda   :  { %2037 = vmatpush.msrb.mxu0 %v5505_v46  ;;  %2057 = vmatpush.msrb.mxu1 %v5506_v34 }
 0xddb   :  { %2077 = vmatpush.msrb.mxu2 %v4966_v62  ;;  %2097 = vmatpush.msrb.mxu3 %v5508_v2 }
 0xe37   :  { %v1609_v58 = vpop.f32.mrf.mxu0 }
 0xe38   :  { %v1676_v11 = vrot.slane %v1609_v58, 2 }
 0xe3a   :  { %v1684_v53 = vadd.f32 %v1676_v11, %v5509_v63 }
 0xe3c   :  { %v3276_v57 = vmul.f32 -1.442695, %v1684_v53 }
 0xe3e   :  { %3436 = vpow2.f32 %v3276_v57  ;;  %v1669_v55 = vpop.f32.mrf.mxu3 }
 0xe3f   :  { %v1679_v5 = vrot.slane %v1669_v55, 2 }
 0xe41   :  { %v1687_v27 = vadd.f32 %v1679_v5, %v5510_v40 }
 0xe43   :  { %v3279_v61 = vmul.f32 -1.442695, %v1687_v27 }
 0xe44   :  { %v3437_v46 = vpop.eup %3436 }
 0xe45   :  { %v1700_v23 = vadd.f32 1.0, %v3437_v46  ;;  %3438 = vpow2.f32 %v3279_v61 }
 0xe47   :  { %3440 = vrcp.f32 %v1700_v23  ;;  %vm1709_vm3 = vweird.f32 %v1700_v23  ;;  %v1715_v55 = vand.u32 2147483648, %v1700_v23  ;;  %v1713_v27 = vand.u32 2147483647, %v1700_v23 }
 0xe49   :  { %vm1714_vm8 = vcmp.eq.f32.partialorder %v1713_v27, 8.507059e+37 }
 0xe4b   :  { %v3439_v34 = vpop.eup %3438 }
 0xe4c   :  { %v1703_v62 = vadd.f32 1.0, %v3439_v34  ;;  %v1716_v34 = vor.u32 1.1754944e-38, %v1715_v55 }
 0xe4d   :  { %v3441_v59 = vpop.eup %3440 }
 0xe4e   :  { %v1705_v37 = vmul.f32 %v3441_v59, %v1700_v23  ;;  %3442 = vrcp.f32 %v1703_v62  ;;  %vm1710_vm2 = vweird.f32 %v3441_v59  ;;  %v1760_v5 = vand.u32 2147483648, %v1703_v62 }
 0xe4f   :  { %v1758_v46 = vand.u32 2147483647, %v1703_v62  ;;  %vm1711_vm5 = vmor %vm1709_vm3, %vm1710_vm2  ;;  %vm1754_vm6 = vweird.f32 %v1703_v62 }
 0xe50   :  { %v1706_v2 = vsub.f32 1.0, %v1705_v37  ;;  %v1761_v37 = vor.u32 1.1754944e-38, %v1760_v5 }
 0xe51   :  { %vm1759_vm9 = vcmp.eq.f32.partialorder %v1758_v46, 8.507059e+37 }
 0xe52   :  { %v1707_v58 = vmul.f32 %v3441_v59, %v1706_v2 }
 0xe54   :  { %v3443_v13 = vpop.eup %3442  ;;  %v1708_v53 = vadd.f32 %v3441_v59, %v1707_v58 }
 0xe55   :  { %v1750_v11 = vmul.f32 %v3443_v13, %v1703_v62  ;;  %vm1755_vm4 = vweird.f32 %v3443_v13 }
 0xe56   :  { %v1712_v61 = vsel %vm1711_vm5, %v3441_v59, %v1708_v53  ;;  %vm1756_vm7 = vmor %vm1754_vm6, %vm1755_vm4 }
 0xe57   :  { %v1751_v57 = vsub.f32 1.0, %v1750_v11  ;;  %v1717_v58 = vsel %vm1714_vm8, %v1716_v34, %v1712_v61 }
 0xe59   :  { %v1752_v40 = vmul.f32 %v3443_v13, %v1751_v57  ;;  %v1629_v57 = vpop.f32.mrf.mxu1 }
 0xe5a   :  { %v1677_v56 = vrot.slane %v1629_v57, 2 }
 0xe5b   :  { %v1753_v63 = vadd.f32 %v3443_v13, %v1752_v40 }
 0xe5c   :  { %v1685_v59 = vadd.f32 %v1677_v56, %v5410_v16  ;;  %v1771_v56 = vrot.slane %v4871_v14, 7 }
 0xe5d   :  { %v1757_v2 = vsel %vm1756_vm7, %v3443_v13, %v1753_v63 }
 0xe5e   :  { %v1762_v28 = vsel %vm1759_vm9, %v1761_v37, %v1757_v2  ;;  %v3277_v40 = vmul.f32 -1.442695, %v1685_v59 }
 0xe5f   :  { %v1764_v11 = vmul.f32 %v1762_v28, %v1717_v58 }
 0xe60   :  { %3444 = vpow2.f32 %v3277_v40 }
 0xe61   :  { %v1765_v51 = vmul.f32 %v5409_v8, %v1764_v11 }
 0xe63   :  { %v1767_v23 = vsel %vm1766_vm10, %v1765_v51, 0.0 }
 0xe64   :  { %1768 = vadd.xlane.f32.xlu0 %v1767_v23 }
 0xe66   :  { %v3445_v62 = vpop.eup %3444 }
 0xe67   :  { %v1701_v53 = vadd.f32 1.0, %v3445_v62 }
 0xe69   :  { %3446 = vrcp.f32 %v1701_v53  ;;  %v1730_v27 = vand.u32 2147483648, %v1701_v53  ;;  %vm1724_vm12 = vweird.f32 %v1701_v53  ;;  %v1728_v46 = vand.u32 2147483647, %v1701_v53 }
 0xe6b   :  { %v1731_v61 = vor.u32 1.1754944e-38, %v1730_v27  ;;  %vm1729_vm15 = vcmp.eq.f32.partialorder %v1728_v46, 8.507059e+37 }
 0xe6f   :  { %v3447_v13 = vpop.eup %3446 }
 0xe70   :  { %v1720_v63 = vmul.f32 %v3447_v13, %v1701_v53  ;;  %vm1725_vm11 = vweird.f32 %v3447_v13 }
 0xe71   :  { %vm1726_vm13 = vmor %vm1724_vm12, %vm1725_vm11 }
 0xe72   :  { %v1721_v55 = vsub.f32 1.0, %v1720_v63  ;;  %v1649_v63 = vpop.f32.mrf.mxu2 }
 0xe74   :  { %v1722_v5 = vmul.f32 %v3447_v13, %v1721_v55  ;;  %v1678_v55 = vrot.slane %v1649_v63, 2 }
 0xe76   :  { %v1723_v28 = vadd.f32 %v3447_v13, %v1722_v5  ;;  %v1686_v14 = vadd.f32 %v1678_v55, %v5411_v54 }
 0xe78   :  { %v1727_v51 = vsel %vm1726_vm13, %v3447_v13, %v1723_v28  ;;  %v3278_v5 = vmul.f32 -1.442695, %v1686_v14 }
 0xe79   :  { %v1732_v34 = vsel %vm1729_vm15, %v1731_v61, %v1727_v51 }
 0xe7a   :  { %v1773_v37 = vmul.f32 %v1771_v56, %v1732_v34  ;;  %3448 = vpow2.f32 %v3278_v5 }
 0xe80   :  { %v3449_v46 = vpop.eup %3448 }
 0xe81   :  { %v1702_v61 = vadd.f32 1.0, %v3449_v46 }
 0xe83   :  { %v1745_v46 = vand.u32 2147483648, %v1702_v61  ;;  %vm1739_vm4 = vweird.f32 %v1702_v61 }
 0xed7   :  { %v1769_v2 = vpop.xlane.xlu0 %1768 }
 0xed8   :  { %v1774_v58 = vadd.f32 %v1773_v37, %v1769_v2 }
 0xeda   :  { %v1775_v11 = vmul.f32 %v5409_v8, %v1774_v58 }
 0xedc   :  { %v1776_v23 = vsel %vm1766_vm10, %v1775_v11, 0.0 }
 0xedd   :  { %1777 = vadd.xlane.f32.xlu1 %v1776_v23 }
 0xf50   :  { %v1778_v57 = vpop.xlane.xlu1 %1777 }
 0xf51   :  { %v1779_v59 = vmul.f32 0.03125, %v1778_v57 }
 0xf53   :  { %v1780_v40 = vsub.f32 %v1774_v58, %v1779_v59 }
 0xf55   :  { %v1781_v62 = vmul.f32 %v5409_v8, %v1780_v40 }
 0xf57   :  { %v1782_v53 = vmul.f32 %v1781_v62, %v1781_v62 }
 0xf59   :  { %v1783_v13 = vsel %vm1766_vm10, %v1782_v53, 0.0 }
 0xf5a   :  { %1784 = vadd.xlane.f32.xlu2 %v1783_v13 }
 0xfcd   :  { %v1785_v28 = vpop.xlane.xlu2 %1784 }
 0xfce   :  { %v1786_v27 = vmul.f32 0.032258064, %v1785_v28 }
 0xfd0   :  { %3450 = vrsqrt.f32 %v1786_v27  ;;  %vm1794_vm1 = vcmp.eq.f32.partialorder %v1786_v27, inf  ;;  %v1797_v57 = vand.u32 2147483648, %v1786_v27  ;;  %vm1796_vm2 = vcmp.eq.f32.partialorder %v1786_v27, 0.0 }
 0xfd1   :  { %3452 = vrcp.f32 %v1702_v61 }
 0xfd6   :  { %v3451_v51 = vpop.eup %3450 }
 0xfd7   :  { %v1788_v34 = vmul.f32 %v3451_v51, %v1786_v27  ;;  %v3453_v11 = vpop.eup %3452 }
 0xfd8   :  { %v1735_v59 = vmul.f32 %v3453_v11, %v1702_v61  ;;  %vm1740_vm3 = vweird.f32 %v3453_v11 }
 0xfd9   :  { %v1789_v56 = vmul.f32 %v3451_v51, %v1788_v34  ;;  %vm1741_vm5 = vmor %vm1739_vm4, %vm1740_vm3 }
 0xfda   :  { %v1736_v63 = vsub.f32 1.0, %v1735_v59 }
 0xfdb   :  { %v1790_v37 = vmul.f32 0.5, %v1789_v56  ;;  %v1746_v56 = vor.u32 1.1754944e-38, %v1745_v46 }
 0xfdc   :  { %v1737_v55 = vmul.f32 %v3453_v11, %v1736_v63 }
 0xfdd   :  { %v1791_v2 = vsub.f32 1.5, %v1790_v37 }
 0xfde   :  { %v1738_v28 = vadd.f32 %v3453_v11, %v1737_v55 }
 0xfdf   :  { %v1792_v58 = vmul.f32 %v3451_v51, %v1791_v2  ;;  %v1743_v51 = vand.u32 2147483647, %v1702_v61 }
 0xfe0   :  { %v1742_v34 = vsel %vm1741_vm5, %v3453_v11, %v1738_v28 }
 0xfe1   :  { %v1793_v23 = vmul.f32 %v1792_v58, %v1786_v27  ;;  %vm1744_vm6 = vcmp.eq.f32.partialorder %v1743_v51, 8.507059e+37 }
 0xfe2   :  { %v1747_v37 = vsel %vm1744_vm6, %v1746_v56, %v1742_v34 }
 0xfe3   :  { %v1795_v40 = vsel %vm1794_vm1, %v1786_v27, %v1793_v23  ;;  %vm1981_vm1 = vcmask 1047559  }
 0xfe4   :  { %v1798_v53 = vsel %vm1796_vm2, %v1797_v57, %v1795_v40 }
 0xfe5   :  { %v1799_v13 = vadd.f32 1e-05, %v1798_v53 }
 0xfe7   :  { %3454 = vrcp.f32 %v1799_v13 }
 0xfed   :  { %v3455_v14 = vpop.eup %3454 }
 0xfee   :  { %v4981_v5 = vmul.f32 %v3455_v14, %v1781_v62 }
 0xff0   :  { %3456 = vtanh.f32 %v4981_v5 }
 0xff6   :  { %v3457_v27 = vpop.eup %3456 }
 0xff7   :  { %v1803_v2 = vmul.f32 %v3457_v27, %v1747_v37 }
 0xff9   :  { %v1805_v58 = vrot.slane %v1803_v2, 6 }
 0xffb   :  { %1823 = vmatmul.f32.vlgmr.msra.gmra.mxu0 %v1805_v58  ;;  %1843 = vmatmul.f32.vlgmr.msra.gmra.mxu1 %v1805_v58 }
 0xffc   :  { %1863 = vmatmul.f32.vlgmr.msra.gmra.mxu2 %v1805_v58  ;;  %1883 = vmatmul.f32.vlgmr.msra.gmra.mxu3 %v1805_v58 }
 0xffd   :  { %2221 = vmatpush.msra.mxu0 %v4700_v17  ;;  %2241 = vmatpush.msra.mxu1 %v4703_v36  ;;  %v5511_v17 = vld [vmem:[#allocation15_spill] sm:$0xff]  ;;  %v5512_v36 = vld [vmem:[#allocation25_spill] sm:$0xff] }
 0xffe   :  { %2261 = vmatpush.msra.mxu2 %v4876_v52  ;;  %2281 = vmatpush.msra.mxu3 %v4707_v60  ;;  %v5513_v60 = vld [vmem:[#allocation38_spill] sm:$0xff] }
 0xfff   :  { %2222 = vmatpush.msra.mxu0 %v4710_v19  ;;  %2242 = vmatpush.msra.mxu1 %v4713_v9  ;;  %v5514_v19 = vld [vmem:[#allocation45_spill] sm:$0xff]  ;;  %v5515_v9 = vld [vmem:[#allocation24_spill] sm:$0xff] }
0x1000   :  { %2262 = vmatpush.msra.mxu2 %v4882_v22  ;;  %2282 = vmatpush.msra.mxu3 %v4717_v42  ;;  %v5516_v42 = vld [vmem:[#allocation16_spill] sm:$0xff] }
0x1001   :  { %2223 = vmatpush.msra.mxu0 %v4720_v6  ;;  %2243 = vmatpush.msra.mxu1 %v4723_v15  ;;  %v5517_v6 = vld [vmem:[#allocation17_spill] sm:$0xff]  ;;  %v5518_v15 = vld [vmem:[#allocation22_spill] sm:$0xff] }
0x1002   :  { %2263 = vmatpush.msra.mxu2 %v4888_v0  ;;  %2283 = vmatpush.msra.mxu3 %v4727_v30  ;;  %v5519_v30 = vld [vmem:[#allocation26_spill] sm:$0xff] }
0x1003   :  { %2224 = vmatpush.msra.mxu0 %v4730_v12  ;;  %2244 = vmatpush.msra.mxu1 %v4733_v45  ;;  %v5520_v12 = vld [vmem:[#allocation36_spill] sm:$0xff]  ;;  %v5521_v45 = vld [vmem:[#allocation39_spill] sm:$0xff] }
0x1004   :  { %2264 = vmatpush.msra.mxu2 %v4894_v3  ;;  %2284 = vmatpush.msra.mxu3 %v4737_v24  ;;  %v5522_v24 = vld [vmem:[#allocation23_spill] sm:$0xff]  ;;  %v5537_v3 = vld [vmem:[#allocation33_spill] sm:$0xff] }
0x1005   :  { %2225 = vmatpush.msra.mxu0 %v4740_v21  ;;  %2245 = vmatpush.msra.mxu1 %v4743_v20  ;;  %v5523_v21 = vld [vmem:[#allocation18_spill] sm:$0xff]  ;;  %v5524_v20 = vld [vmem:[#allocation19_spill] sm:$0xff] }
0x1006   :  { %2265 = vmatpush.msra.mxu2 %v4900_v41  ;;  %2285 = vmatpush.msra.mxu3 %v4747_v29  ;;  %v5525_v29 = vld [vmem:[#allocation37_spill] sm:$0xff] }
0x1007   :  { %2226 = vmatpush.msra.mxu0 %v4750_v47  ;;  %2246 = vmatpush.msra.mxu1 %v4753_v26  ;;  %v5526_v47 = vld [vmem:[#allocation29_spill] sm:$0xff]  ;;  %v5527_v26 = vld [vmem:[#allocation27_spill] sm:$0xff] }
0x1008   :  { %2266 = vmatpush.msra.mxu2 %v4906_v1  ;;  %2286 = vmatpush.msra.mxu3 %v4757_v48  ;;  %v5528_v48 = vld [vmem:[#allocation40_spill] sm:$0xff] }
0x1009   :  { %2227 = vmatpush.msra.mxu0 %v4760_v50  ;;  %2247 = vmatpush.msra.mxu1 %v4763_v32  ;;  %v5529_v50 = vld [vmem:[#allocation20_spill] sm:$0xff]  ;;  %v5530_v32 = vld [vmem:[#allocation46_spill] sm:$0xff] }
0x100a   :  { %2267 = vmatpush.msra.mxu2 %v4912_v49  ;;  %2287 = vmatpush.msra.mxu3 %v4767_v7  ;;  %v5531_v7 = vld [vmem:[#allocation44_spill] sm:$0xff] }
0x100b   :  { %2228 = vmatpush.msra.mxu0 %v4770_v44  ;;  %2248 = vmatpush.msra.mxu1 %v4773_v33  ;;  %v5532_v44 = vld [vmem:[#allocation21_spill] sm:$0xff]  ;;  %v5533_v33 = vld [vmem:[#allocation28_spill] sm:$0xff] }
0x100c   :  { %2268 = vmatpush.msra.mxu2 %v4918_v39  ;;  %2288 = vmatpush.msra.mxu3 %v4777_v43  ;;  %v5534_v43 = vld [vmem:[#allocation42_spill] sm:$0xff] }
0x100d   :  { %2229 = vmatpush.msra.mxu0 %v4780_v10  ;;  %2249 = vmatpush.msra.mxu1 %v4783_v25  ;;  %v5535_v10 = vld [vmem:[#allocation41_spill] sm:$0xff] }
0x100e   :  { %2269 = vmatpush.msra.mxu2 %v4924_v4  ;;  %2289 = vmatpush.msra.mxu3 %v4787_v35 }
0x100f   :  { %2230 = vmatpush.msra.mxu0 %v4790_v38  ;;  %2250 = vmatpush.msra.mxu1 %v4793_v31  ;;  %v5536_v38 = vld [vmem:[#allocation32_spill] sm:$0xff] }
0x1010   :  { %2270 = vmatpush.msra.mxu2 %v4930_v18  ;;  %2290 = vmatpush.msra.mxu3 %v5511_v17 }
0x1011   :  { %2231 = vmatpush.msra.mxu0 %v5512_v36  ;;  %2251 = vmatpush.msra.mxu1 %v5513_v60 }
0x1012   :  { %2271 = vmatpush.msra.mxu2 %v5514_v19  ;;  %2291 = vmatpush.msra.mxu3 %v5515_v9 }
0x1013   :  { %2232 = vmatpush.msra.mxu0 %v5516_v42  ;;  %2252 = vmatpush.msra.mxu1 %v5517_v6 }
0x1014   :  { %2272 = vmatpush.msra.mxu2 %v5518_v15  ;;  %2292 = vmatpush.msra.mxu3 %v5519_v30 }
0x1015   :  { %2233 = vmatpush.msra.mxu0 %v5520_v12  ;;  %2253 = vmatpush.msra.mxu1 %v5521_v45 }
0x1016   :  { %2273 = vmatpush.msra.mxu2 %v5522_v24  ;;  %2293 = vmatpush.msra.mxu3 %v5523_v21 }
0x1017   :  { %2234 = vmatpush.msra.mxu0 %v5524_v20  ;;  %2254 = vmatpush.msra.mxu1 %v5525_v29 }
0x1018   :  { %2274 = vmatpush.msra.mxu2 %v5526_v47  ;;  %2294 = vmatpush.msra.mxu3 %v5527_v26 }
0x1019   :  { %2235 = vmatpush.msra.mxu0 %v5528_v48  ;;  %2255 = vmatpush.msra.mxu1 %v5529_v50 }
0x101a   :  { %2275 = vmatpush.msra.mxu2 %v5530_v32  ;;  %2295 = vmatpush.msra.mxu3 %v5531_v7 }
0x101b   :  { %2236 = vmatpush.msra.mxu0 %v5532_v44  ;;  %2256 = vmatpush.msra.mxu1 %v5533_v33 }
0x101c   :  { %2276 = vmatpush.msra.mxu2 %v5534_v43  ;;  %2296 = vmatpush.msra.mxu3 %v5535_v10 }
0x1078   :  { %v1824_v25 = vpop.f32.mrf.mxu0  ;;  %v1844_v60 = vpop.f32.mrf.mxu1 }
0x1079   :  { %v1891_v35 = vrot.slane %v1824_v25, 1  ;;  %v1892_v19 = vrot.slane %v1844_v60, 1  ;;  %v5538_v60 = vld [vmem:[#allocation30_spill] sm:$0xff] }
0x107b   :  { %v1899_v31 = vadd.f32 %v1891_v35, %v5536_v38  ;;  %v1900_v9 = vadd.f32 %v1892_v19, %v5410_v16  ;;  %v1986_v16 = vrot.slane %v4981_v5, 7 }
0x107d   :  { %v3280_v52 = vmul.f32 -1.442695, %v1899_v31  ;;  %v3281_v42 = vmul.f32 -1.442695, %v1900_v9 }
0x107f   :  { %3458 = vpow2.f32 %v3280_v52  ;;  %v1884_v22 = vpop.f32.mrf.mxu3  ;;  %v1864_v52 = vpop.f32.mrf.mxu2 }
0x1080   :  { %v1894_v0 = vrot.slane %v1884_v22, 1  ;;  %v1893_v22 = vrot.slane %v1864_v52, 1 }
0x1082   :  { %v1902_v41 = vadd.f32 %v1894_v0, %v5537_v3  ;;  %v1901_v5 = vadd.f32 %v1893_v22, %v5411_v54 }
0x1084   :  { %v3283_v1 = vmul.f32 -1.442695, %v1902_v41  ;;  %v3282_v0 = vmul.f32 -1.442695, %v1901_v5 }
0x1085   :  { %v3459_v49 = vpop.eup %3458 }
0x1086   :  { %v1915_v39 = vadd.f32 1.0, %v3459_v49  ;;  %3460 = vpow2.f32 %v3283_v1 }
0x1088   :  { %3462 = vrcp.f32 %v1915_v39  ;;  %vm1924_vm8 = vweird.f32 %v1915_v39  ;;  %v1930_v13 = vand.u32 2147483648, %v1915_v39  ;;  %v1928_v55 = vand.u32 2147483647, %v1915_v39 }
0x108a   :  { %v1931_v34 = vor.u32 1.1754944e-38, %v1930_v13  ;;  %vm1929_vm13 = vcmp.eq.f32.partialorder %v1928_v55, 8.507059e+37 }
0x108c   :  { %v3461_v4 = vpop.eup %3460 }
0x108d   :  { %v1918_v62 = vadd.f32 1.0, %v3461_v4 }
0x108e   :  { %v3463_v18 = vpop.eup %3462 }
0x108f   :  { %v1920_v61 = vmul.f32 %v3463_v18, %v1915_v39  ;;  %3464 = vrcp.f32 %v1918_v62  ;;  %vm1925_vm7 = vweird.f32 %v3463_v18  ;;  %v1975_v63 = vand.u32 2147483648, %v1918_v62 }
0x1090   :  { %v1973_v28 = vand.u32 2147483647, %v1918_v62  ;;  %vm1926_vm10 = vmor %vm1924_vm8, %vm1925_vm7  ;;  %vm1969_vm11 = vweird.f32 %v1918_v62  ;;  %3466 = vpow2.f32 %v3281_v42 }
0x1091   :  { %v1921_v11 = vsub.f32 1.0, %v1920_v61  ;;  %v1976_v56 = vor.u32 1.1754944e-38, %v1975_v63 }
0x1092   :  { %vm1974_vm15 = vcmp.eq.f32.partialorder %v1973_v28, 8.507059e+37 }
0x1093   :  { %v1922_v23 = vmul.f32 %v3463_v18, %v1921_v11 }
0x1095   :  { %v3465_v57 = vpop.eup %3464  ;;  %v1923_v40 = vadd.f32 %v3463_v18, %v1922_v23 }
0x1096   :  { %v1965_v59 = vmul.f32 %v3465_v57, %v1918_v62  ;;  %vm1970_vm9 = vweird.f32 %v3465_v57  ;;  %v3467_v6 = vpop.eup %3466 }
0x1097   :  { %v1927_v46 = vsel %vm1926_vm10, %v3463_v18, %v1923_v40  ;;  %vm1971_vm12 = vmor %vm1969_vm11, %vm1970_vm9  ;;  %v1916_v15 = vadd.f32 1.0, %v3467_v6  ;;  %v5539_v6 = vld [vmem:[#allocation31_spill] sm:$0xff] }
0x1098   :  { %v1966_v53 = vsub.f32 1.0, %v1965_v59  ;;  %v1932_v37 = vsel %vm1929_vm13, %v1931_v34, %v1927_v46 }
0x1099   :  { %3468 = vrcp.f32 %v1916_v15  ;;  %v1945_v20 = vand.u32 2147483648, %v1916_v15  ;;  %vm1939_vm3 = vweird.f32 %v1916_v15  ;;  %v1943_v29 = vand.u32 2147483647, %v1916_v15 }
0x109a   :  { %v1967_v14 = vmul.f32 %v3465_v57, %v1966_v53  ;;  %3470 = vpow2.f32 %v3282_v0 }
0x109b   :  { %v1946_v26 = vor.u32 1.1754944e-38, %v1945_v20  ;;  %vm1944_vm5 = vcmp.eq.f32.partialorder %v1943_v29, 8.507059e+37 }
0x109c   :  { %v1968_v51 = vadd.f32 %v3465_v57, %v1967_v14 }
0x109e   :  { %v1972_v27 = vsel %vm1971_vm12, %v3465_v57, %v1968_v51 }
0x109f   :  { %v1977_v2 = vsel %vm1974_vm15, %v1976_v56, %v1972_v27  ;;  %v3469_v30 = vpop.eup %3468 }
0x10a0   :  { %v1979_v58 = vmul.f32 %v1977_v2, %v1932_v37  ;;  %v1935_v12 = vmul.f32 %v3469_v30, %v1916_v15  ;;  %vm1940_vm2 = vweird.f32 %v3469_v30  ;;  %v3471_v1 = vpop.eup %3470 }
0x10a1   :  { %vm1941_vm4 = vmor %vm1939_vm3, %vm1940_vm2  ;;  %v1917_v39 = vadd.f32 1.0, %v3471_v1 }
0x10a2   :  { %v1980_v17 = vmul.f32 %v5409_v8, %v1979_v58  ;;  %v1936_v45 = vsub.f32 1.0, %v1935_v12 }
0x10a3   :  { %v1960_v51 = vand.u32 2147483648, %v1917_v39  ;;  %vm1954_vm9 = vweird.f32 %v1917_v39  ;;  %v1958_v34 = vand.u32 2147483647, %v1917_v39 }
0x10a4   :  { %v1982_v36 = vsel %vm1981_vm1, %v1980_v17, 0.0  ;;  %v1937_v24 = vmul.f32 %v3469_v30, %v1936_v45 }
0x10a5   :  { %1983 = vadd.xlane.f32.xlu0 %v1982_v36  ;;  %v1961_v27 = vor.u32 1.1754944e-38, %v1960_v51  ;;  %vm1959_vm11 = vcmp.eq.f32.partialorder %v1958_v34, 8.507059e+37 }
0x10a6   :  { %v1938_v21 = vadd.f32 %v3469_v30, %v1937_v24 }
0x10a8   :  { %v1942_v47 = vsel %vm1941_vm4, %v3469_v30, %v1938_v21 }
0x10a9   :  { %v1947_v48 = vsel %vm1944_vm5, %v1946_v26, %v1942_v47 }
0x10aa   :  { %v1988_v50 = vmul.f32 %v1986_v16, %v1947_v48 }
0x1118   :  { %v1984_v32 = vpop.xlane.xlu0 %1983 }
0x1119   :  { %v1989_v7 = vadd.f32 %v1988_v50, %v1984_v32 }
0x111b   :  { %v1990_v44 = vmul.f32 %v5409_v8, %v1989_v7 }
0x111d   :  { %v1991_v33 = vsel %vm1981_vm1, %v1990_v44, 0.0 }
0x111e   :  { %1992 = vadd.xlane.f32.xlu1 %v1991_v33 }
0x1191   :  { %v1993_v43 = vpop.xlane.xlu1 %1992 }
0x1192   :  { %v1994_v10 = vmul.f32 0.03125, %v1993_v43 }
0x1194   :  { %v1995_v25 = vsub.f32 %v1989_v7, %v1994_v10 }
0x1196   :  { %v1996_v35 = vmul.f32 %v5409_v8, %v1995_v25 }
0x1198   :  { %v1997_v38 = vmul.f32 %v1996_v35, %v1996_v35 }
0x119a   :  { %v1998_v31 = vsel %vm1981_vm1, %v1997_v38, 0.0 }
0x119b   :  { %1999 = vadd.xlane.f32.xlu2 %v1998_v31 }
0x120e   :  { %v2000_v3 = vpop.xlane.xlu2 %1999 }
0x120f   :  { %v2001_v41 = vmul.f32 0.032258064, %v2000_v3 }
0x1211   :  { %3472 = vrsqrt.f32 %v2001_v41  ;;  %vm2009_vm6 = vcmp.eq.f32.partialorder %v2001_v41, inf  ;;  %v2012_v59 = vand.u32 2147483648, %v2001_v41  ;;  %vm2011_vm7 = vcmp.eq.f32.partialorder %v2001_v41, 0.0 }
0x1212   :  { %3474 = vrcp.f32 %v1917_v39 }
0x1217   :  { %v3473_v49 = vpop.eup %3472 }
0x1218   :  { %v2003_v4 = vmul.f32 %v3473_v49, %v2001_v41  ;;  %v3475_v23 = vpop.eup %3474 }
0x1219   :  { %v1950_v40 = vmul.f32 %v3475_v23, %v1917_v39  ;;  %vm1955_vm8 = vweird.f32 %v3475_v23 }
0x121a   :  { %v2004_v18 = vmul.f32 %v3473_v49, %v2003_v4  ;;  %vm1956_vm10 = vmor %vm1954_vm9, %vm1955_vm8 }
0x121b   :  { %v1951_v63 = vsub.f32 1.0, %v1950_v40 }
0x121c   :  { %v2005_v62 = vmul.f32 0.5, %v2004_v18 }
0x121d   :  { %v1952_v55 = vmul.f32 %v3475_v23, %v1951_v63 }
0x121e   :  { %v2006_v61 = vsub.f32 1.5, %v2005_v62 }
0x121f   :  { %v1953_v46 = vadd.f32 %v3475_v23, %v1952_v55 }
0x1220   :  { %v2007_v11 = vmul.f32 %v3473_v49, %v2006_v61  ;;  %v5540_v49 = vld [vmem:[#allocation34_spill] sm:$0xff] }
0x1221   :  { %v1957_v56 = vsel %vm1956_vm10, %v3475_v23, %v1953_v46 }
0x1222   :  { %v2008_v57 = vmul.f32 %v2007_v11, %v2001_v41  ;;  %v1962_v2 = vsel %vm1959_vm11, %v1961_v27, %v1957_v56 }
0x1224   :  { %v2010_v54 = vsel %vm2009_vm6, %v2001_v41, %v2008_v57 }
0x1225   :  { %v2013_v53 = vsel %vm2011_vm7, %v2012_v59, %v2010_v54 }
0x1226   :  { %v2014_v13 = vadd.f32 1e-05, %v2013_v53 }
0x1228   :  { %3476 = vrcp.f32 %v2014_v13 }
0x122e   :  { %v3477_v14 = vpop.eup %3476 }
0x122f   :  { %v5059_v28 = vmul.f32 %v3477_v14, %v1996_v35 }
0x1231   :  { %3478 = vtanh.f32 %v5059_v28  ;;  %v2188_v55 = vrot.slane %v5059_v28, 7 }
0x1237   :  { %v3479_v37 = vpop.eup %3478 }
0x1238   :  { %v2018_v58 = vmul.f32 %v3479_v37, %v1962_v2 }
0x123a   :  { %v2020_v17 = vrot.slane %v2018_v58, 7 }
0x123c   :  { %2038 = vmatmul.f32.vlgmr.msrb.gmra.mxu0 %v2020_v17  ;;  %2058 = vmatmul.f32.vlgmr.msrb.gmra.mxu1 %v2020_v17 }
0x123d   :  { %2078 = vmatmul.f32.vlgmr.msrb.gmra.mxu2 %v2020_v17  ;;  %2098 = vmatmul.f32.vlgmr.msrb.gmra.mxu3 %v2020_v17 }
0x12b9   :  { %v2039_v36 = vpop.f32.mrf.mxu0  ;;  %v2059_v1 = vpop.f32.mrf.mxu1 }
0x12ba   :  { %v2102_v19 = vadd.f32 %v2039_v36, %v5538_v60  ;;  %v2103_v39 = vadd.f32 %v2059_v1, %v5540_v49 }
0x12bc   :  { %v3284_v9 = vmul.f32 -1.442695, %v2102_v19  ;;  %v3285_v4 = vmul.f32 -1.442695, %v2103_v39 }
0x12be   :  { %3480 = vpow2.f32 %v3284_v9  ;;  %v5541_v9 = vld [vmem:[#allocation43_spill] sm:$0xff] }
0x12c0   :  { %v2099_v42 = vpop.f32.mrf.mxu3  ;;  %v2079_v19 = vpop.f32.mrf.mxu2 }
0x12c1   :  { %v2105_v15 = vadd.f32 %v2099_v42, %v5539_v6  ;;  %v2104_v28 = vadd.f32 %v2079_v19, %v5541_v9 }
0x12c3   :  { %v3287_v30 = vmul.f32 -1.442695, %v2105_v15  ;;  %v3286_v42 = vmul.f32 -1.442695, %v2104_v28 }
0x12c4   :  { %v3481_v12 = vpop.eup %3480 }
0x12c5   :  { %v2118_v45 = vadd.f32 1.0, %v3481_v12  ;;  %3482 = vpow2.f32 %v3287_v30 }
0x12c7   :  { %3484 = vrcp.f32 %v2118_v45  ;;  %vm2127_vm13 = vweird.f32 %v2118_v45  ;;  %v2133_v7 = vand.u32 2147483648, %v2118_v45  ;;  %v2131_v33 = vand.u32 2147483647, %v2118_v45 }
0x12c9   :  { %v2134_v38 = vor.u32 1.1754944e-38, %v2133_v7  ;;  %vm2132_vm4 = vcmp.eq.f32.partialorder %v2131_v33, 8.507059e+37 }
0x12cb   :  { %v3483_v24 = vpop.eup %3482 }
0x12cc   :  { %v2121_v20 = vadd.f32 1.0, %v3483_v24 }
0x12cd   :  { %v3485_v21 = vpop.eup %3484 }
0x12ce   :  { %v2123_v29 = vmul.f32 %v3485_v21, %v2118_v45  ;;  %3486 = vrcp.f32 %v2121_v20  ;;  %vm2128_vm12 = vweird.f32 %v3485_v21  ;;  %v2178_v44 = vand.u32 2147483648, %v2121_v20 }
0x12cf   :  { %v2176_v10 = vand.u32 2147483647, %v2121_v20  ;;  %vm2129_vm1 = vmor %vm2127_vm13, %vm2128_vm12  ;;  %vm2172_vm2 = vweird.f32 %v2121_v20  ;;  %3488 = vpow2.f32 %v3285_v4 }
0x12d0   :  { %v2124_v47 = vsub.f32 1.0, %v2123_v29  ;;  %v2179_v31 = vor.u32 1.1754944e-38, %v2178_v44 }
0x12d1   :  { %vm2177_vm5 = vcmp.eq.f32.partialorder %v2176_v10, 8.507059e+37 }
0x12d2   :  { %v2125_v26 = vmul.f32 %v3485_v21, %v2124_v47 }
0x12d4   :  { %v3487_v48 = vpop.eup %3486  ;;  %v2126_v50 = vadd.f32 %v3485_v21, %v2125_v26 }
0x12d5   :  { %v2168_v16 = vmul.f32 %v3487_v48, %v2121_v20  ;;  %vm2173_vm15 = vweird.f32 %v3487_v48  ;;  %v3489_v18 = vpop.eup %3488 }
0x12d6   :  { %v2130_v25 = vsel %vm2129_vm1, %v3485_v21, %v2126_v50  ;;  %vm2174_vm3 = vmor %vm2172_vm2, %vm2173_vm15  ;;  %v2119_v62 = vadd.f32 1.0, %v3489_v18 }
0x12d7   :  { %v2169_v32 = vsub.f32 1.0, %v2168_v16  ;;  %v2135_v22 = vsel %vm2132_vm4, %v2134_v38, %v2130_v25 }
0x12d8   :  { %3490 = vrcp.f32 %v2119_v62  ;;  %v2148_v40 = vand.u32 2147483648, %v2119_v62  ;;  %vm2142_vm7 = vweird.f32 %v2119_v62  ;;  %v2146_v54 = vand.u32 2147483647, %v2119_v62 }
0x12d9   :  { %v2170_v43 = vmul.f32 %v3487_v48, %v2169_v32  ;;  %3492 = vpow2.f32 %v3286_v42 }
0x12da   :  { %v2149_v13 = vor.u32 1.1754944e-38, %v2148_v40  ;;  %vm2147_vm9 = vcmp.eq.f32.partialorder %v2146_v54, 8.507059e+37 }
0x12db   :  { %v2171_v35 = vadd.f32 %v3487_v48, %v2170_v43 }
0x12dd   :  { %v2175_v52 = vsel %vm2174_vm3, %v3487_v48, %v2171_v35 }
0x12de   :  { %v2180_v5 = vsel %vm2177_vm5, %v2179_v31, %v2175_v52  ;;  %v3491_v61 = vpop.eup %3490 }
0x12df   :  { %v2182_v0 = vmul.f32 %v2180_v5, %v2135_v22  ;;  %v2138_v11 = vmul.f32 %v3491_v61, %v2119_v62  ;;  %vm2143_vm6 = vweird.f32 %v3491_v61  ;;  %v3493_v12 = vpop.eup %3492 }
0x12e0   :  { %vm2144_vm8 = vmor %vm2142_vm7, %vm2143_vm6  ;;  %v2120_v24 = vadd.f32 1.0, %v3493_v12 }
0x12e1   :  { %v2183_v3 = vmul.f32 %v5409_v8, %v2182_v0  ;;  %v2139_v23 = vsub.f32 1.0, %v2138_v11 }
0x12e2   :  { %v2163_v31 = vand.u32 2147483648, %v2120_v24  ;;  %vm2157_vm13 = vweird.f32 %v2120_v24  ;;  %v2161_v52 = vand.u32 2147483647, %v2120_v24 }
0x12e3   :  { %v2184_v41 = vsel %vm156_vm0, %v2183_v3, 0.0  ;;  %v2140_v57 = vmul.f32 %v3491_v61, %v2139_v23 }
0x12e4   :  { %2185 = vadd.xlane.f32.xlu0 %v2184_v41  ;;  %v2164_v5 = vor.u32 1.1754944e-38, %v2163_v31  ;;  %vm2162_vm1 = vcmp.eq.f32.partialorder %v2161_v52, 8.507059e+37 }
0x12e5   :  { %v2141_v59 = vadd.f32 %v3491_v61, %v2140_v57 }
0x12e7   :  { %v2145_v53 = vsel %vm2144_vm8, %v3491_v61, %v2141_v59 }
0x12e8   :  { %v2150_v63 = vsel %vm2147_vm9, %v2149_v13, %v2145_v53 }
0x12e9   :  { %v2190_v14 = vmul.f32 %v2188_v55, %v2150_v63 }
0x1357   :  { %v2186_v46 = vpop.xlane.xlu0 %2185 }
0x1358   :  { %v2191_v51 = vadd.f32 %v2190_v14, %v2186_v46 }
0x135a   :  { %v2192_v34 = vmul.f32 %v5409_v8, %v2191_v51 }
0x135c   :  { %v2193_v56 = vsel %vm156_vm0, %v2192_v34, 0.0 }
0x135d   :  { %2194 = vadd.xlane.f32.xlu1 %v2193_v56 }
0x13d0   :  { %v2195_v27 = vpop.xlane.xlu1 %2194 }
0x13d1   :  { %v2196_v37 = vmul.f32 0.03125, %v2195_v27 }
0x13d3   :  { %v2197_v2 = vsub.f32 %v2191_v51, %v2196_v37 }
0x13d5   :  { %v2198_v58 = vmul.f32 %v5409_v8, %v2197_v2 }
0x13d7   :  { %v2199_v17 = vmul.f32 %v2198_v58, %v2198_v58 }
0x13d9   :  { %v2200_v36 = vsel %vm156_vm0, %v2199_v17, 0.0 }
0x13da   :  { %2201 = vadd.xlane.f32.xlu2 %v2200_v36 }
0x144d   :  { %v2202_v15 = vpop.xlane.xlu2 %2201 }
0x144e   :  { %v2203_v30 = vmul.f32 0.032258064, %v2202_v15 }
0x1450   :  { %3494 = vrsqrt.f32 %v2203_v30  ;;  %vm2211_vm10 = vcmp.eq.f32.partialorder %v2203_v30, inf  ;;  %v2214_v50 = vand.u32 2147483648, %v2203_v30  ;;  %vm2213_vm11 = vcmp.eq.f32.partialorder %v2203_v30, 0.0 }
0x1451   :  { %3496 = vrcp.f32 %v2120_v24 }
0x1456   :  { %v3495_v45 = vpop.eup %3494 }
0x1457   :  { %v2205_v21 = vmul.f32 %v3495_v45, %v2203_v30  ;;  %v3497_v48 = vpop.eup %3496 }
0x1458   :  { %v2153_v32 = vmul.f32 %v3497_v48, %v2120_v24  ;;  %vm2158_vm12 = vweird.f32 %v3497_v48 }
0x1459   :  { %v2206_v20 = vmul.f32 %v3495_v45, %v2205_v21  ;;  %vm2159_vm15 = vmor %vm2157_vm13, %vm2158_vm12 }
0x145a   :  { %v2154_v43 = vsub.f32 1.0, %v2153_v32 }
0x145b   :  { %v2207_v29 = vmul.f32 0.5, %v2206_v20 }
0x145c   :  { %v2155_v10 = vmul.f32 %v3497_v48, %v2154_v43 }
0x145d   :  { %v2208_v47 = vsub.f32 1.5, %v2207_v29 }
0x145e   :  { %v2156_v38 = vadd.f32 %v3497_v48, %v2155_v10 }
0x145f   :  { %v2209_v26 = vmul.f32 %v3495_v45, %v2208_v47 }
0x1460   :  { %v2160_v22 = vsel %vm2159_vm15, %v3497_v48, %v2156_v38 }
0x1461   :  { %v2210_v16 = vmul.f32 %v2209_v26, %v2203_v30  ;;  %v2165_v3 = vsel %vm2162_vm1, %v2164_v5, %v2160_v22  ;;  %v2552_v5 = vld [vmem:[#allocation5 + $0x3c0] sm:$0xff] }
0x1462   :  { %2581 = vmatpush.msrb.mxu0 %v2552_v5 }
0x1463   :  { %v2212_v7 = vsel %vm2211_vm10, %v2203_v30, %v2210_v16 }
0x1464   :  { %v2215_v44 = vsel %vm2213_vm11, %v2214_v50, %v2212_v7 }
0x1465   :  { %v2216_v33 = vadd.f32 1e-05, %v2215_v44 }
0x1467   :  { %3498 = vrcp.f32 %v2216_v33 }
0x146d   :  { %v3499_v25 = vpop.eup %3498 }
0x146e   :  { %v5073_v35 = vmul.f32 %v3499_v25, %v2198_v58 }
0x1470   :  { %3500 = vtanh.f32 %v5073_v35 }
0x1476   :  { %v3501_v0 = vpop.eup %3500 }
0x1477   :  { %v2220_v41 = vmul.f32 %v3501_v0, %v2165_v3  ;;  %v2553_v0 = vld [vmem:[#allocation5 + $0x3c8] sm:$0xff]  ;;  %v2554_v3 = vld [vmem:[#allocation5 + $0x3d0] sm:$0xff] }
0x1478   :  { %2601 = vmatpush.msrb.mxu1 %v2553_v0  ;;  %2621 = vmatpush.msrb.mxu2 %v2554_v3  ;;  %v2440_v0 = vld [vmem:[#allocation5 + $0x40] sm:$0xff]  ;;  %v2441_v3 = vld [vmem:[#allocation5 + $0x48] sm:$0xff] }
0x1479   :  { %2237 = vmatmul.f32.vlgmr.msra.gmra.mxu0 %v2220_v41  ;;  %2257 = vmatmul.f32.vlgmr.msra.gmra.mxu1 %v2220_v41 }
0x147a   :  { %2277 = vmatmul.f32.vlgmr.msra.gmra.mxu2 %v2220_v41  ;;  %2297 = vmatmul.f32.vlgmr.msra.gmra.mxu3 %v2220_v41  ;;  %v2555_v41 = vld [vmem:[#allocation5 + $0x3d8] sm:$0xff] }
0x147b   :  { %2641 = vmatpush.msrb.mxu3 %v2555_v41  ;;  %v2442_v41 = vld [vmem:[#allocation5 + $0x50] sm:$0xff] }
0x14f6   :  { %v2238_v1 = vpop.f32.mrf.mxu0  ;;  %v2258_v45 = vpop.f32.mrf.mxu1 }
0x14f7   :  { %v2305_v39 = vrot.slane %v2238_v1, 7  ;;  %v2306_v24 = vrot.slane %v2258_v45, 7  ;;  %v2544_v1 = vld [vmem:[#allocation5 + $0x380] sm:$0xff]  ;;  %v2491_v45 = vld [vmem:[#allocation5 + $0x1d8] sm:$0xff] }
0x14f8   :  { %2582 = vmatpush.msrb.mxu0 %v2544_v1  ;;  %v2443_v1 = vld [vmem:[#allocation5 + $0x58] sm:$0xff] }
0x14f9   :  { %v2313_v4 = vadd.f32 %v2305_v39, %v5538_v60  ;;  %v2314_v21 = vadd.f32 %v2306_v24, %v5540_v49  ;;  %v2399_v49 = vrot.slane %v5073_v35, 7  ;;  %v2545_v39 = vld [vmem:[#allocation5 + $0x388] sm:$0xff]  ;;  %v2547_v35 = vld [vmem:[#allocation5 + $0x398] sm:$0xff]  ;;  %v2480_v24 = vld [vmem:[#allocation5 + $0x180] sm:$0xff] }
0x14fa   :  { %2602 = vmatpush.msrb.mxu1 %v2545_v39  ;;  %2642 = vmatpush.msrb.mxu3 %v2547_v35  ;;  %v2432_v39 = vld [vmem:[#allocation5] sm:$0xff]  ;;  %v2434_v35 = vld [vmem:[#allocation5 + $0x10] sm:$0xff] }
0x14fb   :  { %v3288_v18 = vmul.f32 -1.442695, %v2313_v4  ;;  %v3289_v20 = vmul.f32 -1.442695, %v2314_v21  ;;  %v2546_v4 = vld [vmem:[#allocation5 + $0x390] sm:$0xff]  ;;  %v2481_v21 = vld [vmem:[#allocation5 + $0x188] sm:$0xff] }
0x14fc   :  { %2622 = vmatpush.msrb.mxu2 %v2546_v4  ;;  %v2433_v4 = vld [vmem:[#allocation5 + $0x8] sm:$0xff] }
0x14fd   :  { %3502 = vpow2.f32 %v3288_v18  ;;  %v2298_v62 = vpop.f32.mrf.mxu3  ;;  %v2536_v18 = vld [vmem:[#allocation5 + $0x340] sm:$0xff] }
0x14fe   :  { %v2308_v61 = vrot.slane %v2298_v62, 7  ;;  %v2537_v62 = vld [vmem:[#allocation5 + $0x348] sm:$0xff]  ;;  %2583 = vmatpush.msrb.mxu0 %v2536_v18  ;;  %v2435_v18 = vld [vmem:[#allocation5 + $0x18] sm:$0xff] }
0x14ff   :  { %2603 = vmatpush.msrb.mxu1 %v2537_v62  ;;  %v2556_v62 = vld [vmem:[#allocation5 + $0x3e0] sm:$0xff] }
0x1500   :  { %v2316_v11 = vadd.f32 %v2308_v61, %v5539_v6  ;;  %v2538_v61 = vld [vmem:[#allocation5 + $0x350] sm:$0xff] }
0x1501   :  { %2623 = vmatpush.msrb.mxu2 %v2538_v61  ;;  %v2557_v61 = vld [vmem:[#allocation5 + $0x3e8] sm:$0xff] }
0x1502   :  { %v3291_v23 = vmul.f32 -1.442695, %v2316_v11  ;;  %v2539_v11 = vld [vmem:[#allocation5 + $0x358] sm:$0xff] }
0x1503   :  { %v3503_v57 = vpop.eup %3502  ;;  %2643 = vmatpush.msrb.mxu3 %v2539_v11 }
0x1504   :  { %v2329_v59 = vadd.f32 1.0, %v3503_v57  ;;  %3504 = vpow2.f32 %v3291_v23  ;;  %v2528_v23 = vld [vmem:[#allocation5 + $0x300] sm:$0xff]  ;;  %v2529_v57 = vld [vmem:[#allocation5 + $0x308] sm:$0xff] }
0x1505   :  { %2584 = vmatpush.msrb.mxu0 %v2528_v23  ;;  %2604 = vmatpush.msrb.mxu1 %v2529_v57  ;;  %v2558_v23 = vld [vmem:[#allocation5 + $0x3f0] sm:$0xff]  ;;  %v2559_v57 = vld [vmem:[#allocation5 + $0x3f8] sm:$0xff] }
0x1506   :  { %3506 = vrcp.f32 %v2329_v59  ;;  %vm2338_vm3 = vweird.f32 %v2329_v59  ;;  %v2344_v34 = vand.u32 2147483648, %v2329_v59  ;;  %v2342_v56 = vand.u32 2147483647, %v2329_v59 }
0x1508   :  { %v2345_v17 = vor.u32 1.1754944e-38, %v2344_v34  ;;  %vm2343_vm8 = vcmp.eq.f32.partialorder %v2342_v56, 8.507059e+37  ;;  %v2513_v56 = vld [vmem:[#allocation5 + $0x288] sm:$0xff] }
0x150a   :  { %v3505_v40 = vpop.eup %3504 }
0x150b   :  { %v2332_v53 = vadd.f32 1.0, %v3505_v40  ;;  %v2531_v40 = vld [vmem:[#allocation5 + $0x318] sm:$0xff] }
0x150c   :  { %v3507_v54 = vpop.eup %3506  ;;  %2644 = vmatpush.msrb.mxu3 %v2531_v40  ;;  %v2549_v40 = vld [vmem:[#allocation5 + $0x3a8] sm:$0xff] }
0x150d   :  { %3508 = vrcp.f32 %v2332_v53  ;;  %v2334_v13 = vmul.f32 %v3507_v54, %v2329_v59  ;;  %vm2339_vm2 = vweird.f32 %v3507_v54  ;;  %v2389_v6 = vand.u32 2147483648, %v2332_v53  ;;  %v2530_v59 = vld [vmem:[#allocation5 + $0x310] sm:$0xff] }
0x150e   :  { %v2387_v37 = vand.u32 2147483647, %v2332_v53  ;;  %vm2340_vm5 = vmor %vm2338_vm3, %vm2339_vm2  ;;  %vm2383_vm6 = vweird.f32 %v2332_v53  ;;  %3510 = vpow2.f32 %v3289_v20  ;;  %2624 = vmatpush.msrb.mxu2 %v2530_v59  ;;  %v2482_v20 = vld [vmem:[#allocation5 + $0x190] sm:$0xff]  ;;  %v2548_v59 = vld [vmem:[#allocation5 + $0x3a0] sm:$0xff] }
0x150f   :  { %v2335_v63 = vsub.f32 1.0, %v2334_v13  ;;  %v2390_v36 = vor.u32 1.1754944e-38, %v2389_v6  ;;  %v2522_v13 = vld [vmem:[#allocation5 + $0x2d0] sm:$0xff]  ;;  %v2512_v6 = vld [vmem:[#allocation5 + $0x280] sm:$0xff] }
0x1510   :  { %vm2388_vm9 = vcmp.eq.f32.partialorder %v2387_v37, 8.507059e+37  ;;  %2625 = vmatpush.msrb.mxu2 %v2522_v13  ;;  %v2515_v37 = vld [vmem:[#allocation5 + $0x298] sm:$0xff]  ;;  %v2540_v13 = vld [vmem:[#allocation5 + $0x360] sm:$0xff] }
0x1511   :  { %v2336_v55 = vmul.f32 %v3507_v54, %v2335_v63  ;;  %v2523_v63 = vld [vmem:[#allocation5 + $0x2d8] sm:$0xff] }
0x1512   :  { %2645 = vmatpush.msrb.mxu3 %v2523_v63  ;;  %v2541_v63 = vld [vmem:[#allocation5 + $0x368] sm:$0xff] }
0x1513   :  { %v3509_v14 = vpop.eup %3508  ;;  %v2337_v46 = vadd.f32 %v3507_v54, %v2336_v55 }
0x1514   :  { %v2379_v60 = vmul.f32 %v3509_v14, %v2332_v53  ;;  %vm2384_vm4 = vweird.f32 %v3509_v14  ;;  %v3511_v29 = vpop.eup %3510  ;;  %v2521_v53 = vld [vmem:[#allocation5 + $0x2c8] sm:$0xff]  ;;  %2646 = vmatpush.msrb.mxu3 %v2515_v37  ;;  %v2526_v37 = vld [vmem:[#allocation5 + $0x2f0] sm:$0xff] }
0x1515   :  { %v2341_v2 = vsel %vm2340_vm5, %v3507_v54, %v2337_v46  ;;  %vm2385_vm7 = vmor %vm2383_vm6, %vm2384_vm4  ;;  %v2330_v47 = vadd.f32 1.0, %v3511_v29  ;;  %v2520_v54 = vld [vmem:[#allocation5 + $0x2c0] sm:$0xff]  ;;  %2605 = vmatpush.msrb.mxu1 %v2521_v53  ;;  %v2483_v29 = vld [vmem:[#allocation5 + $0x198] sm:$0xff] }
0x1516   :  { %v2380_v51 = vsub.f32 1.0, %v2379_v60  ;;  %v2346_v28 = vsel %vm2343_vm8, %v2345_v17, %v2341_v2  ;;  %2585 = vmatpush.msrb.mxu0 %v2520_v54  ;;  %v2504_v2 = vld [vmem:[#allocation5 + $0x240] sm:$0xff]  ;;  %v2506_v17 = vld [vmem:[#allocation5 + $0x250] sm:$0xff]  ;;  %v2551_v53 = vld [vmem:[#allocation5 + $0x3b8] sm:$0xff] }
0x1517   :  { %3512 = vrcp.f32 %v2330_v47  ;;  %v2359_v7 = vand.u32 2147483648, %v2330_v47  ;;  %vm2353_vm11 = vweird.f32 %v2330_v47  ;;  %v2357_v44 = vand.u32 2147483647, %v2330_v47  ;;  %2606 = vmatpush.msrb.mxu1 %v2513_v56  ;;  %v2550_v54 = vld [vmem:[#allocation5 + $0x3b0] sm:$0xff]  ;;  %v2524_v56 = vld [vmem:[#allocation5 + $0x2e0] sm:$0xff] }
0x1518   :  { %v2381_v27 = vmul.f32 %v3509_v14, %v2380_v51  ;;  %2586 = vmatpush.msrb.mxu0 %v2512_v6  ;;  %v2535_v6 = vld [vmem:[#allocation5 + $0x338] sm:$0xff] }
0x1519   :  { %v2360_v43 = vor.u32 1.1754944e-38, %v2359_v7  ;;  %vm2358_vm13 = vcmp.eq.f32.partialorder %v2357_v44, 8.507059e+37  ;;  %v2466_v7 = vld [vmem:[#allocation5 + $0x110] sm:$0xff]  ;;  %v2467_v44 = vld [vmem:[#allocation5 + $0x118] sm:$0xff] }
0x151a   :  { %v2382_v58 = vadd.f32 %v3509_v14, %v2381_v27  ;;  %v2514_v27 = vld [vmem:[#allocation5 + $0x290] sm:$0xff]  ;;  %2587 = vmatpush.msrb.mxu0 %v2504_v2 }
0x151b   :  { %2626 = vmatpush.msrb.mxu2 %v2514_v27  ;;  %v2525_v27 = vld [vmem:[#allocation5 + $0x2e8] sm:$0xff] }
0x151c   :  { %v2386_v19 = vsel %vm2385_vm7, %v3509_v14, %v2382_v58  ;;  %v2505_v58 = vld [vmem:[#allocation5 + $0x248] sm:$0xff] }
0x151d   :  { %v2391_v42 = vsel %vm2388_vm9, %v2390_v36, %v2386_v19  ;;  %v3513_v26 = vpop.eup %3512  ;;  %2607 = vmatpush.msrb.mxu1 %v2505_v58  ;;  %2627 = vmatpush.msrb.mxu2 %v2506_v17  ;;  %v2496_v36 = vld [vmem:[#allocation5 + $0x200] sm:$0xff]  ;;  %v2497_v19 = vld [vmem:[#allocation5 + $0x208] sm:$0xff]  ;;  %v2527_v58 = vld [vmem:[#allocation5 + $0x2f8] sm:$0xff] }
0x151e   :  { %v2393_v15 = vmul.f32 %v2391_v42, %v2346_v28  ;;  %v2349_v48 = vmul.f32 %v3513_v26, %v2330_v47  ;;  %vm2354_vm10 = vweird.f32 %v3513_v26  ;;  %v2498_v28 = vld [vmem:[#allocation5 + $0x210] sm:$0xff]  ;;  %2588 = vmatpush.msrb.mxu0 %v2496_v36  ;;  %v2499_v42 = vld [vmem:[#allocation5 + $0x218] sm:$0xff]  ;;  %v2472_v47 = vld [vmem:[#allocation5 + $0x140] sm:$0xff] }
0x151f   :  { %vm2355_vm12 = vmor %vm2353_vm11, %vm2354_vm10  ;;  %2608 = vmatpush.msrb.mxu1 %v2497_v19  ;;  %2628 = vmatpush.msrb.mxu2 %v2498_v28  ;;  %v2517_v36 = vld [vmem:[#allocation5 + $0x2a8] sm:$0xff]  ;;  %v2518_v19 = vld [vmem:[#allocation5 + $0x2b0] sm:$0xff] }
0x1520   :  { %v2394_v30 = vmul.f32 %v5409_v8, %v2393_v15  ;;  %v2350_v16 = vsub.f32 1.0, %v2349_v48  ;;  %v2488_v15 = vld [vmem:[#allocation5 + $0x1c0] sm:$0xff]  ;;  %v2474_v48 = vld [vmem:[#allocation5 + $0x150] sm:$0xff]  ;;  %v2519_v28 = vld [vmem:[#allocation5 + $0x2b8] sm:$0xff] }
0x1521   :  { %2589 = vmatpush.msrb.mxu0 %v2488_v15  ;;  %v2509_v15 = vld [vmem:[#allocation5 + $0x268] sm:$0xff] }
0x1522   :  { %v2395_v12 = vsel %vm691_vm14, %v2394_v30, 0.0  ;;  %v2351_v50 = vmul.f32 %v3513_v26, %v2350_v16  ;;  %v2489_v30 = vld [vmem:[#allocation5 + $0x1c8] sm:$0xff]  ;;  %v2475_v16 = vld [vmem:[#allocation5 + $0x158] sm:$0xff] }
0x1523   :  { %2396 = vadd.xlane.f32.xlu0 %v2395_v12  ;;  %v2490_v12 = vld [vmem:[#allocation5 + $0x1d0] sm:$0xff]  ;;  %2609 = vmatpush.msrb.mxu1 %v2489_v30 }
0x1524   :  { %v2352_v32 = vadd.f32 %v3513_v26, %v2351_v50  ;;  %2629 = vmatpush.msrb.mxu2 %v2490_v12  ;;  %2590 = vmatpush.msrb.mxu0 %v2480_v24  ;;  %v2464_v50 = vld [vmem:[#allocation5 + $0x100] sm:$0xff]  ;;  %v2510_v30 = vld [vmem:[#allocation5 + $0x270] sm:$0xff]  ;;  %v2511_v12 = vld [vmem:[#allocation5 + $0x278] sm:$0xff] }
0x1525   :  { %2610 = vmatpush.msrb.mxu1 %v2481_v21  ;;  %v2501_v24 = vld [vmem:[#allocation5 + $0x228] sm:$0xff]  ;;  %v2502_v21 = vld [vmem:[#allocation5 + $0x230] sm:$0xff] }
0x1526   :  { %v2356_v33 = vsel %vm2355_vm12, %v3513_v26, %v2352_v32  ;;  %2630 = vmatpush.msrb.mxu2 %v2482_v20  ;;  %v2473_v26 = vld [vmem:[#allocation5 + $0x148] sm:$0xff]  ;;  %2591 = vmatpush.msrb.mxu0 %v2472_v47  ;;  %v2503_v20 = vld [vmem:[#allocation5 + $0x238] sm:$0xff]  ;;  %v2492_v47 = vld [vmem:[#allocation5 + $0x1e0] sm:$0xff] }
0x1527   :  { %v2361_v10 = vsel %vm2358_vm13, %v2360_v43, %v2356_v33  ;;  %2611 = vmatpush.msrb.mxu1 %v2473_v26  ;;  %v2465_v32 = vld [vmem:[#allocation5 + $0x108] sm:$0xff]  ;;  %v2456_v33 = vld [vmem:[#allocation5 + $0xc0] sm:$0xff]  ;;  %vm3215_vm13 = vcmask 0  }
0x1528   :  { %v2401_v25 = vmul.f32 %v2399_v49, %v2361_v10  ;;  %2631 = vmatpush.msrb.mxu2 %v2474_v48  ;;  %2592 = vmatpush.msrb.mxu0 %v2464_v50  ;;  %v2457_v43 = vld [vmem:[#allocation5 + $0xc8] sm:$0xff]  ;;  %v2458_v10 = vld [vmem:[#allocation5 + $0xd0] sm:$0xff]  ;;  %v2278_v49 = vpop.f32.mrf.mxu2  ;;  %v2484_v50 = vld [vmem:[#allocation5 + $0x1a0] sm:$0xff] }
0x1529   :  { %2612 = vmatpush.msrb.mxu1 %v2465_v32  ;;  %v2307_v5 = vrot.slane %v2278_v49, 7  ;;  %v2493_v26 = vld [vmem:[#allocation5 + $0x1e8] sm:$0xff]  ;;  %v2494_v48 = vld [vmem:[#allocation5 + $0x1f0] sm:$0xff]  ;;  %v2476_v49 = vld [vmem:[#allocation5 + $0x160] sm:$0xff] }
0x152a   :  { %2632 = vmatpush.msrb.mxu2 %v2466_v7  ;;  %2593 = vmatpush.msrb.mxu0 %v2456_v33  ;;  %v2485_v32 = vld [vmem:[#allocation5 + $0x1a8] sm:$0xff]  ;;  %v2486_v33 = vld [vmem:[#allocation5 + $0x1b0] sm:$0xff] }
0x152b   :  { %2613 = vmatpush.msrb.mxu1 %v2457_v43  ;;  %v2315_v11 = vadd.f32 %v2307_v5, %v5541_v9  ;;  %v2543_v9 = vld [vmem:[#allocation5 + $0x378] sm:$0xff]  ;;  %v2469_v5 = vld [vmem:[#allocation5 + $0x128] sm:$0xff] }
0x152c   :  { %2633 = vmatpush.msrb.mxu2 %v2458_v10  ;;  %v2487_v43 = vld [vmem:[#allocation5 + $0x1b8] sm:$0xff] }
0x1596   :  { %v2397_v38 = vpop.xlane.xlu0 %2396 }
0x1597   :  { %v2402_v31 = vadd.f32 %v2401_v25, %v2397_v38  ;;  %v2459_v25 = vld [vmem:[#allocation5 + $0xd8] sm:$0xff]  ;;  %v2448_v38 = vld [vmem:[#allocation5 + $0x80] sm:$0xff] }
0x1598   :  { %2594 = vmatpush.msrb.mxu0 %v2448_v38  ;;  %v2478_v38 = vld [vmem:[#allocation5 + $0x170] sm:$0xff] }
0x1599   :  { %v2403_v52 = vmul.f32 %v5409_v8, %v2402_v31 }
0x159a   :  { %2595 = vmatpush.msrb.mxu0 %v2440_v0  ;;  %v2470_v0 = vld [vmem:[#allocation5 + $0x130] sm:$0xff] }
0x159b   :  { %v2404_v22 = vsel %vm691_vm14, %v2403_v52, 0.0  ;;  %v2450_v52 = vld [vmem:[#allocation5 + $0x90] sm:$0xff] }
0x159c   :  { %2405 = vadd.xlane.f32.xlu1 %v2404_v22  ;;  %v2451_v22 = vld [vmem:[#allocation5 + $0x98] sm:$0xff]  ;;  %2634 = vmatpush.msrb.mxu2 %v2450_v52 }
0x159d   :  { %2596 = vmatpush.msrb.mxu0 %v2432_v39  ;;  %v2461_v39 = vld [vmem:[#allocation5 + $0xe8] sm:$0xff] }
0x159e   :  { %2635 = vmatpush.msrb.mxu2 %v2442_v41 }
0x159f   :  { %2661 = vmatpush.msra.mxu0 %v2556_v62  ;;  %v2452_v62 = vld [vmem:[#allocation5 + $0xa0] sm:$0xff] }
0x15a0   :  { %2636 = vmatpush.msrb.mxu2 %v2434_v35 }
0x15a1   :  { %2662 = vmatpush.msra.mxu0 %v2548_v59  ;;  %v2444_v59 = vld [vmem:[#allocation5 + $0x60] sm:$0xff] }
0x15a2   :  { %2701 = vmatpush.msra.mxu2 %v2558_v23  ;;  %v2455_v23 = vld [vmem:[#allocation5 + $0xb8] sm:$0xff] }
0x15a3   :  { %2663 = vmatpush.msra.mxu0 %v2540_v13  ;;  %v2447_v13 = vld [vmem:[#allocation5 + $0x78] sm:$0xff] }
0x15a4   :  { %2702 = vmatpush.msra.mxu2 %v2550_v54 }
0x160f   :  { %v2406_v55 = vpop.xlane.xlu1 %2405 }
0x1610   :  { %v2407_v14 = vmul.f32 0.03125, %v2406_v55  ;;  %v2542_v55 = vld [vmem:[#allocation5 + $0x370] sm:$0xff] }
0x1611   :  { %2703 = vmatpush.msra.mxu2 %v2542_v55  ;;  %v2436_v55 = vld [vmem:[#allocation5 + $0x20] sm:$0xff] }
0x1612   :  { %v2408_v60 = vsub.f32 %v2402_v31, %v2407_v14  ;;  %v2449_v31 = vld [vmem:[#allocation5 + $0x88] sm:$0xff]  ;;  %v3290_v14 = vmul.f32 -1.442695, %v2315_v11  ;;  %v2454_v11 = vld [vmem:[#allocation5 + $0xb0] sm:$0xff] }
0x1613   :  { %2614 = vmatpush.msrb.mxu1 %v2449_v31  ;;  %v2479_v31 = vld [vmem:[#allocation5 + $0x178] sm:$0xff] }
0x1614   :  { %v5085_v46 = vmul.f32 %v5409_v8, %v2408_v60  ;;  %v2507_v8 = vld [vmem:[#allocation5 + $0x258] sm:$0xff]  ;;  %v2532_v60 = vld [vmem:[#allocation5 + $0x320] sm:$0xff]  ;;  %3514 = vpow2.f32 %v3290_v14  ;;  %v2437_v14 = vld [vmem:[#allocation5 + $0x28] sm:$0xff] }
0x1615   :  { %2647 = vmatpush.msrb.mxu3 %v2507_v8  ;;  %2615 = vmatpush.msrb.mxu1 %v2441_v3  ;;  %v2516_v8 = vld [vmem:[#allocation5 + $0x2a0] sm:$0xff]  ;;  %v2471_v3 = vld [vmem:[#allocation5 + $0x138] sm:$0xff] }
0x1616   :  { %v2410_v51 = vmul.f32 %v5085_v46, %v5085_v46  ;;  %2664 = vmatpush.msra.mxu0 %v2532_v60  ;;  %v2438_v60 = vld [vmem:[#allocation5 + $0x30] sm:$0xff] }
0x1617   :  { %2648 = vmatpush.msrb.mxu3 %v2499_v42  ;;  %2616 = vmatpush.msrb.mxu1 %v2433_v4  ;;  %v2508_v42 = vld [vmem:[#allocation5 + $0x260] sm:$0xff]  ;;  %v2462_v4 = vld [vmem:[#allocation5 + $0xf0] sm:$0xff] }
0x1618   :  { %v2411_v34 = vsel %vm691_vm14, %v2410_v51, 0.0  ;;  %v2533_v51 = vld [vmem:[#allocation5 + $0x328] sm:$0xff]  ;;  %2665 = vmatpush.msra.mxu0 %v2524_v56 }
0x1619   :  { %2412 = vadd.xlane.f32.xlu2 %v2411_v34  ;;  %2649 = vmatpush.msrb.mxu3 %v2491_v45  ;;  %v2534_v34 = vld [vmem:[#allocation5 + $0x330] sm:$0xff]  ;;  %v2500_v45 = vld [vmem:[#allocation5 + $0x220] sm:$0xff] }
0x161a   :  { %2681 = vmatpush.msra.mxu1 %v2557_v61  ;;  %2704 = vmatpush.msra.mxu2 %v2534_v34  ;;  %v2453_v61 = vld [vmem:[#allocation5 + $0xa8] sm:$0xff] }
0x161b   :  { %2650 = vmatpush.msrb.mxu3 %v2483_v29  ;;  %2666 = vmatpush.msra.mxu0 %v2516_v8  ;;  %v3515_v29 = vpop.eup %3514 }
0x161c   :  { %2682 = vmatpush.msra.mxu1 %v2549_v40  ;;  %2705 = vmatpush.msra.mxu2 %v2526_v37  ;;  %v2445_v40 = vld [vmem:[#allocation5 + $0x68] sm:$0xff] }
0x161d   :  { %2651 = vmatpush.msrb.mxu3 %v2475_v16  ;;  %2667 = vmatpush.msra.mxu0 %v2508_v42  ;;  %v2495_v16 = vld [vmem:[#allocation5 + $0x1f8] sm:$0xff] }
0x161e   :  { %2683 = vmatpush.msra.mxu1 %v2541_v63  ;;  %2706 = vmatpush.msra.mxu2 %v2518_v19 }
0x161f   :  { %2652 = vmatpush.msrb.mxu3 %v2467_v44  ;;  %2668 = vmatpush.msra.mxu0 %v2500_v45  ;;  %v5094_v44 = vadd.f32 1.0, %v3515_v29 }
0x1620   :  { %2684 = vmatpush.msra.mxu1 %v2533_v51  ;;  %2707 = vmatpush.msra.mxu2 %v2510_v30  ;;  %v2439_v51 = vld [vmem:[#allocation5 + $0x38] sm:$0xff] }
0x1621   :  { %2653 = vmatpush.msrb.mxu3 %v2459_v25  ;;  %2669 = vmatpush.msra.mxu0 %v2492_v47  ;;  %v2477_v25 = vld [vmem:[#allocation5 + $0x168] sm:$0xff]  ;;  %v2374_v19 = vand.u32 2147483648, %v5094_v44  ;;  %vm2368_vm2 = vweird.f32 %v5094_v44 }
0x1622   :  { %2685 = vmatpush.msra.mxu1 %v2525_v27  ;;  %2708 = vmatpush.msra.mxu2 %v2502_v21 }
0x1623   :  { %2654 = vmatpush.msrb.mxu3 %v2451_v22  ;;  %2670 = vmatpush.msra.mxu0 %v2484_v50  ;;  %v2468_v22 = vld [vmem:[#allocation5 + $0x120] sm:$0xff]  ;;  %v2375_v42 = vor.u32 1.1754944e-38, %v2374_v19  ;;  %v2951_v19 = vld [vmem:[#allocation8 + $0x1e8] sm:$0xff] }
0x1624   :  { %2686 = vmatpush.msra.mxu1 %v2517_v36  ;;  %2709 = vmatpush.msra.mxu2 %v2494_v48 }
0x1625   :  { %2655 = vmatpush.msrb.mxu3 %v2443_v1  ;;  %2671 = vmatpush.msra.mxu0 %v2476_v49  ;;  %v2460_v1 = vld [vmem:[#allocation5 + $0xe0] sm:$0xff] }
0x1626   :  { %2687 = vmatpush.msra.mxu1 %v2509_v15  ;;  %2710 = vmatpush.msra.mxu2 %v2486_v33 }
0x1627   :  { %2656 = vmatpush.msrb.mxu3 %v2435_v18  ;;  %2672 = vmatpush.msra.mxu0 %v2468_v22  ;;  %v2463_v18 = vld [vmem:[#allocation5 + $0xf8] sm:$0xff] }
0x1628   :  { %2688 = vmatpush.msra.mxu1 %v2501_v24  ;;  %2711 = vmatpush.msra.mxu2 %v2478_v38  ;;  %v5542_v38 = vld [vmem:[#allocation35_spill] sm:$0xff] }
0x1629   :  { %2721 = vmatpush.msra.mxu3 %v2559_v57  ;;  %2673 = vmatpush.msra.mxu0 %v2460_v1  ;;  %vm127_vm9 = vcmp.lt.s32.totalorder %v5542_v38, 100 }
0x162a   :  { %2689 = vmatpush.msra.mxu1 %v2493_v26  ;;  %2712 = vmatpush.msra.mxu2 %v2470_v0 }
0x162b   :  { %2722 = vmatpush.msra.mxu3 %v2551_v53  ;;  %2674 = vmatpush.msra.mxu0 %v2452_v62  ;;  %v2446_v53 = vld [vmem:[#allocation5 + $0x70] sm:$0xff] }
0x162c   :  { %2690 = vmatpush.msra.mxu1 %v2485_v32  ;;  %2713 = vmatpush.msra.mxu2 %v2462_v4 }
0x162d   :  { %2723 = vmatpush.msra.mxu3 %v2543_v9  ;;  %2675 = vmatpush.msra.mxu0 %v2444_v59 }
0x162e   :  { %2691 = vmatpush.msra.mxu1 %v2477_v25  ;;  %2714 = vmatpush.msra.mxu2 %v2454_v11  ;;  %v5543_v11 = vmov 0.0  }
0x162f   :  { %2724 = vmatpush.msra.mxu3 %v2535_v6  ;;  %2676 = vmatpush.msra.mxu0 %v2436_v55 }
0x1630   :  { %2692 = vmatpush.msra.mxu1 %v2469_v5  ;;  %2715 = vmatpush.msra.mxu2 %v2446_v53 }
0x1631   :  { %2725 = vmatpush.msra.mxu3 %v2527_v58 }
0x1632   :  { %2693 = vmatpush.msra.mxu1 %v2461_v39  ;;  %2716 = vmatpush.msra.mxu2 %v2438_v60  ;;  %v2905_v60 = vld [vmem:[#allocation8 + $0x78] sm:$0xff] }
0x1633   :  { %2726 = vmatpush.msra.mxu3 %v2519_v28 }
0x1634   :  { %2694 = vmatpush.msra.mxu1 %v2453_v61 }
0x1635   :  { %2727 = vmatpush.msra.mxu3 %v2511_v12 }
0x1636   :  { %2695 = vmatpush.msra.mxu1 %v2445_v40 }
0x1637   :  { %2728 = vmatpush.msra.mxu3 %v2503_v20 }
0x1638   :  { %2696 = vmatpush.msra.mxu1 %v2437_v14 }
0x1639   :  { %2729 = vmatpush.msra.mxu3 %v2495_v16 }
0x163b   :  { %2730 = vmatpush.msra.mxu3 %v2487_v43 }
0x163d   :  { %2731 = vmatpush.msra.mxu3 %v2479_v31  ;;  %v102_v31 = vadd.s32 896, %v5542_v38 }
0x163f   :  { %2732 = vmatpush.msra.mxu3 %v2471_v3  ;;  %vm110_vm5 = vcmp.lt.s32.totalorder %v102_v31, 1000  ;;  %v2947_v31 = vld [vmem:[#allocation8 + $0x1c8] sm:$0xff] }
0x1641   :  { %2733 = vmatpush.msra.mxu3 %v2463_v18 }
0x1643   :  { %2734 = vmatpush.msra.mxu3 %v2455_v23  ;;  %v5132_v23 = vsel %vm110_vm5, 1.0, %v5543_v11 }
0x1645   :  { %2735 = vmatpush.msra.mxu3 %v2447_v13 }
0x1647   :  { %2736 = vmatpush.msra.mxu3 %v2439_v51  ;;  %v2921_v51 = vld [vmem:[#allocation8 + $0xf8] sm:$0xff] }
0x168c   :  { %v2413_v2 = vpop.xlane.xlu2 %2412 }
0x168d   :  { %v5091_v17 = vmul.f32 0.032258064, %v2413_v2 }
0x168f   :  { %3516 = vrsqrt.f32 %v5091_v17  ;;  %vm2422_vm14 = vcmp.eq.f32.partialorder %v5091_v17, inf  ;;  %v2425_v9 = vand.u32 2147483648, %v5091_v17  ;;  %vm2424_vm15 = vcmp.eq.f32.partialorder %v5091_v17, 0.0 }
0x1690   :  { %3518 = vrcp.f32 %v5094_v44 }
0x1695   :  { %v3517_v7 = vpop.eup %3516 }
0x1696   :  { %v2416_v10 = vmul.f32 %v3517_v7, %v5091_v17  ;;  %v3519_v54 = vpop.eup %3518 }
0x1697   :  { %v2364_v34 = vmul.f32 %v3519_v54, %v5094_v44  ;;  %vm2369_vm1 = vweird.f32 %v3519_v54 }
0x1698   :  { %v2417_v52 = vmul.f32 %v3517_v7, %v2416_v10  ;;  %vm2370_vm3 = vmor %vm2368_vm2, %vm2369_vm1 }
0x1699   :  { %v2365_v37 = vsub.f32 1.0, %v2364_v34  ;;  %v2937_v34 = vld [vmem:[#allocation8 + $0x178] sm:$0xff] }
0x169a   :  { %v2418_v41 = vmul.f32 0.5, %v2417_v52 }
0x169b   :  { %v2366_v2 = vmul.f32 %v3519_v54, %v2365_v37  ;;  %v2936_v37 = vld [vmem:[#allocation8 + $0x170] sm:$0xff] }
0x169c   :  { %v2419_v35 = vsub.f32 1.5, %v2418_v41 }
0x169d   :  { %v2367_v36 = vadd.f32 %v3519_v54, %v2366_v2  ;;  %v2952_v2 = vld [vmem:[#allocation8 + $0x1f0] sm:$0xff] }
0x169e   :  { %v2420_v57 = vmul.f32 %v3517_v7, %v2419_v35 }
0x169f   :  { %v2371_v28 = vsel %vm2370_vm3, %v3519_v54, %v2367_v36  ;;  %v2935_v36 = vld [vmem:[#allocation8 + $0x168] sm:$0xff] }
0x16a0   :  { %v2421_v63 = vmul.f32 %v2420_v57, %v5091_v17 }
0x16a2   :  { %v2423_v6 = vsel %vm2422_vm14, %v5091_v17, %v2421_v63  ;;  %v2372_v17 = vand.u32 2147483647, %v5094_v44 }
0x16a3   :  { %v2426_v56 = vsel %vm2424_vm15, %v2425_v9, %v2423_v6  ;;  %v2953_v6 = vld [vmem:[#allocation8 + $0x1f8] sm:$0xff] }
0x16a4   :  { %v2427_v27 = vadd.f32 1e-05, %v2426_v56  ;;  %vm2373_vm4 = vcmp.eq.f32.partialorder %v2372_v17, 8.507059e+37  ;;  %v2904_v56 = vld [vmem:[#allocation8 + $0x70] sm:$0xff]  ;;  %v2902_v17 = vld [vmem:[#allocation8 + $0x60] sm:$0xff] }
0x16a5   :  { %v2376_v30 = vsel %vm2373_vm4, %v2375_v42, %v2371_v28  ;;  %v2918_v28 = vld [vmem:[#allocation8 + $0xe0] sm:$0xff] }
0x16a6   :  { %3520 = vrcp.f32 %v2427_v27  ;;  %v2920_v27 = vld [vmem:[#allocation8 + $0xf0] sm:$0xff]  ;;  %v2934_v42 = vld [vmem:[#allocation8 + $0x160] sm:$0xff] }
0x16ac   :  { %v3521_v58 = vpop.eup %3520 }
0x16ad   :  { %v2429_v8 = vmul.f32 %v3521_v58, %v5085_v46  ;;  %v2560_v46 = vld [vmem:[#allocation7] ss:$4 sm:$0xff] }
0x16ae   :  { %v2565_v24 = vperm.slane %v2560_v46, 0  ;;  %v2566_v21 = vperm.slane %v2560_v46, 1  ;;  %v2567_v48 = vperm.slane %v2560_v46, 2  ;;  %v2568_v16 = vperm.slane %v2560_v46, 3  ;;  %v2903_v58 = vld [vmem:[#allocation8 + $0x68] sm:$0xff] }
0x16af   :  { %3522 = vtanh.f32 %v2429_v8  ;;  %v2569_v7 = vperm.slane %v2560_v46, 4  ;;  %v2570_v25 = vperm.slane %v2560_v46, 5  ;;  %v2571_v41 = vperm.slane %v2560_v46, 6  ;;  %v2919_v8 = vld [vmem:[#allocation8 + $0xe8] sm:$0xff] }
0x16b0   :  { %v2572_v4 = vperm.slane %v2560_v46, 7  ;;  %v2949_v46 = vld [vmem:[#allocation8 + $0x1d8] sm:$0xff] }
0x16b5   :  { %v3523_v15 = vpop.eup %3522 }
0x16b6   :  { %v2431_v12 = vmul.f32 %v3523_v15, %v2376_v30  ;;  %v2950_v15 = vld [vmem:[#allocation8 + $0x1e0] sm:$0xff]  ;;  %v2901_v30 = vld [vmem:[#allocation8 + $0x58] sm:$0xff] }
0x16b8   :  { %v2562_v45 = vrot.slane %v2431_v12, 1  ;;  %v2917_v12 = vld [vmem:[#allocation8 + $0xd8] sm:$0xff] }
0x16ba   :  { %2597 = vmatmul.f32.vlgmr.msrb.gmra.mxu0 %v2562_v45  ;;  %2617 = vmatmul.f32.vlgmr.msrb.gmra.mxu1 %v2562_v45 }
0x16bb   :  { %2637 = vmatmul.f32.vlgmr.msrb.gmra.mxu2 %v2562_v45  ;;  %2657 = vmatmul.f32.vlgmr.msrb.gmra.mxu3 %v2562_v45 }
0x16bc   :  { %3019 = vmatpush.msrb.mxu0 %v2905_v60  ;;  %3039 = vmatpush.msrb.mxu1 %v2921_v51  ;;  %v2895_v60 = vld [vmem:[#allocation8 + $0x28] sm:$0xff] }
0x16bd   :  { %3059 = vmatpush.msrb.mxu2 %v2937_v34  ;;  %3079 = vmatpush.msrb.mxu3 %v2953_v6  ;;  %v2911_v51 = vld [vmem:[#allocation8 + $0xa8] sm:$0xff] }
0x16be   :  { %3020 = vmatpush.msrb.mxu0 %v2904_v56  ;;  %3040 = vmatpush.msrb.mxu1 %v2920_v27  ;;  %v2927_v56 = vld [vmem:[#allocation8 + $0x128] sm:$0xff] }
0x16bf   :  { %3060 = vmatpush.msrb.mxu2 %v2936_v37  ;;  %3080 = vmatpush.msrb.mxu3 %v2952_v2  ;;  %v2943_v27 = vld [vmem:[#allocation8 + $0x1a8] sm:$0xff]  ;;  %v2894_v2 = vld [vmem:[#allocation8 + $0x20] sm:$0xff] }
0x16c0   :  { %3021 = vmatpush.msrb.mxu0 %v2903_v58  ;;  %3041 = vmatpush.msrb.mxu1 %v2919_v8  ;;  %v2910_v58 = vld [vmem:[#allocation8 + $0xa0] sm:$0xff] }
0x16c1   :  { %3061 = vmatpush.msrb.mxu2 %v2935_v36  ;;  %3081 = vmatpush.msrb.mxu3 %v2951_v19  ;;  %v2926_v36 = vld [vmem:[#allocation8 + $0x120] sm:$0xff] }
0x16c2   :  { %2677 = vmatmul.f32.vlgmr.msra.gmra.mxu0 %v2562_v45  ;;  %2697 = vmatmul.f32.vlgmr.msra.gmra.mxu1 %v2562_v45  ;;  %v2942_v19 = vld [vmem:[#allocation8 + $0x1a0] sm:$0xff] }
0x16c3   :  { %2717 = vmatmul.f32.vlgmr.msra.gmra.mxu2 %v2562_v45  ;;  %2737 = vmatmul.f32.vlgmr.msra.gmra.mxu3 %v2562_v45  ;;  %v2933_v45 = vld [vmem:[#allocation8 + $0x158] sm:$0xff] }
0x16c4   :  { %3022 = vmatpush.msrb.mxu0 %v2902_v17  ;;  %3042 = vmatpush.msrb.mxu1 %v2918_v28 }
0x16c5   :  { %3062 = vmatpush.msrb.mxu2 %v2934_v42  ;;  %3082 = vmatpush.msrb.mxu3 %v2950_v15 }
0x16c6   :  { %3023 = vmatpush.msrb.mxu0 %v2901_v30  ;;  %3043 = vmatpush.msrb.mxu1 %v2917_v12 }
0x16c7   :  { %3063 = vmatpush.msrb.mxu2 %v2933_v45  ;;  %3083 = vmatpush.msrb.mxu3 %v2949_v46 }
0x1737   :  { %v2598_v20 = vpop.f32.mrf.mxu0  ;;  %v2618_v29 = vpop.f32.mrf.mxu1 }
0x1738   :  { %v5108_v47 = vadd.f32 %v2598_v20, %v2565_v24  ;;  %v5110_v26 = vadd.f32 %v2618_v29, %v2566_v21  ;;  %v2900_v24 = vld [vmem:[#allocation8 + $0x50] sm:$0xff] }
0x1739   :  { %v2916_v21 = vld [vmem:[#allocation8 + $0xd0] sm:$0xff]  ;;  %3024 = vmatpush.msrb.mxu0 %v2900_v24  ;;  %v2893_v24 = vld [vmem:[#allocation8 + $0x18] sm:$0xff] }
0x173a   :  { %v2749_v50 = vsel %vm156_vm0, %v5108_v47, 0.0  ;;  %v2750_v32 = vsel %vm156_vm0, %v5110_v26, 0.0  ;;  %v2932_v20 = vld [vmem:[#allocation8 + $0x150] sm:$0xff]  ;;  %3044 = vmatpush.msrb.mxu1 %v2916_v21  ;;  %v2909_v21 = vld [vmem:[#allocation8 + $0x98] sm:$0xff] }
0x173b   :  { %v2751_v52 = vadd.f32 %v2750_v32, %v2749_v50  ;;  %v2948_v29 = vld [vmem:[#allocation8 + $0x1d0] sm:$0xff]  ;;  %v2915_v32 = vld [vmem:[#allocation8 + $0xc8] sm:$0xff]  ;;  %3064 = vmatpush.msrb.mxu2 %v2932_v20  ;;  %v2925_v20 = vld [vmem:[#allocation8 + $0x118] sm:$0xff] }
0x173c   :  { %3084 = vmatpush.msrb.mxu3 %v2948_v29  ;;  %3045 = vmatpush.msrb.mxu1 %v2915_v32  ;;  %v2941_v29 = vld [vmem:[#allocation8 + $0x198] sm:$0xff]  ;;  %v2940_v32 = vld [vmem:[#allocation8 + $0x190] sm:$0xff] }
0x173e   :  { %v2638_v44 = vpop.f32.mrf.mxu2  ;;  %v2658_v33 = vpop.f32.mrf.mxu3  ;;  %3085 = vmatpush.msrb.mxu3 %v2947_v31  ;;  %v2907_v31 = vld [vmem:[#allocation8 + $0x88] sm:$0xff] }
0x173f   :  { %v5116_v43 = vadd.f32 %v2638_v44, %v2567_v48  ;;  %v5118_v10 = vadd.f32 %v2658_v33, %v2568_v16  ;;  %v2678_v49 = vpop.f32.mrf.mxu0  ;;  %v2698_v22 = vpop.f32.mrf.mxu1  ;;  %v2899_v16 = vld [vmem:[#allocation8 + $0x48] sm:$0xff] }
0x1740   :  { %v5123_v0 = vadd.f32 %v2678_v49, %v2569_v7  ;;  %v5127_v39 = vadd.f32 %v2698_v22, %v2570_v25  ;;  %v2931_v7 = vld [vmem:[#allocation8 + $0x148] sm:$0xff]  ;;  %3025 = vmatpush.msrb.mxu0 %v2899_v16  ;;  %v2914_v22 = vld [vmem:[#allocation8 + $0xc0] sm:$0xff]  ;;  %v2908_v16 = vld [vmem:[#allocation8 + $0x90] sm:$0xff] }
0x1741   :  { %v2752_v5 = vsel %vm156_vm0, %v5116_v43, 0.0  ;;  %v2754_v1 = vsel %vm156_vm0, %v5118_v10, 0.0  ;;  %3065 = vmatpush.msrb.mxu2 %v2931_v7  ;;  %3046 = vmatpush.msrb.mxu1 %v2914_v22  ;;  %v2891_v7 = vld [vmem:[#allocation8 + $0x8] sm:$0xff] }
0x1742   :  { %v2753_v3 = vadd.f32 %v2752_v5, %v2751_v52  ;;  %v2756_v18 = vsel %vm156_vm0, %v5123_v0, 0.0  ;;  %v2758_v59 = vsel %vm156_vm0, %v5127_v39, 0.0  ;;  %v2898_v52 = vld [vmem:[#allocation8 + $0x40] sm:$0xff]  ;;  %v2939_v22 = vld [vmem:[#allocation8 + $0x188] sm:$0xff] }
0x1743   :  { %3026 = vmatpush.msrb.mxu0 %v2898_v52  ;;  %v2923_v52 = vld [vmem:[#allocation8 + $0x108] sm:$0xff] }
0x1744   :  { %v2755_v35 = vadd.f32 %v2754_v1, %v2753_v3  ;;  %v2946_v3 = vld [vmem:[#allocation8 + $0x1c0] sm:$0xff]  ;;  %v2897_v1 = vld [vmem:[#allocation8 + $0x38] sm:$0xff] }
0x1745   :  { %3086 = vmatpush.msrb.mxu3 %v2946_v3  ;;  %3027 = vmatpush.msrb.mxu0 %v2897_v1  ;;  %v2969_v3 = vld [vmem:[#allocation8 + $0x278] sm:$0xff] }
0x1746   :  { %v2757_v62 = vadd.f32 %v2756_v18, %v2755_v35  ;;  %v2718_v61 = vpop.f32.mrf.mxu2  ;;  %v2738_v57 = vpop.f32.mrf.mxu3  ;;  %v2985_v1 = vld [vmem:[#allocation8 + $0x2f8] sm:$0xff] }
0x1747   :  { %v5136_v40 = vadd.f32 %v2718_v61, %v2571_v41  ;;  %v5138_v54 = vadd.f32 %v2738_v57, %v2572_v4  ;;  %v2913_v4 = vld [vmem:[#allocation8 + $0xb8] sm:$0xff] }
0x1748   :  { %v2759_v53 = vadd.f32 %v2758_v59, %v2757_v62  ;;  %v2929_v61 = vld [vmem:[#allocation8 + $0x138] sm:$0xff]  ;;  %3047 = vmatpush.msrb.mxu1 %v2913_v4 }
0x1749   :  { %v2760_v13 = vsel %vm156_vm0, %v5136_v40, 0.0  ;;  %v2748_v63 = vmul.f32 %v5132_v23, %v5138_v54  ;;  %v2945_v57 = vld [vmem:[#allocation8 + $0x1b8] sm:$0xff] }
0x174a   :  { %v2761_v55 = vadd.f32 %v2760_v13, %v2759_v53  ;;  %v2912_v53 = vld [vmem:[#allocation8 + $0xb0] sm:$0xff]  ;;  %3087 = vmatpush.msrb.mxu3 %v2945_v57  ;;  %v3001_v4 = vld [vmem:[#allocation8 + $0x378] sm:$0xff]  ;;  %v2967_v57 = vld [vmem:[#allocation8 + $0x268] sm:$0xff] }
0x174b   :  { %v2762_v14 = vsel %vm156_vm0, %v2748_v63, 0.0  ;;  %3048 = vmatpush.msrb.mxu1 %v2912_v53  ;;  %v3015_v53 = vld [vmem:[#allocation8 + $0x3e8] sm:$0xff] }
0x174c   :  { %v2763_v9 = vadd.f32 %v2762_v14, %v2761_v55  ;;  %v2928_v55 = vld [vmem:[#allocation8 + $0x130] sm:$0xff] }
0x174d   :  { %v2944_v14 = vld [vmem:[#allocation8 + $0x1b0] sm:$0xff]  ;;  %3049 = vmatpush.msrb.mxu1 %v2911_v51  ;;  %v2997_v51 = vld [vmem:[#allocation8 + $0x358] sm:$0xff] }
0x174e   :  { %2764 = vadd.xlane.f32.xlu0 %v2763_v9  ;;  %3088 = vmatpush.msrb.mxu3 %v2944_v14  ;;  %v3014_v14 = vld [vmem:[#allocation8 + $0x3e0] sm:$0xff] }
0x174f   :  { %3050 = vmatpush.msrb.mxu1 %v2910_v58  ;;  %v2979_v58 = vld [vmem:[#allocation8 + $0x2c8] sm:$0xff] }
0x1750   :  { %3089 = vmatpush.msrb.mxu3 %v2943_v27  ;;  %v2996_v27 = vld [vmem:[#allocation8 + $0x350] sm:$0xff] }
0x1751   :  { %3051 = vmatpush.msrb.mxu1 %v2909_v21  ;;  %v3008_v21 = vld [vmem:[#allocation8 + $0x3b0] sm:$0xff] }
0x1752   :  { %3090 = vmatpush.msrb.mxu3 %v2942_v19  ;;  %v2978_v19 = vld [vmem:[#allocation8 + $0x2c0] sm:$0xff] }
0x1753   :  { %3052 = vmatpush.msrb.mxu1 %v2908_v16  ;;  %v3007_v16 = vld [vmem:[#allocation8 + $0x3a8] sm:$0xff] }
0x1754   :  { %3091 = vmatpush.msrb.mxu3 %v2941_v29  ;;  %v2975_v29 = vld [vmem:[#allocation8 + $0x2a8] sm:$0xff] }
0x1755   :  { %3053 = vmatpush.msrb.mxu1 %v2907_v31  ;;  %v3006_v31 = vld [vmem:[#allocation8 + $0x3a0] sm:$0xff] }
0x1756   :  { %3092 = vmatpush.msrb.mxu3 %v2940_v32  ;;  %v2974_v32 = vld [vmem:[#allocation8 + $0x2a0] sm:$0xff] }
0x1758   :  { %3093 = vmatpush.msrb.mxu3 %v2939_v22  ;;  %v2957_v22 = vld [vmem:[#allocation8 + $0x218] sm:$0xff] }
0x17c1   :  { %v2765_v48 = vpop.xlane.xlu0 %2764 }
0x17c2   :  { %v2766_v50 = vmul.f32 0.001, %v2765_v48  ;;  %v2892_v48 = vld [vmem:[#allocation8 + $0x10] sm:$0xff] }
0x17c4   :  { %v5146_v44 = vsub.f32 %v5108_v47, %v2766_v50  ;;  %v5149_v33 = vsub.f32 %v5110_v26, %v2766_v50  ;;  %v5152_v49 = vsub.f32 %v5116_v43, %v2766_v50  ;;  %v5155_v25 = vsub.f32 %v5118_v10, %v2766_v50  ;;  %v2930_v10 = vld [vmem:[#allocation8 + $0x140] sm:$0xff] }
0x17c5   :  { %v5158_v5 = vsub.f32 %v5123_v0, %v2766_v50  ;;  %v5167_v41 = vsub.f32 %v5127_v39, %v2766_v50  ;;  %v2774_v0 = vsub.f32 %v5138_v54, %v2766_v50  ;;  %3066 = vmatpush.msrb.mxu2 %v2930_v10  ;;  %v2896_v39 = vld [vmem:[#allocation8 + $0x30] sm:$0xff]  ;;  %v5175_v13 = vsub.f32 %v5136_v40, %v2766_v50  ;;  %v2938_v10 = vld [vmem:[#allocation8 + $0x180] sm:$0xff] }
0x17c6   :  { %v2783_v47 = vmul.f32 %v5146_v44, %v5146_v44  ;;  %v2784_v26 = vmul.f32 %v5149_v33, %v5149_v33  ;;  %v2785_v43 = vmul.f32 %v5152_v49, %v5152_v49  ;;  %v2786_v35 = vmul.f32 %v5155_v25, %v5155_v25  ;;  %3028 = vmatpush.msrb.mxu0 %v2896_v39  ;;  %v2924_v50 = vld [vmem:[#allocation8 + $0x110] sm:$0xff]  ;;  %v2999_v39 = vld [vmem:[#allocation8 + $0x368] sm:$0xff] }
0x17c7   :  { %v2787_v54 = vmul.f32 %v5158_v5, %v5158_v5  ;;  %3067 = vmatpush.msrb.mxu2 %v2929_v61  ;;  %v5181_v34 = vmul.f32 %v5132_v23, %v2774_v0  ;;  %v2788_v40 = vmul.f32 %v5167_v41, %v5167_v41  ;;  %v2789_v8 = vmul.f32 %v5175_v13, %v5175_v13  ;;  %v3017_v0 = vld [vmem:[#allocation8 + $0x3f8] sm:$0xff]  ;;  %v3016_v61 = vld [vmem:[#allocation8 + $0x3f0] sm:$0xff] }
0x17c8   :  { %v2791_v18 = vsel %vm156_vm0, %v2783_v47, 0.0  ;;  %v2792_v62 = vsel %vm156_vm0, %v2784_v26, 0.0  ;;  %v2794_v63 = vsel %vm156_vm0, %v2785_v43, 0.0  ;;  %v2796_v6 = vsel %vm156_vm0, %v2786_v35, 0.0  ;;  %3029 = vmatpush.msrb.mxu0 %v2895_v60  ;;  %v2890_v47 = vld [vmem:[#allocation8] sm:$0xff]  ;;  %3094 = vmatpush.msrb.mxu3 %v2938_v10  ;;  %v2968_v35 = vld [vmem:[#allocation8 + $0x270] sm:$0xff] }
0x17c9   :  { %v2793_v59 = vadd.f32 %v2792_v62, %v2791_v18  ;;  %3068 = vmatpush.msrb.mxu2 %v2928_v55  ;;  %v2798_v23 = vsel %vm156_vm0, %v2787_v54, 0.0  ;;  %v2790_v28 = vmul.f32 %v5181_v34, %v5181_v34  ;;  %v2800_v42 = vsel %vm156_vm0, %v2788_v40, 0.0  ;;  %v2906_v26 = vld [vmem:[#allocation8 + $0x80] sm:$0xff]  ;;  %v2984_v18 = vld [vmem:[#allocation8 + $0x2f0] sm:$0xff]  ;;  %v2981_v60 = vld [vmem:[#allocation8 + $0x2d8] sm:$0xff] }
0x17ca   :  { %3030 = vmatpush.msrb.mxu0 %v2894_v2  ;;  %v2802_v30 = vsel %vm156_vm0, %v2789_v8, 0.0  ;;  %v2922_v43 = vld [vmem:[#allocation8 + $0x100] sm:$0xff]  ;;  %3054 = vmatpush.msrb.mxu1 %v2906_v26  ;;  %v3000_v62 = vld [vmem:[#allocation8 + $0x370] sm:$0xff]  ;;  %v3013_v40 = vld [vmem:[#allocation8 + $0x3d8] sm:$0xff] }
0x17cb   :  { %v2795_v9 = vadd.f32 %v2794_v63, %v2793_v59  ;;  %3069 = vmatpush.msrb.mxu2 %v2927_v56  ;;  %v2804_v45 = vsel %vm156_vm0, %v2790_v28, 0.0  ;;  %3159 = vmatpush.msra.mxu3 %v3017_v0  ;;  %v2983_v59 = vld [vmem:[#allocation8 + $0x2e8] sm:$0xff]  ;;  %v2966_v54 = vld [vmem:[#allocation8 + $0x260] sm:$0xff]  ;;  %v2980_v56 = vld [vmem:[#allocation8 + $0x2d0] sm:$0xff] }
0x17cc   :  { %3031 = vmatpush.msrb.mxu0 %v2893_v24  ;;  %3119 = vmatpush.msra.mxu1 %v2985_v1  ;;  %v2982_v63 = vld [vmem:[#allocation8 + $0x2e0] sm:$0xff]  ;;  %v2963_v2 = vld [vmem:[#allocation8 + $0x248] sm:$0xff]  ;;  %v2992_v24 = vld [vmem:[#allocation8 + $0x330] sm:$0xff] }
0x17cd   :  { %v2797_v37 = vadd.f32 %v2796_v6, %v2795_v9  ;;  %3070 = vmatpush.msrb.mxu2 %v2926_v36  ;;  %3160 = vmatpush.msra.mxu3 %v3016_v61  ;;  %v2998_v55 = vld [vmem:[#allocation8 + $0x360] sm:$0xff]  ;;  %v2965_v9 = vld [vmem:[#allocation8 + $0x258] sm:$0xff]  ;;  %v2964_v6 = vld [vmem:[#allocation8 + $0x250] sm:$0xff] }
0x17ce   :  { %3032 = vmatpush.msrb.mxu0 %v2892_v48  ;;  %3120 = vmatpush.msra.mxu1 %v2984_v18  ;;  %v2995_v8 = vld [vmem:[#allocation8 + $0x348] sm:$0xff]  ;;  %v2962_v36 = vld [vmem:[#allocation8 + $0x240] sm:$0xff]  ;;  %v3005_v10 = vld [vmem:[#allocation8 + $0x398] sm:$0xff] }
0x17cf   :  { %v2799_v17 = vadd.f32 %v2798_v23, %v2797_v37  ;;  %3071 = vmatpush.msrb.mxu2 %v2925_v20  ;;  %3161 = vmatpush.msra.mxu3 %v3015_v53  ;;  %v3012_v37 = vld [vmem:[#allocation8 + $0x3d0] sm:$0xff]  ;;  %v3011_v23 = vld [vmem:[#allocation8 + $0x3c8] sm:$0xff]  ;;  %v3010_v28 = vld [vmem:[#allocation8 + $0x3c0] sm:$0xff] }
0x17d0   :  { %3033 = vmatpush.msrb.mxu0 %v2891_v7  ;;  %3121 = vmatpush.msra.mxu1 %v2983_v59  ;;  %v2959_v20 = vld [vmem:[#allocation8 + $0x228] sm:$0xff]  ;;  %v2990_v7 = vld [vmem:[#allocation8 + $0x320] sm:$0xff]  ;;  %v2972_v1 = vld [vmem:[#allocation8 + $0x290] sm:$0xff] }
0x17d1   :  { %v2801_v15 = vadd.f32 %v2800_v42, %v2799_v17  ;;  %3072 = vmatpush.msrb.mxu2 %v2924_v50  ;;  %3162 = vmatpush.msra.mxu3 %v3014_v14  ;;  %v2994_v17 = vld [vmem:[#allocation8 + $0x340] sm:$0xff]  ;;  %v2961_v42 = vld [vmem:[#allocation8 + $0x238] sm:$0xff]  ;;  %v2991_v48 = vld [vmem:[#allocation8 + $0x328] sm:$0xff] }
0x17d2   :  { %3034 = vmatpush.msrb.mxu0 %v2890_v47  ;;  %3122 = vmatpush.msra.mxu1 %v2982_v63  ;;  %v2958_v50 = vld [vmem:[#allocation8 + $0x220] sm:$0xff]  ;;  %v2973_v47 = vld [vmem:[#allocation8 + $0x298] sm:$0xff]  ;;  %v2988_v0 = vld [vmem:[#allocation8 + $0x310] sm:$0xff] }
0x17d3   :  { %v2803_v12 = vadd.f32 %v2802_v30, %v2801_v15  ;;  %3073 = vmatpush.msrb.mxu2 %v2923_v52  ;;  %3163 = vmatpush.msra.mxu3 %v3013_v40  ;;  %v2977_v15 = vld [vmem:[#allocation8 + $0x2b8] sm:$0xff]  ;;  %v2955_v18 = vld [vmem:[#allocation8 + $0x208] sm:$0xff]  ;;  %v2954_v59 = vld [vmem:[#allocation8 + $0x200] sm:$0xff] }
0x17d4   :  { %3099 = vmatpush.msra.mxu0 %v2969_v3  ;;  %3123 = vmatpush.msra.mxu1 %v2981_v60  ;;  %v2993_v30 = vld [vmem:[#allocation8 + $0x338] sm:$0xff]  ;;  %v2956_v3 = vld [vmem:[#allocation8 + $0x210] sm:$0xff]  ;;  %v2987_v61 = vld [vmem:[#allocation8 + $0x308] sm:$0xff] }
0x17d5   :  { %v2805_v46 = vadd.f32 %v2804_v45, %v2803_v12  ;;  %3074 = vmatpush.msrb.mxu2 %v2922_v43  ;;  %3164 = vmatpush.msra.mxu3 %v3012_v37  ;;  %v3009_v12 = vld [vmem:[#allocation8 + $0x3b8] sm:$0xff]  ;;  %v2960_v45 = vld [vmem:[#allocation8 + $0x230] sm:$0xff]  ;;  %v2986_v53 = vld [vmem:[#allocation8 + $0x300] sm:$0xff] }
0x17d6   :  { %3100 = vmatpush.msra.mxu0 %v2968_v35  ;;  %3124 = vmatpush.msra.mxu1 %v2980_v56  ;;  %v2989_v43 = vld [vmem:[#allocation8 + $0x318] sm:$0xff]  ;;  %v3004_v35 = vld [vmem:[#allocation8 + $0x390] sm:$0xff] }
0x17d7   :  { %2806 = vadd.xlane.f32.xlu1 %v2805_v46  ;;  %3139 = vmatpush.msra.mxu2 %v3001_v4  ;;  %v2976_v46 = vld [vmem:[#allocation8 + $0x2b0] sm:$0xff] }
0x17d8   :  { %3101 = vmatpush.msra.mxu0 %v2967_v57  ;;  %3125 = vmatpush.msra.mxu1 %v2979_v58  ;;  %v3003_v57 = vld [vmem:[#allocation8 + $0x388] sm:$0xff] }
0x17d9   :  { %3140 = vmatpush.msra.mxu2 %v3000_v62  ;;  %3165 = vmatpush.msra.mxu3 %v3011_v23  ;;  %v2971_v62 = vld [vmem:[#allocation8 + $0x288] sm:$0xff] }
0x17da   :  { %3102 = vmatpush.msra.mxu0 %v2966_v54  ;;  %3126 = vmatpush.msra.mxu1 %v2978_v19  ;;  %v3002_v54 = vld [vmem:[#allocation8 + $0x380] sm:$0xff] }
0x17db   :  { %3141 = vmatpush.msra.mxu2 %v2999_v39  ;;  %3166 = vmatpush.msra.mxu3 %v3010_v28  ;;  %v2970_v39 = vld [vmem:[#allocation8 + $0x280] sm:$0xff] }
0x17dc   :  { %3103 = vmatpush.msra.mxu0 %v2965_v9  ;;  %3127 = vmatpush.msra.mxu1 %v2977_v15  ;;  %v2829_v60 = vld [vmem:[#allocation7 + $0x1] ss:$4 sm:$0xff]  ;;  %v2856_v40 = vld [vmem:[#allocation7 + $0x2] ss:$4 sm:$0xff] }
0x17dd   :  { %3142 = vmatpush.msra.mxu2 %v2998_v55  ;;  %3167 = vmatpush.msra.mxu3 %v3009_v12  ;;  %v2831_v56 = vperm.slane %v2829_v60, 0  ;;  %v2832_v37 = vperm.slane %v2829_v60, 1  ;;  %v2834_v58 = vperm.slane %v2829_v60, 3  ;;  %v2859_v23 = vperm.slane %v2856_v40, 1 }
0x17de   :  { %3104 = vmatpush.msra.mxu0 %v2964_v6  ;;  %3128 = vmatpush.msra.mxu1 %v2976_v46  ;;  %v2861_v19 = vperm.slane %v2856_v40, 3  ;;  %v2835_v12 = vperm.slane %v2829_v60, 4  ;;  %v2836_v46 = vperm.slane %v2829_v60, 5 }
0x17df   :  { %3143 = vmatpush.msra.mxu2 %v2997_v51  ;;  %3168 = vmatpush.msra.mxu3 %v3008_v21 }
0x17e0   :  { %3105 = vmatpush.msra.mxu0 %v2963_v2  ;;  %3129 = vmatpush.msra.mxu1 %v2975_v29  ;;  %v2833_v2 = vperm.slane %v2829_v60, 2 }
0x17e1   :  { %3144 = vmatpush.msra.mxu2 %v2996_v27  ;;  %3169 = vmatpush.msra.mxu3 %v3007_v16  ;;  %v2858_v27 = vperm.slane %v2856_v40, 0  ;;  %v2837_v16 = vperm.slane %v2829_v60, 6 }
0x17e2   :  { %3106 = vmatpush.msra.mxu0 %v2962_v36  ;;  %3130 = vmatpush.msra.mxu1 %v2974_v32  ;;  %v2860_v36 = vperm.slane %v2856_v40, 2 }
0x17e3   :  { %3145 = vmatpush.msra.mxu2 %v2995_v8  ;;  %3170 = vmatpush.msra.mxu3 %v3006_v31 }
0x17e4   :  { %3107 = vmatpush.msra.mxu0 %v2961_v42  ;;  %3131 = vmatpush.msra.mxu1 %v2973_v47 }
0x17e5   :  { %3146 = vmatpush.msra.mxu2 %v2994_v17  ;;  %3171 = vmatpush.msra.mxu3 %v3005_v10  ;;  %v2864_v10 = vperm.slane %v2856_v40, 6 }
0x17e6   :  { %3108 = vmatpush.msra.mxu0 %v2960_v45  ;;  %3132 = vmatpush.msra.mxu1 %v2972_v1 }
0x17e7   :  { %3147 = vmatpush.msra.mxu2 %v2993_v30  ;;  %3172 = vmatpush.msra.mxu3 %v3004_v35 }
0x17e8   :  { %3109 = vmatpush.msra.mxu0 %v2959_v20  ;;  %3133 = vmatpush.msra.mxu1 %v2971_v62 }
0x17e9   :  { %3148 = vmatpush.msra.mxu2 %v2992_v24  ;;  %3173 = vmatpush.msra.mxu3 %v3003_v57  ;;  %v3018_v57 = vld [vmem:[%s5231_s6] sm:$0x1] }
0x17ea   :  { %3110 = vmatpush.msra.mxu0 %v2958_v50  ;;  %3134 = vmatpush.msra.mxu1 %v2970_v39 }
0x17eb   :  { %3149 = vmatpush.msra.mxu2 %v2991_v48  ;;  %3174 = vmatpush.msra.mxu3 %v3002_v54 }
0x17ec   :  { %3111 = vmatpush.msra.mxu0 %v2957_v22 }
0x17ed   :  { %3150 = vmatpush.msra.mxu2 %v2990_v7 }
0x17ee   :  { %3112 = vmatpush.msra.mxu0 %v2956_v3 }
0x17ef   :  { %3151 = vmatpush.msra.mxu2 %v2989_v43 }
0x17f0   :  { %3113 = vmatpush.msra.mxu0 %v2955_v18 }
0x17f1   :  { %3152 = vmatpush.msra.mxu2 %v2988_v0 }
0x17f2   :  { %3114 = vmatpush.msra.mxu0 %v2954_v59 }
0x17f3   :  { %3153 = vmatpush.msra.mxu2 %v2987_v61 }
0x17f5   :  { %3154 = vmatpush.msra.mxu2 %v2986_v53 }
0x184a   :  { %v2807_v52 = vpop.xlane.xlu1 %2806 }
0x184b   :  { %v2808_v26 = vmul.f32 0.001, %v2807_v52  ;;  %v2863_v52 = vperm.slane %v2856_v40, 5 }
0x184d   :  { %v2809_v4 = vadd.f32 1e-05, %v2808_v26 }
0x184f   :  { %3524 = vrsqrt.f32 %v2809_v4  ;;  %vm2816_vm7 = vweird.f32 %v2809_v4 }
0x1855   :  { %v3525_v63 = vpop.eup %3524 }
0x1856   :  { %v2811_v55 = vmul.f32 %v3525_v63, %v2809_v4  ;;  %vm2817_vm6 = vweird.f32 %v3525_v63 }
0x1857   :  { %vm2818_vm8 = vmor %vm2816_vm7, %vm2817_vm6 }
0x1858   :  { %v2812_v14 = vmul.f32 %v3525_v63, %v2811_v55 }
0x185a   :  { %v2813_v9 = vmul.f32 0.5, %v2812_v14 }
0x185c   :  { %v2814_v51 = vsub.f32 1.5, %v2813_v9 }
0x185e   :  { %v2815_v6 = vmul.f32 %v3525_v63, %v2814_v51 }
0x1860   :  { %v2819_v8 = vsel %vm2818_vm8, %v3525_v63, %v2815_v6 }
0x1861   :  { %v2820_v17 = vmul.f32 %v2819_v8, %v5146_v44  ;;  %v2821_v28 = vmul.f32 %v2819_v8, %v5149_v33  ;;  %v2822_v42 = vmul.f32 %v2819_v8, %v5152_v49  ;;  %v2823_v15 = vmul.f32 %v2819_v8, %v5155_v25 }
0x1862   :  { %v2824_v30 = vmul.f32 %v2819_v8, %v5158_v5  ;;  %v2825_v45 = vmul.f32 %v2819_v8, %v5167_v41  ;;  %v2826_v48 = vmul.f32 %v2819_v8, %v5175_v13  ;;  %v2827_v44 = vmul.f32 %v2819_v8, %v5181_v34 }
0x1863   :  { %v2847_v24 = vmul.f32 %v2831_v56, %v2820_v17  ;;  %v2848_v21 = vmul.f32 %v2832_v37, %v2821_v28  ;;  %v2849_v20 = vmul.f32 %v2833_v2, %v2822_v42  ;;  %v2850_v29 = vmul.f32 %v2834_v58, %v2823_v15 }
0x1864   :  { %v2838_v33 = vperm.slane %v2829_v60, 7  ;;  %v2851_v7 = vmul.f32 %v2835_v12, %v2824_v30  ;;  %v2862_v5 = vperm.slane %v2856_v40, 4  ;;  %v2852_v31 = vmul.f32 %v2836_v46, %v2825_v45 }
0x1865   :  { %v2874_v50 = vadd.f32 %v2858_v27, %v2847_v24  ;;  %v2875_v49 = vadd.f32 %v2859_v23, %v2848_v21  ;;  %v2876_v32 = vadd.f32 %v2860_v36, %v2849_v20  ;;  %v2877_v25 = vadd.f32 %v2861_v19, %v2850_v29 }
0x1866   :  { %v2853_v43 = vmul.f32 %v2837_v16, %v2826_v48  ;;  %v2854_v3 = vmul.f32 %v2838_v33, %v2827_v44  ;;  %v2865_v13 = vperm.slane %v2856_v40, 7  ;;  %v2878_v34 = vadd.f32 %v2862_v5, %v2851_v7  ;;  %v3203_v48 = vld [vmem:[%s5231_s6 + $0x1] sm:$0x1]  ;;  %v3205_v44 = vld [vmem:[%s5231_s6 + $0x2] sm:$0x1]  ;;  %s3224_s6 = sshll.u32 %s5233_s8, 4  ;;  %s3225_s6 = int_to_ptr.hbm [resolvable:$true] %s3224_s6 }
0x1867   :  { %v2882_v41 = vmax.f32 %v2874_v50, 0.0  ;;  %v2883_v22 = vmax.f32 %v2875_v49, 0.0  ;;  %v2884_v47 = vmax.f32 %v2876_v32, 0.0  ;;  %v2885_v26 = vmax.f32 %v2877_v25, 0.0  ;;  %v3208_v49 = vld [vmem:[%s5232_s7] sm:$0x1] }
0x1868   :  { %v2879_v1 = vadd.f32 %v2863_v52, %v2852_v31  ;;  %v2880_v4 = vadd.f32 %v2864_v10, %v2853_v43  ;;  %v2881_v0 = vadd.f32 %v2865_v13, %v2854_v3  ;;  %v2886_v35 = vmax.f32 %v2878_v34, 0.0  ;;  %v3213_v5 = vld [vmem:[%s5232_s7 + $0x1] sm:$0x1] }
0x1869   :  { %3035 = vmatmul.f32.vlgmr.msrb.gmra.mxu0 %v2882_v41  ;;  %3055 = vmatmul.f32.vlgmr.msrb.gmra.mxu1 %v2883_v22  ;;  %v3238_v2 = vsel %vm127_vm9, 1.0, %v5543_v11 }
0x186a   :  { %3075 = vmatmul.f32.vlgmr.msrb.gmra.mxu2 %v2884_v47  ;;  %3095 = vmatmul.f32.vlgmr.msrb.gmra.mxu3 %v2885_v26  ;;  %v2887_v18 = vmax.f32 %v2879_v1, 0.0  ;;  %v2888_v62 = vmax.f32 %v2880_v4, 0.0  ;;  %v2889_v61 = vmax.f32 %v2881_v0, 0.0 }
0x1871   :  { %3115 = vmatmul.f32.vlgmr.msra.gmra.mxu0 %v2886_v35  ;;  %3135 = vmatmul.f32.vlgmr.msra.gmra.mxu1 %v2887_v18 }
0x1872   :  { %3155 = vmatmul.f32.vlgmr.msra.gmra.mxu2 %v2888_v62  ;;  %3175 = vmatmul.f32.vlgmr.msra.gmra.mxu3 %v2889_v61 }
0x18e6   :  { %v3036_v59 = vpop.f32.mrf.mxu0  ;;  %v3056_v53 = vpop.f32.mrf.mxu1 }
0x18e7   :  { %v3037_v39 = vadd.f32 %v3036_v59, %v3018_v57 }
0x18e9   :  { %v3057_v54 = vadd.f32 %v3056_v53, %v3037_v39 }
0x18ed   :  { %v3076_v63 = vpop.f32.mrf.mxu2  ;;  %v3096_v55 = vpop.f32.mrf.mxu3 }
0x18ee   :  { %v3077_v14 = vadd.f32 %v3076_v63, %v3057_v54  ;;  %v3116_v60 = vpop.f32.mrf.mxu0  ;;  %v3136_v40 = vpop.f32.mrf.mxu1 }
0x18f0   :  { %v3097_v9 = vadd.f32 %v3096_v55, %v3077_v14 }
0x18f2   :  { %v3117_v51 = vadd.f32 %v3116_v60, %v3097_v9 }
0x18f4   :  { %v3137_v6 = vadd.f32 %v3136_v40, %v3117_v51 }
0x18f5   :  { %v3156_v56 = vpop.f32.mrf.mxu2  ;;  %v3176_v37 = vpop.f32.mrf.mxu3 }
0x18f6   :  { %v3157_v27 = vadd.f32 %v3156_v56, %v3137_v6 }
0x18f8   :  { %v3177_v58 = vadd.f32 %v3176_v37, %v3157_v27 }
0x18fa   :  { %v3179_v8 = vmul.f32 %v3238_v2, %v3177_v58 }
0x18fc   :  { %v3180_v23 = vsel %vm156_vm0, %v3179_v8, 0.0 }
0x18fd   :  { %3181 = vadd.xlane.f32.xlu2 %v3180_v23 }
0x1970   :  { %v3182_v36 = vpop.xlane.xlu2 %3181 }
0x1971   :  { %v3183_v19 = vmul.f32 0.01, %v3182_v36 }
0x1973   :  { %v3184_v17 = vsub.f32 %v3177_v58, %v3183_v19 }
0x1975   :  { %v3185_v28 = vmul.f32 %v3238_v2, %v3184_v17 }
0x1977   :  { %v3186_v42 = vmul.f32 %v3185_v28, %v3185_v28 }
0x1979   :  { %v3187_v15 = vsel %vm156_vm0, %v3186_v42, 0.0 }
0x197a   :  { %3188 = vadd.xlane.f32.xlu0 %v3187_v15 }
0x19ed   :  { %v3189_v30 = vpop.xlane.xlu0 %3188 }
0x19ee   :  { %v3190_v38 = vmul.f32 0.01, %v3189_v30 }
0x19f0   :  { %v3191_v12 = vadd.f32 1e-05, %v3190_v38 }
0x19f2   :  { %3526 = vrsqrt.f32 %v3191_v12  ;;  %vm3198_vm11 = vweird.f32 %v3191_v12 }
0x19f8   :  { %v3527_v45 = vpop.eup %3526 }
0x19f9   :  { %v3193_v46 = vmul.f32 %v3527_v45, %v3191_v12  ;;  %vm3199_vm10 = vweird.f32 %v3527_v45 }
0x19fa   :  { %vm3200_vm12 = vmor %vm3198_vm11, %vm3199_vm10 }
0x19fb   :  { %v3194_v11 = vmul.f32 %v3527_v45, %v3193_v46 }
0x19fd   :  { %v3195_v24 = vmul.f32 0.5, %v3194_v11 }
0x19ff   :  { %v3196_v21 = vsub.f32 1.5, %v3195_v24 }
0x1a01   :  { %v3197_v20 = vmul.f32 %v3527_v45, %v3196_v21 }
0x1a03   :  { %v3201_v29 = vsel %vm3200_vm12, %v3527_v45, %v3197_v20 }
0x1a04   :  { %v3202_v16 = vmul.f32 %v3201_v29, %v3185_v28 }
0x1a06   :  { %v3204_v33 = vmul.f32 %v3203_v48, %v3202_v16 }
0x1a08   :  { %v3206_v50 = vadd.f32 %v3205_v44, %v3204_v33 }
0x1a0a   :  { %v3207_v32 = vmax.f32 %v3206_v50, 0.0 }
0x1a0c   :  { %v3209_v25 = vmul.f32 %v3208_v49, %v3207_v32 }
0x1a0e   :  { %v3210_v7 = vsel %vm156_vm0, %v3209_v25, 0.0 }
0x1a0f   :  { %3211 = vadd.xlane.f32.xlu1 %v3210_v7 }
0x1a82   :  { %v3212_v31 = vpop.xlane.xlu1 %3211 }
0x1a83   :  { %v3214_v52 = vadd.f32 %v3213_v5, %v3212_v31 }
0x1a85   :  { %3216 = vst.msk [vmem:[#allocation10] sm:$0x1] %vm3215_vm13, %v3214_v52 }
0x1a86   :  { %3227 = dma.vmem_to_hbm [thread:$0]  %s3223_s21, 16, %s3225_s6, [#allocation4]  }
0x1a87   :  { %3782 = dma.done.wait [#allocation4], 16  }
0x1a88   :  { %3783 = vsyncadd [#allocation4], 4294967280 }
0x1a89   :  { %3232 = vsyncpa [#allocation3], 1 }
0x1a8a   :  { %3233 = vsyncpa [#allocation6], 1 }
0x1a8b   :  { %3234 = vsyncpa [#allocation9], 1 }
0x1a8c   :  { %3235 = vsyncpa [#allocation4], 1 }

</bundles_post_ra>
